<compile_context>
chip_gen: v6e
topology: v6e:2x2x1
jax: 0.10.0
libtpu: 0.0.40
codegen_flags: <defaults>
</compile_context>

<pallas_src>
import numpy as np
import jax
import jax.numpy as jnp
from jax import lax
from jax.experimental import pallas as pl
from jax.experimental.pallas import tpu as pltpu


def _round_up(v, m):
    return (v + m - 1) // m * m


# ------------------------------ fused kernel --------------------------------

def _make_block_kernel(*, Q, Hq, Wqp, Ho, Wo, planes, cout,
                       stride, add_residual, has_sc_conv):
    """One grid step == one image; the whole block is fused."""

    def tap(ky, kx):
        # (quadrant index, in-quadrant row/col offset) for depthwise tap (ky, kx)
        if stride == 1:
            return 0, ky, kx
        return 2 * (ky & 1) + (kx & 1), ky // 2, kx // 2

    hi = lax.Precision.HIGHEST

    def kernel(*refs):
        it = iter(refs)
        xq_ref = next(it)                                   # (Q*Hq*Wqp, cin+1)
        xres_ref = next(it) if add_residual else None       # (cin[+1], Ho*Wo)
        w1b_ref = next(it)                                  # (cin+1, planes)
        w2b_ref = next(it)                                  # (10, planes)
        w3b_ref = next(it)                                  # (cout, planes+1)
        wsb_ref = next(it) if has_sc_conv else None         # (cout, cin+1)
        out_ref = next(it)                                  # (cout, Ho*Wo)
        hscr_ref = next(it)                                 # (Q, Hq, Wqp, planes)

        # --- conv1 (1x1) + BN + ReLU as one MXU dot.  BN scale is folded into
        #     w1; BN bias comes from the last input column, which is 1 on real
        #     pixels and 0 on the zero-padding halo, so the halo is exactly 0
        #     after ReLU (correct padding for the depthwise conv).
        h1 = jnp.dot(xq_ref[...], w1b_ref[...],
                     preferred_element_type=jnp.float32, precision=hi)
        h1 = jnp.maximum(h1, 0.0)
        hscr_ref[...] = h1.reshape(Q, Hq, Wqp, planes)       # tile-aligned regroup

        # --- depthwise 3x3 (stride folded into the quadrant layout) + BN + ReLU:
        #     9 image-wide shifted multiply-adds.
        acc = jnp.zeros((Ho, Wo, planes), jnp.float32)
        for ky in range(3):
            for kx in range(3):
                q, dy, dx = tap(ky, kx)
                acc = acc + (hscr_ref[q, dy:dy + Ho, dx:dx + Wo, :]
                             * w2b_ref[ky * 3 + kx, :])
        h2 = jnp.maximum(acc + w2b_ref[9, :], 0.0)

        # --- conv3 (1x1) + BN, computed transposed so the output block is
        #     lane-dense (cout on sublanes, Ho*Wo on lanes) -> unmasked stores
        #     and a directly-NCHW result.
        h2_2d = h2.reshape(Ho * Wo, planes)                  # Wo % 8 == 0 -> aligned
        w3t = w3b_ref[:, 0:planes]
        b3 = w3b_ref[:, planes:planes + 1]
        out_t = lax.dot_general(w3t, h2_2d, (((1,), (1,)), ((), ())),
                                preferred_element_type=jnp.float32,
                                precision=hi) + b3

        if add_residual:
            if has_sc_conv:
                # 1x1 shortcut conv + BN: bias rides in via the ones row of xres.
                out_t = out_t + jnp.dot(wsb_ref[...], xres_ref[...],
                                        preferred_element_type=jnp.float32,
                                        precision=hi)
            else:
                out_t = out_t + xres_ref[...]                # cin == cout here

        out_ref[...] = out_t.astype(out_ref.dtype)

    return kernel


# ------------------------------ wrapper (glue) -------------------------------

def block_forward(params, x_nchw, in_planes, out_planes, expansion, stride):
    n, cin, h, w = x_nchw.shape
    assert cin == in_planes
    assert stride in (1, 2)
    if stride == 2:
        assert h % 2 == 0 and w % 2 == 0   # MobileNetV2 spatial dims are even
    planes = expansion * in_planes
    ho, wo = (h + stride - 1) // stride, (w + stride - 1) // stride

    add_residual = (stride == 1)
    has_sc_conv = add_residual and (in_planes != out_planes)
    if add_residual and not has_sc_conv:
        assert in_planes == out_planes     # identity shortcut needs matching channels

    # NHWC, zero-padded spatially; mask marks real pixels (1) vs. halo (0).
    x = jnp.transpose(x_nchw, (0, 2, 3, 1)).astype(jnp.float32)
    x_pad = jnp.pad(x, ((0, 0), (1, 1), (1, 1), (0, 0)))
    m_pad = jnp.pad(jnp.ones((h, w), jnp.float32), ((1, 1), (1, 1)))

    if stride == 1:
        quads = x_pad[:, None]                                   # (N,1,H+2,W+2,C)
        mquads = m_pad[None]
    else:
        quads = jnp.stack([x_pad[:, a::2, b::2, :]
                           for a in (0, 1) for b in (0, 1)], axis=1)
        mquads = jnp.stack([m_pad[a::2, b::2]
                            for a in (0, 1) for b in (0, 1)], axis=0)
    _, Q, Hq, Wq, _ = quads.shape
    Wqp = _round_up(Wq, 8)     # keep in-kernel reshapes tile-aligned
    quads = jnp.pad(quads, ((0, 0), (0, 0), (0, 0), (0, Wqp - Wq), (0, 0)))
    mquads = jnp.pad(mquads, ((0, 0), (0, 0), (0, Wqp - Wq)))

    bias_col = jnp.broadcast_to(mquads[None, :, :, :, None], (n, Q, Hq, Wqp, 1))
    xq = jnp.concatenate([quads, bias_col], axis=-1)
    xq = xq.reshape(n, Q * Hq * Wqp, cin + 1)

    # Fold eval-mode BN scales into conv weights; biases packed alongside.
    s1, b1 = params["bn1"]
    s2, b2 = params["bn2"]
    s3, b3 = params["bn3"]
    w1b = jnp.concatenate([params["w1"] * s1[None, :], b1[None, :]], axis=0)
    w2b = jnp.concatenate([(params["w2"] * s2[None, None, :]).reshape(9, planes),
                           b2[None, :]], axis=0)
    w3b = jnp.concatenate([(params["w3"] * s3[None, :]).T, b3[:, None]], axis=1)

    args = [xq]
    in_specs = [pl.BlockSpec((None, Q * Hq * Wqp, cin + 1), lambda i: (i, 0, 0))]
    if add_residual:
        xres = x_nchw.reshape(n, cin, h * w).astype(jnp.float32)
        if has_sc_conv:
            xres = jnp.concatenate(
                [xres, jnp.ones((n, 1, h * w), jnp.float32)], axis=1)
        args.append(xres)
        in_specs.append(
            pl.BlockSpec((None, xres.shape[1], h * w), lambda i: (i, 0, 0)))
    args += [w1b, w2b, w3b]
    in_specs += [pl.BlockSpec(w1b.shape, lambda i: (0, 0)),
                 pl.BlockSpec(w2b.shape, lambda i: (0, 0)),
                 pl.BlockSpec(w3b.shape, lambda i: (0, 0))]
    if has_sc_conv:
        ss, bs = params["bns"]
        wsb = jnp.concatenate([(params["ws"] * ss[None, :]).T, bs[:, None]],
                              axis=1)
        args.append(wsb)
        in_specs.append(pl.BlockSpec(wsb.shape, lambda i: (0, 0)))

    kernel = _make_block_kernel(Q=Q, Hq=Hq, Wqp=Wqp, Ho=ho, Wo=wo,
                                planes=planes, cout=out_planes, stride=stride,
                                add_residual=add_residual,
                                has_sc_conv=has_sc_conv)

    # TODO(synk): with batch == 1 the single "parallel" step leaves one v7x
    # TensorCore idle; for large batches, pack several images per grid step.
    out = pl.pallas_call(
        kernel,
        out_shape=jax.ShapeDtypeStruct((n, out_planes, ho * wo), jnp.float32),
        grid_spec=pltpu.PrefetchScalarGridSpec(
            num_scalar_prefetch=0,
            grid=(n,),
            in_specs=in_specs,
            out_specs=pl.BlockSpec((None, out_planes, ho * wo),
                                   lambda i: (i, 0, 0)),
            scratch_shapes=[pltpu.VMEM((Q, Hq, Wqp, planes), jnp.float32)]),
        compiler_params=pltpu.CompilerParams(
            dimension_semantics=("parallel",)),
    )(*args)

    return out.reshape(n, out_planes, ho, wo)          # already NCHW


# --------------------------- parameters (folded BN) ---------------------------

def _fold_bn(key, c, eps=1e-5):
    k0, k1, k2, k3 = jax.random.split(key, 4)
    gamma = 1.0 + 0.1 * jax.random.normal(k0, (c,), jnp.float32)
    beta = 0.05 * jax.random.normal(k1, (c,), jnp.float32)
    mean = 0.1 * jax.random.normal(k2, (c,), jnp.float32)
    var = jnp.abs(jax.random.normal(k3, (c,), jnp.float32)) + 0.5
    scale = gamma / jnp.sqrt(var + eps)
    bias = beta - mean * scale
    return scale, bias


def init_block_params(key, in_planes, out_planes, expansion):
    planes = expansion * in_planes
    ks = jax.random.split(key, 8)
    p = {}
    p["w1"] = 0.3 * jax.random.normal(ks[0], (in_planes, planes), jnp.float32)
    p["bn1"] = _fold_bn(ks[1], planes)
    p["w2"] = 0.3 * jax.random.normal(ks[2], (3, 3, planes), jnp.float32)
    p["bn2"] = _fold_bn(ks[3], planes)
    p["w3"] = 0.3 * jax.random.normal(ks[4], (planes, out_planes), jnp.float32)
    p["bn3"] = _fold_bn(ks[5], out_planes)
    p["ws"] = 0.3 * jax.random.normal(ks[6], (in_planes, out_planes), jnp.float32)
    p["bns"] = _fold_bn(ks[7], out_planes)
    return p


# ------------------------------ pure-JAX reference ----------------------------

def block_ref(params, x_nchw, in_planes, out_planes, expansion, stride):
    x = jnp.transpose(x_nchw, (0, 2, 3, 1))
    planes = expansion * in_planes
    dn = ("NHWC", "HWIO", "NHWC")

    def bn(y, sb):
        s, b = sb
        return y * s + b

    cin = in_planes
    h1 = lax.conv_general_dilated(
        x, params["w1"].reshape(1, 1, cin, planes), (1, 1), "VALID",
        dimension_numbers=dn, precision=lax.Precision.HIGHEST)
    h1 = jnp.maximum(bn(h1, params["bn1"]), 0.0)

    wdw = params["w2"].reshape(3, 3, 1, planes)
    h2 = lax.conv_general_dilated(
        h1, wdw, (stride, stride), ((1, 1), (1, 1)),
        dimension_numbers=dn, feature_group_count=planes,
        precision=lax.Precision.HIGHEST)
    h2 = jnp.maximum(bn(h2, params["bn2"]), 0.0)

    h3 = lax.conv_general_dilated(
        h2, params["w3"].reshape(1, 1, planes, out_planes), (1, 1), "VALID",
        dimension_numbers=dn, precision=lax.Precision.HIGHEST)
    out = bn(h3, params["bn3"])

    if stride == 1:
        if in_planes != out_planes:
            sc = lax.conv_general_dilated(
                x, params["ws"].reshape(1, 1, cin, out_planes), (1, 1), "VALID",
                dimension_numbers=dn, precision=lax.Precision.HIGHEST)
            sc = bn(sc, params["bns"])
        else:
            sc = x
        out = out + sc
    return jnp.transpose(out, (0, 3, 1, 2))


# ---------------------------------- main --------------------------------------

if __name__ == "__main__":
    key = jax.random.PRNGKey(0)
    kx, kp, kp2 = jax.random.split(key, 3)

    # Block with conv shortcut (in_planes != out_planes), strides 1 and 2.
    in_planes, out_planes, expansion = 4, 8, 6
    x = jax.random.normal(kx, (2, in_planes, 16, 16), jnp.float32)   # NCHW
    params = init_block_params(kp, in_planes, out_planes, expansion)
    for stride in (1, 2):
        out = jax.block_until_ready(
            block_forward(params, x, in_planes, out_planes, expansion, stride))
        ref = jax.block_until_ready(
            block_ref(params, x, in_planes, out_planes, expansion, stride))
        assert out.shape == ref.shape, (out.shape, ref.shape)
        np.testing.assert_allclose(np.asarray(out), np.asarray(ref),
                                   rtol=1e-3, atol=1e-3)

    # Block with identity shortcut (in_planes == out_planes), stride 1.
    params2 = init_block_params(kp2, 8, 8, 6)
    x2 = jax.random.normal(kx, (2, 8, 16, 16), jnp.float32)
    out = jax.block_until_ready(block_forward(params2, x2, 8, 8, 6, 1))
    ref = jax.block_until_ready(block_ref(params2, x2, 8, 8, 6, 1))
    np.testing.assert_allclose(np.asarray(out), np.asarray(ref),
                               rtol=1e-3, atol=1e-3)

    print("KERNEL_OK")
</pallas_src>

<mosaic_0001>
module attributes {stable_mosaic.version = 11 : i64} {
  func.func @kernel(%arg0: i32, %arg1: memref<1x432x5xf32, #tpu.memory_space<vmem>>, %arg2: memref<1x5x256xf32, #tpu.memory_space<vmem>>, %arg3: memref<5x24xf32, #tpu.memory_space<vmem>>, %arg4: memref<10x24xf32, #tpu.memory_space<vmem>>, %arg5: memref<8x25xf32, #tpu.memory_space<vmem>>, %arg6: memref<8x5xf32, #tpu.memory_space<vmem>>, %arg7: memref<1x8x256xf32, #tpu.memory_space<vmem>>, %arg8: memref<1x18x24x24xf32, #tpu.memory_space<vmem>>) attributes {dimension_semantics = [#tpu.dimension_semantics<parallel>], iteration_bounds = array<i64: 2>, scalar_prefetch = 0 : i64, scratch_operands = 1 : i64, tpu.core_type = #tpu.core_type<tc>, window_params = [{transform_indices = @transform_0, window_bounds = array<i64: 1, 432, 5>}, {transform_indices = @transform_1, window_bounds = array<i64: 1, 5, 256>}, {pipeline_mode = #tpu.pipeline_mode<synchronous>, transform_indices = @transform_2, window_bounds = array<i64: 5, 24>}, {pipeline_mode = #tpu.pipeline_mode<synchronous>, transform_indices = @transform_3, window_bounds = array<i64: 10, 24>}, {pipeline_mode = #tpu.pipeline_mode<synchronous>, transform_indices = @transform_4, window_bounds = array<i64: 8, 25>}, {pipeline_mode = #tpu.pipeline_mode<synchronous>, transform_indices = @transform_5, window_bounds = array<i64: 8, 5>}, {transform_indices = @transform_6, window_bounds = array<i64: 1, 8, 256>}]} {
    %c0 = arith.constant 0 : index
    %c0_0 = arith.constant 0 : index
    %c0_1 = arith.constant 0 : index
    %0 = vector.load %arg1[%c0, %c0_0, %c0_1] : memref<1x432x5xf32, #tpu.memory_space<vmem>>, vector<1x432x5xf32>
    %1 = vector.shape_cast %0 : vector<1x432x5xf32> to vector<432x5xf32>
    %c0_2 = arith.constant 0 : index
    %c0_3 = arith.constant 0 : index
    %2 = vector.load %arg3[%c0_2, %c0_3] : memref<5x24xf32, #tpu.memory_space<vmem>>, vector<5x24xf32>
    %cst = arith.constant dense<0.000000e+00> : vector<432x24xf32>
    %3 = tpu.matmul %1, %2, %cst {dimension_numbers = #tpu.dot_dimension_numbers<[1], [0], [0], [1], [0, 0, 1, 1], [], []>, precision = #tpu.contract_precision<fp32>} : vector<432x5xf32>, vector<5x24xf32>, vector<432x24xf32> -> vector<432x24xf32>
    %cst_4 = arith.constant 0.000000e+00 : f32
    %4 = vector.broadcast %cst_4 : f32 to vector<432x24xf32>
    %5 = arith.maximumf %3, %4 : vector<432x24xf32>
    %6 = vector.shape_cast %5 : vector<432x24xf32> to vector<1x18x24x24xf32>
    %c0_5 = arith.constant 0 : index
    %c0_6 = arith.constant 0 : index
    %c0_7 = arith.constant 0 : index
    %c0_8 = arith.constant 0 : index
    %7 = vector.load %arg8[%c0_5, %c0_6, %c0_7, %c0_8] : memref<1x18x24x24xf32, #tpu.memory_space<vmem>>, vector<1x18x24x24xf32>
    tpu.vector_store %arg8[%c0_5, %c0_6, %c0_7, %c0_8], %6 {strides = array<i32>} : memref<1x18x24x24xf32, #tpu.memory_space<vmem>>, vector<1x18x24x24xf32>,
    %cst_9 = arith.constant 0.000000e+00 : f32
    %8 = vector.broadcast %cst_9 : f32 to vector<16x16x24xf32>
    %c0_10 = arith.constant 0 : index
    %c0_11 = arith.constant 0 : index
    %c0_12 = arith.constant 0 : index
    %c0_13 = arith.constant 0 : index
    %9 = vector.load %arg8[%c0_10, %c0_11, %c0_12, %c0_13] : memref<1x18x24x24xf32, #tpu.memory_space<vmem>>, vector<1x16x16x24xf32>
    %10 = vector.shape_cast %9 : vector<1x16x16x24xf32> to vector<16x16x24xf32>
    %c0_14 = arith.constant 0 : index
    %c0_15 = arith.constant 0 : index
    %11 = vector.load %arg4[%c0_14, %c0_15] : memref<10x24xf32, #tpu.memory_space<vmem>>, vector<1x24xf32>
    %12 = vector.shape_cast %11 : vector<1x24xf32> to vector<24xf32>
    %13 = vector.shape_cast %12 : vector<24xf32> to vector<1x1x24xf32>
    %14 = vector.broadcast %13 : vector<1x1x24xf32> to vector<16x16x24xf32>
    %15 = arith.mulf %10, %14 : vector<16x16x24xf32>
    %16 = arith.addf %8, %15 : vector<16x16x24xf32>
    %c0_16 = arith.constant 0 : index
    %c0_17 = arith.constant 0 : index
    %c1 = arith.constant 1 : index
    %c0_18 = arith.constant 0 : index
    %17 = vector.load %arg8[%c0_16, %c0_17, %c1, %c0_18] : memref<1x18x24x24xf32, #tpu.memory_space<vmem>>, vector<1x16x16x24xf32>
    %18 = vector.shape_cast %17 : vector<1x16x16x24xf32> to vector<16x16x24xf32>
    %c1_19 = arith.constant 1 : index
    %c0_20 = arith.constant 0 : index
    %19 = vector.load %arg4[%c1_19, %c0_20] : memref<10x24xf32, #tpu.memory_space<vmem>>, vector<1x24xf32>
    %20 = vector.shape_cast %19 : vector<1x24xf32> to vector<24xf32>
    %21 = vector.shape_cast %20 : vector<24xf32> to vector<1x1x24xf32>
    %22 = vector.broadcast %21 : vector<1x1x24xf32> to vector<16x16x24xf32>
    %23 = arith.mulf %18, %22 : vector<16x16x24xf32>
    %24 = arith.addf %16, %23 : vector<16x16x24xf32>
    %c0_21 = arith.constant 0 : index
    %c0_22 = arith.constant 0 : index
    %c2 = arith.constant 2 : index
    %c0_23 = arith.constant 0 : index
    %25 = vector.load %arg8[%c0_21, %c0_22, %c2, %c0_23] : memref<1x18x24x24xf32, #tpu.memory_space<vmem>>, vector<1x16x16x24xf32>
    %26 = vector.shape_cast %25 : vector<1x16x16x24xf32> to vector<16x16x24xf32>
    %c2_24 = arith.constant 2 : index
    %c0_25 = arith.constant 0 : index
    %27 = vector.load %arg4[%c2_24, %c0_25] : memref<10x24xf32, #tpu.memory_space<vmem>>, vector<1x24xf32>
    %28 = vector.shape_cast %27 : vector<1x24xf32> to vector<24xf32>
    %29 = vector.shape_cast %28 : vector<24xf32> to vector<1x1x24xf32>
    %30 = vector.broadcast %29 : vector<1x1x24xf32> to vector<16x16x24xf32>
    %31 = arith.mulf %26, %30 : vector<16x16x24xf32>
    %32 = arith.addf %24, %31 : vector<16x16x24xf32>
    %c0_26 = arith.constant 0 : index
    %c1_27 = arith.constant 1 : index
    %c0_28 = arith.constant 0 : index
    %c0_29 = arith.constant 0 : index
    %33 = vector.load %arg8[%c0_26, %c1_27, %c0_28, %c0_29] : memref<1x18x24x24xf32, #tpu.memory_space<vmem>>, vector<1x16x16x24xf32>
    %34 = vector.shape_cast %33 : vector<1x16x16x24xf32> to vector<16x16x24xf32>
    %c3 = arith.constant 3 : index
    %c0_30 = arith.constant 0 : index
    %35 = vector.load %arg4[%c3, %c0_30] : memref<10x24xf32, #tpu.memory_space<vmem>>, vector<1x24xf32>
    %36 = vector.shape_cast %35 : vector<1x24xf32> to vector<24xf32>
    %37 = vector.shape_cast %36 : vector<24xf32> to vector<1x1x24xf32>
    %38 = vector.broadcast %37 : vector<1x1x24xf32> to vector<16x16x24xf32>
    %39 = arith.mulf %34, %38 : vector<16x16x24xf32>
    %40 = arith.addf %32, %39 : vector<16x16x24xf32>
    %c0_31 = arith.constant 0 : index
    %c1_32 = arith.constant 1 : index
    %c1_33 = arith.constant 1 : index
    %c0_34 = arith.constant 0 : index
    %41 = vector.load %arg8[%c0_31, %c1_32, %c1_33, %c0_34] : memref<1x18x24x24xf32, #tpu.memory_space<vmem>>, vector<1x16x16x24xf32>
    %42 = vector.shape_cast %41 : vector<1x16x16x24xf32> to vector<16x16x24xf32>
    %c4 = arith.constant 4 : index
    %c0_35 = arith.constant 0 : index
    %43 = vector.load %arg4[%c4, %c0_35] : memref<10x24xf32, #tpu.memory_space<vmem>>, vector<1x24xf32>
    %44 = vector.shape_cast %43 : vector<1x24xf32> to vector<24xf32>
    %45 = vector.shape_cast %44 : vector<24xf32> to vector<1x1x24xf32>
    %46 = vector.broadcast %45 : vector<1x1x24xf32> to vector<16x16x24xf32>
    %47 = arith.mulf %42, %46 : vector<16x16x24xf32>
    %48 = arith.addf %40, %47 : vector<16x16x24xf32>
    %c0_36 = arith.constant 0 : index
    %c1_37 = arith.constant 1 : index
    %c2_38 = arith.constant 2 : index
    %c0_39 = arith.constant 0 : index
    %49 = vector.load %arg8[%c0_36, %c1_37, %c2_38, %c0_39] : memref<1x18x24x24xf32, #tpu.memory_space<vmem>>, vector<1x16x16x24xf32>
    %50 = vector.shape_cast %49 : vector<1x16x16x24xf32> to vector<16x16x24xf32>
    %c5 = arith.constant 5 : index
    %c0_40 = arith.constant 0 : index
    %51 = vector.load %arg4[%c5, %c0_40] : memref<10x24xf32, #tpu.memory_space<vmem>>, vector<1x24xf32>
    %52 = vector.shape_cast %51 : vector<1x24xf32> to vector<24xf32>
    %53 = vector.shape_cast %52 : vector<24xf32> to vector<1x1x24xf32>
    %54 = vector.broadcast %53 : vector<1x1x24xf32> to vector<16x16x24xf32>
    %55 = arith.mulf %50, %54 : vector<16x16x24xf32>
    %56 = arith.addf %48, %55 : vector<16x16x24xf32>
    %c0_41 = arith.constant 0 : index
    %c2_42 = arith.constant 2 : index
    %c0_43 = arith.constant 0 : index
    %c0_44 = arith.constant 0 : index
    %57 = vector.load %arg8[%c0_41, %c2_42, %c0_43, %c0_44] : memref<1x18x24x24xf32, #tpu.memory_space<vmem>>, vector<1x16x16x24xf32>
    %58 = vector.shape_cast %57 : vector<1x16x16x24xf32> to vector<16x16x24xf32>
    %c6 = arith.constant 6 : index
    %c0_45 = arith.constant 0 : index
    %59 = vector.load %arg4[%c6, %c0_45] : memref<10x24xf32, #tpu.memory_space<vmem>>, vector<1x24xf32>
    %60 = vector.shape_cast %59 : vector<1x24xf32> to vector<24xf32>
    %61 = vector.shape_cast %60 : vector<24xf32> to vector<1x1x24xf32>
    %62 = vector.broadcast %61 : vector<1x1x24xf32> to vector<16x16x24xf32>
    %63 = arith.mulf %58, %62 : vector<16x16x24xf32>
    %64 = arith.addf %56, %63 : vector<16x16x24xf32>
    %c0_46 = arith.constant 0 : index
    %c2_47 = arith.constant 2 : index
    %c1_48 = arith.constant 1 : index
    %c0_49 = arith.constant 0 : index
    %65 = vector.load %arg8[%c0_46, %c2_47, %c1_48, %c0_49] : memref<1x18x24x24xf32, #tpu.memory_space<vmem>>, vector<1x16x16x24xf32>
    %66 = vector.shape_cast %65 : vector<1x16x16x24xf32> to vector<16x16x24xf32>
    %c7 = arith.constant 7 : index
    %c0_50 = arith.constant 0 : index
    %67 = vector.load %arg4[%c7, %c0_50] : memref<10x24xf32, #tpu.memory_space<vmem>>, vector<1x24xf32>
    %68 = vector.shape_cast %67 : vector<1x24xf32> to vector<24xf32>
    %69 = vector.shape_cast %68 : vector<24xf32> to vector<1x1x24xf32>
    %70 = vector.broadcast %69 : vector<1x1x24xf32> to vector<16x16x24xf32>
    %71 = arith.mulf %66, %70 : vector<16x16x24xf32>
    %72 = arith.addf %64, %71 : vector<16x16x24xf32>
    %c0_51 = arith.constant 0 : index
    %c2_52 = arith.constant 2 : index
    %c2_53 = arith.constant 2 : index
    %c0_54 = arith.constant 0 : index
    %73 = vector.load %arg8[%c0_51, %c2_52, %c2_53, %c0_54] : memref<1x18x24x24xf32, #tpu.memory_space<vmem>>, vector<1x16x16x24xf32>
    %74 = vector.shape_cast %73 : vector<1x16x16x24xf32> to vector<16x16x24xf32>
    %c8 = arith.constant 8 : index
    %c0_55 = arith.constant 0 : index
    %75 = vector.load %arg4[%c8, %c0_55] : memref<10x24xf32, #tpu.memory_space<vmem>>, vector<1x24xf32>
    %76 = vector.shape_cast %75 : vector<1x24xf32> to vector<24xf32>
    %77 = vector.shape_cast %76 : vector<24xf32> to vector<1x1x24xf32>
    %78 = vector.broadcast %77 : vector<1x1x24xf32> to vector<16x16x24xf32>
    %79 = arith.mulf %74, %78 : vector<16x16x24xf32>
    %80 = arith.addf %72, %79 : vector<16x16x24xf32>
    %c9 = arith.constant 9 : index
    %c0_56 = arith.constant 0 : index
    %81 = vector.load %arg4[%c9, %c0_56] : memref<10x24xf32, #tpu.memory_space<vmem>>, vector<1x24xf32>
    %82 = vector.shape_cast %81 : vector<1x24xf32> to vector<24xf32>
    %83 = vector.shape_cast %82 : vector<24xf32> to vector<1x1x24xf32>
    %84 = vector.broadcast %83 : vector<1x1x24xf32> to vector<16x16x24xf32>
    %85 = arith.addf %80, %84 : vector<16x16x24xf32>
    %cst_57 = arith.constant 0.000000e+00 : f32
    %86 = vector.broadcast %cst_57 : f32 to vector<16x16x24xf32>
    %87 = arith.maximumf %85, %86 : vector<16x16x24xf32>
    %88 = vector.shape_cast %87 : vector<16x16x24xf32> to vector<256x24xf32>
    %c0_58 = arith.constant 0 : index
    %c0_59 = arith.constant 0 : index
    %89 = vector.load %arg5[%c0_58, %c0_59] : memref<8x25xf32, #tpu.memory_space<vmem>>, vector<8x24xf32>
    %c0_60 = arith.constant 0 : index
    %c24 = arith.constant 24 : index
    %90 = vector.load %arg5[%c0_60, %c24] : memref<8x25xf32, #tpu.memory_space<vmem>>, vector<8x1xf32>
    %cst_61 = arith.constant dense<0.000000e+00> : vector<8x256xf32>
    %91 = tpu.matmul %89, %88, %cst_61 {dimension_numbers = #tpu.dot_dimension_numbers<[1], [1], [0], [0], [0, 0, 1, 0], [], []>, precision = #tpu.contract_precision<fp32>} : vector<8x24xf32>, vector<256x24xf32>, vector<8x256xf32> -> vector<8x256xf32>
    %92 = vector.broadcast %90 : vector<8x1xf32> to vector<8x256xf32>
    %93 = arith.addf %91, %92 : vector<8x256xf32>
    %c0_62 = arith.constant 0 : index
    %c0_63 = arith.constant 0 : index
    %94 = vector.load %arg6[%c0_62, %c0_63] : memref<8x5xf32, #tpu.memory_space<vmem>>, vector<8x5xf32>
    %c0_64 = arith.constant 0 : index
    %c0_65 = arith.constant 0 : index
    %c0_66 = arith.constant 0 : index
    %95 = vector.load %arg2[%c0_64, %c0_65, %c0_66] : memref<1x5x256xf32, #tpu.memory_space<vmem>>, vector<1x5x256xf32>
    %96 = vector.shape_cast %95 : vector<1x5x256xf32> to vector<5x256xf32>
    %cst_67 = arith.constant dense<0.000000e+00> : vector<8x256xf32>
    %97 = tpu.matmul %94, %96, %cst_67 {dimension_numbers = #tpu.dot_dimension_numbers<[1], [0], [0], [1], [0, 0, 1, 1], [], []>, precision = #tpu.contract_precision<fp32>} : vector<8x5xf32>, vector<5x256xf32>, vector<8x256xf32> -> vector<8x256xf32>
    %98 = arith.addf %93, %97 : vector<8x256xf32>
    %c0_68 = arith.constant 0 : index
    %c0_69 = arith.constant 0 : index
    %c0_70 = arith.constant 0 : index
    %99 = vector.load %arg7[%c0_68, %c0_69, %c0_70] : memref<1x8x256xf32, #tpu.memory_space<vmem>>, vector<1x8x256xf32>
    %100 = vector.shape_cast %99 : vector<1x8x256xf32> to vector<8x256xf32>
    %101 = vector.shape_cast %98 : vector<8x256xf32> to vector<1x8x256xf32>
    tpu.vector_store %arg7[%c0_68, %c0_69, %c0_70], %101 {strides = array<i32>} : memref<1x8x256xf32, #tpu.memory_space<vmem>>, vector<1x8x256xf32>,
    return
  }
  func.func @transform_0(%arg0: i32) -> (i32, i32, i32) {
    %c0_i32 = arith.constant 0 : i32
    %c0_i32_0 = arith.constant 0 : i32
    %c0_i32_1 = arith.constant 0 : i32
    return %arg0, %c0_i32, %c0_i32_0 : i32, i32, i32
  }
  func.func @transform_1(%arg0: i32) -> (i32, i32, i32) {
    %c0_i32 = arith.constant 0 : i32
    %c0_i32_0 = arith.constant 0 : i32
    %c0_i32_1 = arith.constant 0 : i32
    return %arg0, %c0_i32, %c0_i32_0 : i32, i32, i32
  }
  func.func @transform_2(%arg0: i32) -> (i32, i32) {
    %c0_i32 = arith.constant 0 : i32
    %c0_i32_0 = arith.constant 0 : i32
    %c0_i32_1 = arith.constant 0 : i32
    return %c0_i32, %c0_i32_0 : i32, i32
  }
  func.func @transform_3(%arg0: i32) -> (i32, i32) {
    %c0_i32 = arith.constant 0 : i32
    %c0_i32_0 = arith.constant 0 : i32
    %c0_i32_1 = arith.constant 0 : i32
    return %c0_i32, %c0_i32_0 : i32, i32
  }
  func.func @transform_4(%arg0: i32) -> (i32, i32) {
    %c0_i32 = arith.constant 0 : i32
    %c0_i32_0 = arith.constant 0 : i32
    %c0_i32_1 = arith.constant 0 : i32
    return %c0_i32, %c0_i32_0 : i32, i32
  }
  func.func @transform_5(%arg0: i32) -> (i32, i32) {
    %c0_i32 = arith.constant 0 : i32
    %c0_i32_0 = arith.constant 0 : i32
    %c0_i32_1 = arith.constant 0 : i32
    return %c0_i32, %c0_i32_0 : i32, i32
  }
  func.func @transform_6(%arg0: i32) -> (i32, i32, i32) {
    %c0_i32 = arith.constant 0 : i32
    %c0_i32_0 = arith.constant 0 : i32
    %c0_i32_1 = arith.constant 0 : i32
    return %arg0, %c0_i32, %c0_i32_0 : i32, i32, i32
  }
}

</mosaic_0001>

<bundles_post_ra>
// kernel: tpu_custom_call.1
= control target key start
LH: loop header
LB: loop body
LE: loop exit
PB: predicated region body
PF: predicated region fallthrough
CT: control target
= control target key end

     0   :  { %11 = vsyncpa [#allocation4], 0  ;;  %s9946_s0 = inlined_call_operand.vmem [shape: f32[2,432,5], index: 0, kind: input, shape index: {}]   ;;  %s9947_s1 = inlined_call_operand.vmem [shape: f32[2,5,256], index: 1, kind: input, shape index: {}]   ;;  %s9948_s2 = inlined_call_operand.vmem [shape: f32[5,24], index: 2, kind: input, shape index: {}]   ;;  %s9949_s3 = inlined_call_operand.vmem [shape: f32[10,24], index: 3, kind: input, shape index: {}]   ;;  %s9950_s4 = inlined_call_operand.vmem [shape: f32[8,25], index: 4, kind: input, shape index: {}]   ;;  %s9951_s5 = inlined_call_operand.vmem [shape: f32[8,5], index: 5, kind: input, shape index: {}]   ;;  %s9952_s6 = inlined_call_operand.hbm [shape: f32[2,8,256], index: 6, kind: output, shape index: {}]  }
   0x1   :  { %13 = vsyncpa [#allocation4 + $0x1], 0  ;;  %s7073_s21 = smov 0   ;;  %s7075_s22 = smov 0  }
   0x2   :  { %s7077_s23 = smov 0   ;;  %s7079_s24 = smov 0  }
   0x3 LB: > { %s7094_s25 = sadd.s32 4294967295, %s7033_s24   ;;  %s5832_s26 = sadd.s32 4294967294, %s7033_s24   ;;  %s7033_s24 = sphi %s7079_s24, %s10656_s24   ;;  %s7029_s23 = sphi %s7077_s23, %s10655_s23   ;;  %s7025_s22 = sphi %s7075_s22, %s10654_s22   ;;  %s7021_s21 = sphi %s7073_s21, %s10653_s21  }
   0x4   : > { %s7098_s27 = sadd.s32 1, %s7033_s24   ;;  %s162_s28 = sadd.s32 1, %s7029_s23 }
   0x5   : > { %s159_s29 = ssub.s32 %s7033_s24, %s7098_s27  ;;  %p172_p0 = scmp.ne.s32.totalorder %s7029_s23, %s7025_s22 }
   0x6   : > { %p160_p1 = scmp.eq.s32.totalorder %s159_s29, 0  ;;  %p173_p2 = scmp.eq.s32.totalorder %s7094_s25, 1 }
   0x7   : > { %p178_p3 = scmp.ne.s32.totalorder %s7025_s22, %s7021_s21  ;;  %p179_p4 = scmp.eq.s32.totalorder %s5832_s26, 1 }
   0x8   : > { %s7109_s30 = scalar_select %p160_p1, %s7029_s23, %s162_s28  }
   0x9   : > { %p7111_p5 = por %p173_p2, %p172_p0  ;;  %p7115_p6 = por %p179_p4, %p178_p3 }
   0xa   : > { %p5835_p7 = scmp.ge.s32.totalorder %s7033_s24, 1  ;;  %p225_p8 = scmp.lt.s32.totalorder %s7033_s24, 3 }
   0xc   : > { %p226_p9 = pnand %p5835_p7, %p225_p8 }
   0xe   : > { %229 = sbr.rel (%p226_p9) target bundleno = 1089 (0x441), region = 44 }
  0x13   : > { %v324_v0 = vld [vmem:[%s9948_s2] sm:$0x1f]  ;;  %vm488_vm0 = vcmask 1044480   ;;  %p260_p10 = scmp.lt.s32.totalorder %s7094_s25, 1  ;;  %vm325_vm1 = vcmask 39936   ;;  %vm3271_vm2 = vcmask 195584  }
  0x14   : > { %v490_v1 = vsel %vm488_vm0, %v324_v0, 0  ;;  %s5856_s29 = sshll.u32 %s7094_s25, 8 }
  0x15   : > { %v7126_v2 = vand.u32 4294901760, %v490_v1  ;;  %s7129_s11 = scalar_select %p260_p10, %s7094_s25, 1 }
  0x16   : > { %s5759_s14 = scalar_lea.hbm %s9952_s6, %s5856_s29  ;;  %s7037_s25 = smov [#allocation3]  }
  0x17   : > { %6391 = vmatprep.subr.mxu0 %v7126_v2  ;;  %v7133_v3 = vsub.f32 %v490_v1, %v7126_v2  ;;  %s6889_s12 = smul.u32 432, %s7129_s11  ;;  %s5855_s16 = sshll.u32 %s7129_s11, 4 }
  0x18   : > { %6392 = vmatpush3.msra.mxu0 %v7126_v2  ;;  %s269_s19 = scalar_lea.vmem %s9947_s1, %s5855_s16  ;;  %s257_s11 = sand.u32 1, %s7025_s22  }
  0x19   : > { %v7138_v4 = vand.u32 4294901760, %v7133_v3  ;;  %s7143_s15 = scalar_lea.vmem %s9946_s0, %s6889_s12  ;;  %6557 = vmatprep.subr.mxu0 %v7133_v3  ;;  %s5836_s28 = sshll.u32 %s257_s11, 4 }
  0x1a   : > { %v270_v5 = vld [vmem:[%s7143_s15] sm:$0xff]  ;;  %v271_v6 = vld [vmem:[%s7143_s15 + $0x8] sm:$0xff]  ;;  %v272_v7 = vld [vmem:[%s7143_s15 + $0x10] sm:$0xff]  ;;  %s259_s9 = scalar_lea.vmem [#allocation3], %s5836_s28  ;;  %s6977_s17 = sshll.u32 %s7037_s25, 4  ;;  %s6978_s17 = int_to_ptr.vmem [resolvable:$false] %s6977_s17 }
  0x1b   : > { %v1132_v8 = vsub.f32 %v7133_v3, %v7138_v4  ;;  %v327_v9 = vsel %vm325_vm1, %v270_v5, 0  ;;  %v330_v10 = vsel %vm325_vm1, %v271_v6, 0  ;;  %v333_v11 = vsel %vm325_vm1, %v272_v7, 0  ;;  %v273_v12 = vld [vmem:[%s7143_s15 + $0x18] sm:$0xff]  ;;  %v274_v13 = vld [vmem:[%s7143_s15 + $0x20] sm:$0xff]  ;;  %v275_v14 = vld [vmem:[%s7143_s15 + $0x28] sm:$0xff] }
  0x1c   : > { %v7157_v15 = vand.u32 4294901760, %v327_v9  ;;  %v7159_v16 = vand.u32 4294901760, %v330_v10  ;;  %v7161_v17 = vand.u32 4294901760, %v333_v11  ;;  %v336_v18 = vsel %vm325_vm1, %v273_v12, 0  ;;  %v276_v19 = vld [vmem:[%s7143_s15 + $0x30] sm:$0xff]  ;;  %v277_v20 = vld [vmem:[%s7143_s15 + $0x38] sm:$0xff] }
  0x1d   : > { %v1133_v21 = vand.u32 4294901760, %v1132_v8  ;;  %v7166_v22 = vand.u32 4294901760, %v336_v18  ;;  %v339_v23 = vsel %vm325_vm1, %v274_v13, 0  ;;  %v342_v24 = vsel %vm325_vm1, %v275_v14, 0  ;;  %v278_v49 = vld [vmem:[%s7143_s15 + $0x40] sm:$0xff]  ;;  %v279_v50 = vld [vmem:[%s7143_s15 + $0x48] sm:$0xff] }
  0x1e   : > { %10228 = vst [vmem:[#allocation6_spill] sm:$0xff] %v7157_v15  ;;  %10229 = vst [vmem:[#allocation7_spill] sm:$0xff] %v7159_v16  ;;  %v7171_v25 = vsub.f32 %v327_v9, %v7157_v15  ;;  %6476 = vmatprep.mubr.f32.mxu1 %v7157_v15  ;;  %v7175_v26 = vsub.f32 %v330_v10, %v7159_v16  ;;  %v7178_v27 = vsub.f32 %v333_v11, %v7161_v17  ;;  %v280_v51 = vld [vmem:[%s7143_s15 + $0x50] sm:$0xff]  ;;  %v281_v59 = vld [vmem:[%s7143_s15 + $0x58] sm:$0xff]  ;;  %s5761_s10 = sshll.u32 %s259_s9, 4  ;;  %s6979_s18 = scalar_lea.vmem %s6978_s17, 512  ;;  %s5762_s10 = int_to_ptr.vmem [resolvable:$true] %s5761_s10 }
  0x1f   : > { %10230 = vst [vmem:[#allocation8_spill] sm:$0xff] %v7161_v17  ;;  %10231 = vst [vmem:[#allocation9_spill] sm:$0xff] %v7166_v22  ;;  %v7180_v28 = vand.u32 4294901760, %v339_v23  ;;  %6474 = vmatprep.subr.mxu1 %v1133_v21  ;;  %v7183_v29 = vsub.f32 %v336_v18, %v7166_v22  ;;  %v7185_v30 = vand.u32 4294901760, %v342_v24  ;;  %v345_v31 = vsel %vm325_vm1, %v276_v19, 0  ;;  %v282_v60 = vld [vmem:[%s7143_s15 + $0x60] sm:$0xff]  ;;  %p6980_p0 = scmp.lt.s32.totalorder %s5762_s10, %s6978_s17 }
  0x20   : > { %v348_v32 = vsel %vm325_vm1, %v277_v20, 0  ;;  %v9967_v33 = vand.u32 4294901760, %v7171_v25  ;;  %6475 = vmatpush3.msra.mxu1 %v1133_v21  ;;  %v9966_v34 = vand.u32 4294901760, %v7175_v26  ;;  %v9965_v35 = vand.u32 4294901760, %v7178_v27  ;;  %v283_v8 = vld [vmem:[%s7143_s15 + $0x68] sm:$0xff]  ;;  %v284_v13 = vld [vmem:[%s7143_s15 + $0x70] sm:$0xff] }
  0x21   : > { %10232 = vst [vmem:[#allocation10_spill] sm:$0xff] %v7180_v28  ;;  %10233 = vst [vmem:[#allocation11_spill] sm:$0xff] %v7185_v30  ;;  %v7193_v36 = vsub.f32 %v339_v23, %v7180_v28  ;;  %6477 = vmatmul.mubr.f32.vlgmr.msra.gmra.mxu1 %v7159_v16  ;;  %v9964_v37 = vand.u32 4294901760, %v7183_v29  ;;  %v7198_v38 = vsub.f32 %v342_v24, %v7185_v30  ;;  %v7200_v39 = vand.u32 4294901760, %v345_v31  ;;  %s6973_s16 = scalar_lea.vmem %s5762_s10, 256 }
  0x22   : > { %v7202_v40 = vand.u32 4294901760, %v348_v32  ;;  %6640 = vmatprep.subr.mxu1 %v7126_v2  ;;  %v561_v41 = vsub.f32 %v7171_v25, %v9967_v33  ;;  %v571_v42 = vsub.f32 %v7175_v26, %v9966_v34  ;;  %v581_v43 = vsub.f32 %v7178_v27, %v9965_v35  ;;  %6479 = vmatprep.mubr.f32.mxu1 %v7161_v17  ;;  %p6974_p11 = scmp.ne.s32.totalorder %s5762_s10, %s6973_s16  ;;  %p6981_p1 = scmp.lt.s32.totalorder %s6979_s18, %s6973_s16 }
  0x23   : > { %10234 = vst [vmem:[#allocation12_spill] sm:$0xff] %v7200_v39  ;;  %v9963_v44 = vand.u32 4294901760, %v7193_v36  ;;  %6641 = vmatpush3.msra.mxu1 %v7126_v2  ;;  %v591_v45 = vsub.f32 %v7183_v29, %v9964_v37  ;;  %v9960_v46 = vand.u32 4294901760, %v7198_v38  ;;  %v7222_v47 = vsub.f32 %v345_v31, %v7200_v39  ;;  %v285_v31 = vld [vmem:[%s7143_s15 + $0x78] sm:$0xff] }
  0x24   : > { %10235 = vst [vmem:[#allocation13_spill] sm:$0xff] %v7202_v40  ;;  %v7225_v48 = vsub.f32 %v348_v32, %v7202_v40  ;;  %6806 = vmatprep.subr.mxu1 %v7126_v2  ;;  %v562_v52 = vand.u32 4294901760, %v561_v41  ;;  %v572_v53 = vand.u32 4294901760, %v571_v42  ;;  %v582_v54 = vand.u32 4294901760, %v581_v43  ;;  %p6975_p12 = pnand %p6974_p11, %p7111_p5  ;;  %p6982_p2 = por %p6981_p1, %p6980_p0 }
  0x25   : > { %v601_v55 = vsub.f32 %v7193_v36, %v9963_v44  ;;  %6480 = vmatmul.mubr.f32.gmra.mxu1 %v7166_v22  ;;  %v611_v56 = vsub.f32 %v7198_v38, %v9960_v46  ;;  %v9959_v57 = vand.u32 4294901760, %v7222_v47  ;;  %v592_v61 = vand.u32 4294901760, %v591_v45  ;;  %v294_v44 = vld [vmem:[%s7143_s15 + $0xc0] sm:$0xff] }
  0x26   : > { %v9958_v58 = vand.u32 4294901760, %v7225_v48  ;;  %6393 = vmatprep.mubr.f32.mxu0 %v562_v52  ;;  %6482 = vmatprep.mubr.f32.mxu1 %v7180_v28  ;;  %v351_v62 = vsel %vm325_vm1, %v278_v49, 0  ;;  %v354_v63 = vsel %vm325_vm1, %v279_v50, 0  ;;  %v357_v0 = vsel %vm325_vm1, %v280_v51, 0  ;;  %p6976_p13 = pneg %p6975_p12 }
  0x27   : > { %6394 = vmatmul.mubr.f32.vlgmr.msra.gmra.mxu0 %v572_v53  ;;  %v602_v1 = vand.u32 4294901760, %v601_v55  ;;  %v612_v5 = vand.u32 4294901760, %v611_v56  ;;  %v621_v6 = vsub.f32 %v7222_v47, %v9959_v57  ;;  %v7249_v7 = vand.u32 4294901760, %v351_v62 }
  0x28   : > { %6396 = vmatprep.mubr.f32.mxu0 %v582_v54  ;;  %v7252_v9 = vand.u32 4294901760, %v354_v63  ;;  %v7254_v10 = vand.u32 4294901760, %v357_v0  ;;  %v360_v11 = vsel %vm325_vm1, %v281_v59, 0  ;;  %v363_v12 = vsel %vm325_vm1, %v282_v60, 0  ;;  %6558 = vmatpush3.msra.mxu0 %v7133_v3  ;;  %v286_v60 = vld [vmem:[%s7143_s15 + $0x80] sm:$0xff]  ;;  %p6983_p3 = pnand %p6982_p2, %p6976_p13 }
  0x29   : > { %10236 = vst [vmem:[#allocation14_spill] sm:$0xff] %v7249_v7  ;;  %6483 = vmatmul.mubr.f32.gmra.mxu1 %v7185_v30  ;;  %v622_v14 = vand.u32 4294901760, %v621_v6  ;;  %v631_v18 = vsub.f32 %v7225_v48, %v9958_v58  ;;  %v7265_v19 = vsub.f32 %v351_v62, %v7249_v7  ;;  %v7267_v20 = vand.u32 4294901760, %v360_v11  ;;  %6723 = vmatprep.subr.mxu0 %v7138_v4 }
  0x2a   : > { %10237 = vst [vmem:[#allocation15_spill] sm:$0xff] %v7252_v9  ;;  %10238 = vst [vmem:[#allocation16_spill] sm:$0xff] %v7254_v10  ;;  %6485 = vmatprep.mubr.f32.mxu1 %v7200_v39  ;;  %v7272_v21 = vsub.f32 %v354_v63, %v7252_v9  ;;  %v7275_v3 = vsub.f32 %v357_v0, %v7254_v10  ;;  %v7277_v23 = vand.u32 4294901760, %v363_v12  ;;  %v366_v24 = vsel %vm325_vm1, %v283_v8, 0  ;;  %v287_v0 = vld [vmem:[%s7143_s15 + $0x88] sm:$0xff]  ;;  %v288_v8 = vld [vmem:[%s7143_s15 + $0x90] sm:$0xff] }
  0x2b   : > { %10239 = vst [vmem:[#allocation17_spill] sm:$0xff] %v7267_v20  ;;  %6397 = vmatmul.mubr.f32.gmra.mxu0 %v592_v61  ;;  %v9956_v32 = vand.u32 4294901760, %v7265_v19  ;;  %v7283_v41 = vsub.f32 %v360_v11, %v7267_v20  ;;  %v7285_v42 = vand.u32 4294901760, %v366_v24  ;;  %v369_v43 = vsel %vm325_vm1, %v284_v13, 0  ;;  %v289_v13 = vld [vmem:[%s7143_s15 + $0x98] sm:$0xff] }
  0x2c   : > { %10240 = vst [vmem:[#allocation18_spill] sm:$0xff] %v7277_v23  ;;  %6399 = vmatprep.mubr.f32.mxu0 %v602_v1  ;;  %v9955_v45 = vand.u32 4294901760, %v7272_v21  ;;  %v9954_v49 = vand.u32 4294901760, %v7275_v3  ;;  %v7291_v50 = vsub.f32 %v363_v12, %v7277_v23  ;;  %v7293_v51 = vand.u32 4294901760, %v369_v43  ;;  %v305_v39 = vld [vmem:[%s7143_s15 + $0x118] sm:$0xff] }
  0x2d   : > { %10241 = vst [vmem:[#allocation19_spill] sm:$0xff] %v7285_v42  ;;  %6486 = vmatmul.mubr.f32.gmra.mxu1 %v7202_v40  ;;  %v641_v52 = vsub.f32 %v7265_v19, %v9956_v32  ;;  %v9953_v53 = vand.u32 4294901760, %v7283_v41  ;;  %v7301_v54 = vsub.f32 %v366_v24, %v7285_v42  ;;  %v372_v55 = vsel %vm325_vm1, %v285_v31, 0 }
  0x2e   : > { %10242 = vst [vmem:[#allocation20_spill] sm:$0xff] %v7293_v51  ;;  %6488 = vmatprep.mubr.f32.mxu1 %v7249_v7  ;;  %v651_v56 = vsub.f32 %v7272_v21, %v9955_v45  ;;  %v661_v59 = vsub.f32 %v7275_v3, %v9954_v49  ;;  %v632_v61 = vand.u32 4294901760, %v631_v18  ;;  %v7313_v62 = vsub.f32 %v369_v43, %v7293_v51  ;;  %v290_v43 = vld [vmem:[%s7143_s15 + $0xa0] sm:$0xff]  ;;  %v291_v45 = vld [vmem:[%s7143_s15 + $0xa8] sm:$0xff] }
  0x2f   : > { %6400 = vmatmul.mubr.f32.gmra.mxu0 %v612_v5  ;;  %v7315_v63 = vand.u32 4294901760, %v372_v55  ;;  %v642_v1 = vand.u32 4294901760, %v641_v52  ;;  %v9957_v6 = vand.u32 4294901760, %v7291_v50  ;;  %v671_v11 = vsub.f32 %v7283_v41, %v9953_v53 }
  0x30   : > { %6402 = vmatprep.mubr.f32.mxu0 %v622_v14  ;;  %v9961_v5 = vand.u32 4294901760, %v7301_v54  ;;  %v375_v12 = vsel %vm325_vm1, %v286_v60, 0  ;;  %v652_v18 = vand.u32 4294901760, %v651_v56  ;;  %v662_v24 = vand.u32 4294901760, %v661_v59 }
  0x31   : > { %10243 = vst [vmem:[#allocation21_spill] sm:$0xff] %v7315_v63  ;;  %6489 = vmatmul.mubr.f32.gmra.mxu1 %v7252_v9  ;;  %v7328_v14 = vand.u32 4294901760, %v375_v12  ;;  %v378_v31 = vsel %vm325_vm1, %v287_v0, 0  ;;  %v9962_v52 = vand.u32 4294901760, %v7313_v62  ;;  %v7334_v53 = vsub.f32 %v372_v55, %v7315_v63  ;;  %v302_v9 = vld [vmem:[%s7143_s15 + $0x100] sm:$0xff] }
  0x32   : > { %6491 = vmatprep.mubr.f32.mxu1 %v7254_v10  ;;  %v7336_v49 = vand.u32 4294901760, %v378_v31  ;;  %v381_v56 = vsel %vm325_vm1, %v288_v8, 0  ;;  %v681_v59 = vsub.f32 %v7291_v50, %v9957_v6  ;;  %v387_v32 = vsel %vm325_vm1, %v290_v43, 0  ;;  %v292_v8 = vld [vmem:[%s7143_s15 + $0xb0] sm:$0xff] }
  0x33   : > { %10244 = vst [vmem:[#allocation22_spill] sm:$0xff] %v7328_v14  ;;  %6403 = vmatmul.mubr.f32.gmra.mxu0 %v632_v61  ;;  %v7343_v60 = vsub.f32 %v375_v12, %v7328_v14  ;;  %v7345_v0 = vand.u32 4294901760, %v381_v56  ;;  %v384_v61 = vsel %vm325_vm1, %v289_v13, 0  ;;  %v691_v12 = vsub.f32 %v7301_v54, %v9961_v5 }
  0x34   : > { %10245 = vst [vmem:[#allocation23_spill] sm:$0xff] %v7336_v49  ;;  %6405 = vmatprep.mubr.f32.mxu0 %v642_v1  ;;  %v7350_v55 = vand.u32 4294901760, %v384_v61  ;;  %v672_v1 = vand.u32 4294901760, %v671_v11  ;;  %v7359_v6 = vsub.f32 %v378_v31, %v7336_v49  ;;  %v701_v13 = vsub.f32 %v7313_v62, %v9962_v52  ;;  %v293_v52 = vld [vmem:[%s7143_s15 + $0xb8] sm:$0xff] }
  0x35   : > { %10246 = vst [vmem:[#allocation24_spill] sm:$0xff] %v7345_v0  ;;  %6492 = vmatmul.mubr.f32.gmra.mxu1 %v7267_v20  ;;  %v9968_v43 = vand.u32 4294901760, %v7334_v53  ;;  %v9969_v11 = vand.u32 4294901760, %v7343_v60  ;;  %v390_v58 = vsel %vm325_vm1, %v291_v45, 0  ;;  %v682_v57 = vand.u32 4294901760, %v681_v59 }
  0x36   : > { %10247 = vst [vmem:[#allocation25_spill] sm:$0xff] %v7350_v55  ;;  %6494 = vmatprep.mubr.f32.mxu1 %v7277_v23  ;;  %v7368_v46 = vsub.f32 %v381_v56, %v7345_v0  ;;  %v7370_v5 = vand.u32 4294901760, %v387_v32  ;;  %v393_v31 = vsel %vm325_vm1, %v292_v8, 0  ;;  %v9974_v45 = vand.u32 4294901760, %v7359_v6 }
  0x37   : > { %6406 = vmatmul.mubr.f32.gmra.mxu0 %v652_v18  ;;  %v7375_v18 = vsub.f32 %v384_v61, %v7350_v55  ;;  %v7383_v56 = vand.u32 4294901760, %v393_v31  ;;  %v692_v59 = vand.u32 4294901760, %v691_v12  ;;  %v702_v8 = vand.u32 4294901760, %v701_v13  ;;  %v295_v12 = vld [vmem:[%s7143_s15 + $0xc8] sm:$0xff] }
  0x38   : > { %6408 = vmatprep.mubr.f32.mxu0 %v662_v24  ;;  %10248 = vst [vmem:[#allocation26_spill] sm:$0xff] %v7370_v5  ;;  %v7381_v24 = vand.u32 4294901760, %v390_v58  ;;  %v711_v61 = vsub.f32 %v7334_v53, %v9968_v43  ;;  %v721_v37 = vsub.f32 %v7343_v60, %v9969_v11  ;;  %v7393_v34 = vsub.f32 %v387_v32, %v7370_v5  ;;  %v296_v43 = vld [vmem:[%s7143_s15 + $0xd0] sm:$0xff] }
  0x39   : > { %6495 = vmatmul.mubr.f32.gmra.mxu1 %v7285_v42  ;;  %10250 = vst [vmem:[#allocation28_spill] sm:$0xff] %v7383_v56  ;;  %v396_v33 = vsel %vm325_vm1, %v293_v52, 0  ;;  %v7409_v52 = vsub.f32 %v393_v31, %v7383_v56  ;;  %v402_v35 = vsel %vm325_vm1, %v295_v12, 0  ;;  %v405_v31 = vsel %vm325_vm1, %v296_v43, 0  ;;  %v298_v12 = vld [vmem:[%s7143_s15 + $0xe0] sm:$0xff] }
  0x3a   : > { %6497 = vmatprep.mubr.f32.mxu1 %v7293_v51  ;;  %10249 = vst [vmem:[#allocation27_spill] sm:$0xff] %v7381_v24  ;;  %v7406_v32 = vsub.f32 %v390_v58, %v7381_v24  ;;  %v7411_v11 = vand.u32 4294901760, %v396_v33  ;;  %v297_v51 = vld [vmem:[%s7143_s15 + $0xd8] sm:$0xff] }
  0x3b   : > { %6409 = vmatmul.mubr.f32.gmra.mxu0 %v672_v1  ;;  %v399_v1 = vsel %vm325_vm1, %v294_v44, 0  ;;  %v712_v44 = vand.u32 4294901760, %v711_v61 }
  0x3c   : > { %6411 = vmatprep.mubr.f32.mxu0 %v682_v57  ;;  %v731_v57 = vsub.f32 %v7359_v6, %v9974_v45  ;;  %10251 = vst [vmem:[#allocation29_spill] sm:$0xff] %v7411_v11  ;;  %v7413_v13 = vand.u32 4294901760, %v399_v1  ;;  %v7433_v43 = vsub.f32 %v396_v33, %v7411_v11  ;;  %v411_v33 = vsel %vm325_vm1, %v298_v12, 0 }
  0x3d   : > { %6498 = vmatmul.mubr.f32.gmra.mxu1 %v7315_v63  ;;  %v10253_v63 = vand.u32 4294901760, %v7368_v46  ;;  %v7466_v10 = vand.u32 4294901760, %v411_v33 }
  0x3e   : > { %6500 = vmatprep.mubr.f32.mxu1 %v7328_v14  ;;  %10252 = vst [vmem:[#allocation30_spill] sm:$0xff] %v7413_v13  ;;  %v722_v14 = vand.u32 4294901760, %v721_v37  ;;  %v732_v42 = vand.u32 4294901760, %v731_v57  ;;  %v7436_v58 = vsub.f32 %v399_v1, %v7413_v13  ;;  %v408_v57 = vsel %vm325_vm1, %v297_v51, 0 }
  0x3f   : > { %6412 = vmatmul.mubr.f32.gmra.mxu0 %v692_v59  ;;  %v741_v45 = vsub.f32 %v7368_v46, %v10253_v63  ;;  %v10254_v59 = vand.u32 4294901760, %v7375_v18  ;;  %v7429_v63 = vand.u32 4294901760, %v402_v35  ;;  %v10257_v37 = vand.u32 4294901760, %v7393_v34  ;;  %10261 = vst [vmem:[#allocation34_spill] sm:$0xff] %v7466_v10 }
  0x40   : > { %6414 = vmatprep.mubr.f32.mxu0 %v702_v8  ;;  %v10258_v1 = vand.u32 4294901760, %v7406_v32  ;;  %v10259_v51 = vand.u32 4294901760, %v7409_v52  ;;  %v9999_v12 = vand.u32 4294901760, %v7433_v43 }
  0x41   : > { %6501 = vmatmul.mubr.f32.gmra.mxu1 %v7336_v49  ;;  %v751_v61 = vsub.f32 %v7375_v18, %v10254_v59  ;;  %10255 = vst [vmem:[#allocation31_spill] sm:$0xff] %v7429_v63  ;;  %v7438_v49 = vand.u32 4294901760, %v405_v31  ;;  %v742_v59 = vand.u32 4294901760, %v741_v45  ;;  %v761_v8 = vsub.f32 %v7393_v34, %v10257_v37  ;;  %v300_v37 = vld [vmem:[%s7143_s15 + $0xf0] sm:$0xff] }
  0x42   : > { %6503 = vmatprep.mubr.f32.mxu1 %v7345_v0  ;;  %v299_v0 = vld [vmem:[%s7143_s15 + $0xe8] sm:$0xff]  ;;  %v7455_v45 = vsub.f32 %v402_v35, %v7429_v63  ;;  %v417_v35 = vsel %vm325_vm1, %v300_v37, 0  ;;  %v10263_v37 = vand.u32 4294901760, %v7436_v58 }
  0x43   : > { %6415 = vmatmul.mubr.f32.gmra.mxu0 %v712_v44  ;;  %10256 = vst [vmem:[#allocation32_spill] sm:$0xff] %v7438_v49  ;;  %v752_v23 = vand.u32 4294901760, %v751_v61  ;;  %v771_v44 = vsub.f32 %v7406_v32, %v10258_v1  ;;  %v7457_v61 = vand.u32 4294901760, %v408_v57  ;;  %v414_v1 = vsel %vm325_vm1, %v299_v0, 0 }
  0x44   : > { %6417 = vmatprep.mubr.f32.mxu0 %v722_v14  ;;  %v781_v14 = vsub.f32 %v7409_v52, %v10259_v51  ;;  %v762_v20 = vand.u32 4294901760, %v761_v8  ;;  %v301_v51 = vld [vmem:[%s7143_s15 + $0xf8] sm:$0xff]  ;;  %v7477_v0 = vand.u32 4294901760, %v414_v1 }
  0x45   : > { %6504 = vmatmul.mubr.f32.gmra.mxu1 %v7350_v55  ;;  %10260 = vst [vmem:[#allocation33_spill] sm:$0xff] %v7457_v61  ;;  %v7463_v55 = vsub.f32 %v405_v31, %v7438_v49  ;;  %v7475_v31 = vsub.f32 %v408_v57, %v7457_v61  ;;  %v7489_v57 = vand.u32 4294901760, %v417_v35 }
  0x46   : > { %6506 = vmatprep.mubr.f32.mxu1 %v7370_v5  ;;  %10262 = vst [vmem:[#allocation35_spill] sm:$0xff] %v7477_v0  ;;  %v782_v8 = vand.u32 4294901760, %v781_v14  ;;  %v7487_v5 = vsub.f32 %v411_v33, %v7466_v10  ;;  %v423_v14 = vsel %vm325_vm1, %v302_v9, 0 }
  0x47   : > { %6418 = vmatmul.mubr.f32.gmra.mxu0 %v732_v42  ;;  %v772_v42 = vand.u32 4294901760, %v771_v44  ;;  %v801_v44 = vsub.f32 %v7436_v58, %v10263_v37  ;;  %10264 = vst [vmem:[#allocation36_spill] sm:$0xff] %v7489_v57  ;;  %v10265_v37 = vand.u32 4294901760, %v7455_v45  ;;  %v7506_v7 = vand.u32 4294901760, %v423_v14 }
  0x48   : > { %6420 = vmatprep.mubr.f32.mxu0 %v742_v59  ;;  %v791_v59 = vsub.f32 %v7433_v43, %v9999_v12  ;;  %v7501_v12 = vsub.f32 %v414_v1, %v7477_v0  ;;  %v10268_v40 = vand.u32 4294901760, %v7463_v55  ;;  %v7514_v1 = vsub.f32 %v417_v35, %v7489_v57 }
  0x49   : > { %6507 = vmatmul.mubr.f32.gmra.mxu1 %v7381_v24  ;;  %v303_v24 = vld [vmem:[%s7143_s15 + $0x108] sm:$0xff]  ;;  %10267 = vst [vmem:[#allocation38_spill] sm:$0xff] %v7506_v7  ;;  %v7531_v33 = vsub.f32 %v423_v14, %v7506_v7 }
  0x4a   : > { %6509 = vmatprep.mubr.f32.mxu1 %v7383_v56  ;;  %v304_v56 = vld [vmem:[%s7143_s15 + $0x110] sm:$0xff] }
  0x4b   : > { %6421 = vmatmul.mubr.f32.gmra.mxu0 %v752_v23  ;;  %v420_v23 = vsel %vm325_vm1, %v301_v51, 0  ;;  %v792_v51 = vand.u32 4294901760, %v791_v59  ;;  %v429_v59 = vsel %vm325_vm1, %v304_v56, 0  ;;  %10272 = vst [vmem:[#allocation41_spill] sm:$0xff] %v7531_v33  ;;  %v432_v56 = vsel %vm325_vm1, %v305_v39, 0 }
  0x4c   : > { %6423 = vmatprep.mubr.f32.mxu0 %v762_v20  ;;  %v811_v20 = vsub.f32 %v7455_v45, %v10265_v37  ;;  %v7504_v9 = vand.u32 4294901760, %v420_v23  ;;  %v821_v37 = vsub.f32 %v7463_v55, %v10268_v40 }
  0x4d   : > { %6510 = vmatmul.mubr.f32.gmra.mxu1 %v7411_v11  ;;  %v426_v11 = vsel %vm325_vm1, %v303_v24, 0  ;;  %v10269_v24 = vand.u32 4294901760, %v7475_v31 }
  0x4e   : > { %6512 = vmatprep.mubr.f32.mxu1 %v7413_v13  ;;  %10266 = vst [vmem:[#allocation37_spill] sm:$0xff] %v7504_v9  ;;  %v802_v13 = vand.u32 4294901760, %v801_v44  ;;  %v812_v30 = vand.u32 4294901760, %v811_v20  ;;  %v7525_v44 = vand.u32 4294901760, %v426_v11  ;;  %v7528_v35 = vsub.f32 %v420_v23, %v7504_v9  ;;  %v307_v23 = vld [vmem:[%s7143_s15 + $0x128] sm:$0xff] }
  0x4f   : > { %6424 = vmatmul.mubr.f32.gmra.mxu0 %v772_v42  ;;  %v306_v42 = vld [vmem:[%s7143_s15 + $0x120] sm:$0xff] }
  0x50   : > { %6426 = vmatprep.mubr.f32.mxu0 %v782_v8  ;;  %v831_v8 = vsub.f32 %v7475_v31, %v10269_v24  ;;  %10270 = vst [vmem:[#allocation39_spill] sm:$0xff] %v7525_v44  ;;  %10271 = vst [vmem:[#allocation40_spill] sm:$0xff] %v7528_v35  ;;  %v435_v20 = vsel %vm325_vm1, %v306_v42, 0  ;;  %v10273_v24 = vand.u32 4294901760, %v7487_v5  ;;  %v7545_v39 = vsub.f32 %v426_v11, %v7525_v44 }
  0x51   : > { %6513 = vmatmul.mubr.f32.gmra.mxu1 %v7429_v63  ;;  %v7549_v14 = vand.u32 4294901760, %v435_v20  ;;  %v10278_v42 = vand.u32 4294901760, %v7501_v12  ;;  %v10032_v63 = vand.u32 4294901760, %v7528_v35 }
  0x52   : > { %6515 = vmatprep.mubr.f32.mxu1 %v7438_v49  ;;  %v822_v49 = vand.u32 4294901760, %v821_v37  ;;  %v841_v40 = vsub.f32 %v7487_v5, %v10273_v24  ;;  %v832_v28 = vand.u32 4294901760, %v831_v8  ;;  %10275 = vst [vmem:[#allocation43_spill] sm:$0xff] %v7545_v39  ;;  %v308_v37 = vld [vmem:[%s7143_s15 + $0x130] sm:$0xff] }
  0x53   : > { %6427 = vmatmul.mubr.f32.gmra.mxu0 %v792_v51  ;;  %v7539_v51 = vand.u32 4294901760, %v429_v59  ;;  %10277 = vst [vmem:[#allocation45_spill] sm:$0xff] %v7549_v14  ;;  %v851_v24 = vsub.f32 %v7501_v12, %v10278_v42  ;;  %v309_v42 = vld [vmem:[%s7143_s15 + $0x138] sm:$0xff] }
  0x54   : > { %6429 = vmatprep.mubr.f32.mxu0 %v802_v13  ;;  %v7547_v13 = vand.u32 4294901760, %v432_v56  ;;  %v842_v11 = vand.u32 4294901760, %v841_v40  ;;  %v7573_v40 = vsub.f32 %v435_v20, %v7549_v14  ;;  %v444_v16 = vsel %vm325_vm1, %v309_v42, 0  ;;  %v312_v42 = vld [vmem:[%s7143_s15 + $0x150] sm:$0xff] }
  0x55   : > { %10274 = vst [vmem:[#allocation42_spill] sm:$0xff] %v7539_v51  ;;  %6516 = vmatmul.mubr.f32.gmra.mxu1 %v7457_v61  ;;  %v10279_v61 = vand.u32 4294901760, %v7514_v1  ;;  %v7562_v17 = vsub.f32 %v429_v59, %v7539_v51  ;;  %v310_v59 = vld [vmem:[%s7143_s15 + $0x140] sm:$0xff]  ;;  %v7601_v15 = vand.u32 4294901760, %v444_v16 }
  0x56   : > { %6518 = vmatprep.mubr.f32.mxu1 %v7466_v10  ;;  %10276 = vst [vmem:[#allocation44_spill] sm:$0xff] %v7547_v13  ;;  %v438_v10 = vsel %vm325_vm1, %v307_v23, 0  ;;  %10282 = vst [vmem:[#allocation48_spill] sm:$0xff] %v7573_v40  ;;  %v852_v23 = vand.u32 4294901760, %v851_v24  ;;  %v311_v24 = vld [vmem:[%s7143_s15 + $0x148] sm:$0xff] }
  0x57   : > { %6430 = vmatmul.mubr.f32.gmra.mxu0 %v812_v30  ;;  %v861_v22 = vsub.f32 %v7514_v1, %v10279_v61  ;;  %10280 = vst [vmem:[#allocation46_spill] sm:$0xff] %v7562_v17  ;;  %v441_v30 = vsel %vm325_vm1, %v308_v37, 0  ;;  %v7575_v61 = vand.u32 4294901760, %v438_v10  ;;  %v871_v37 = vsub.f32 %v7528_v35, %v10032_v63  ;;  %10288 = vst [vmem:[#allocation52_spill] sm:$0xff] %v7601_v15 }
  0x58   : > { %6432 = vmatprep.mubr.f32.mxu0 %v822_v49  ;;  %v7570_v49 = vsub.f32 %v432_v56, %v7547_v13  ;;  %v7585_v20 = vand.u32 4294901760, %v441_v30  ;;  %v10286_v63 = vand.u32 4294901760, %v7545_v39 }
  0x59   : > { %6519 = vmatmul.mubr.f32.gmra.mxu1 %v7477_v0  ;;  %10283 = vst [vmem:[#allocation49_spill] sm:$0xff] %v7575_v61  ;;  %v862_v56 = vand.u32 4294901760, %v861_v22  ;;  %v7598_v0 = vsub.f32 %v438_v10, %v7575_v61  ;;  %v313_v10 = vld [vmem:[%s7143_s15 + $0x158] sm:$0xff] }
  0x5a   : > { %6521 = vmatprep.mubr.f32.mxu1 %v7489_v57  ;;  %10281 = vst [vmem:[#allocation47_spill] sm:$0xff] %v7570_v49  ;;  %v10284_v57 = vand.u32 4294901760, %v7531_v33  ;;  %10285 = vst [vmem:[#allocation50_spill] sm:$0xff] %v7585_v20 }
  0x5b   : > { %6433 = vmatmul.mubr.f32.gmra.mxu0 %v832_v28  ;;  %v447_v28 = vsel %vm325_vm1, %v310_v59, 0  ;;  %10287 = vst [vmem:[#allocation51_spill] sm:$0xff] %v7598_v0 }
  0x5c   : > { %v881_v8 = vsub.f32 %v7531_v33, %v10284_v57  ;;  %6435 = vmatprep.mubr.f32.mxu0 %v842_v11  ;;  %v891_v57 = vsub.f32 %v7545_v39, %v10286_v63  ;;  %v7607_v63 = vsub.f32 %v441_v30, %v7585_v20  ;;  %v7609_v22 = vand.u32 4294901760, %v447_v28  ;;  %v314_v39 = vld [vmem:[%s7143_s15 + $0x160] sm:$0xff] }
  0x5d   : > { %6522 = vmatmul.mubr.f32.gmra.mxu1 %v7504_v9  ;;  %v872_v9 = vand.u32 4294901760, %v871_v37  ;;  %v450_v11 = vsel %vm325_vm1, %v311_v24, 0  ;;  %v10292_v37 = vand.u32 4294901760, %v7570_v49  ;;  %v10293_v30 = vand.u32 4294901760, %v7573_v40  ;;  %v315_v24 = vld [vmem:[%s7143_s15 + $0x168] sm:$0xff] }
  0x5e   : > { %6524 = vmatprep.mubr.f32.mxu1 %v7506_v7  ;;  %v882_v59 = vand.u32 4294901760, %v881_v8  ;;  %v10289_v7 = vand.u32 4294901760, %v7562_v17  ;;  %10290 = vst [vmem:[#allocation53_spill] sm:$0xff] %v7607_v63  ;;  %10291 = vst [vmem:[#allocation54_spill] sm:$0xff] %v7609_v22  ;;  %v453_v8 = vsel %vm325_vm1, %v312_v42, 0  ;;  %v7627_v42 = vand.u32 4294901760, %v450_v11 }
  0x5f   : > { %6436 = vmatmul.mubr.f32.gmra.mxu0 %v852_v23  ;;  %v892_v23 = vand.u32 4294901760, %v891_v57  ;;  %v456_v57 = vsel %vm325_vm1, %v313_v10, 0 }
  0x60   : > { %6438 = vmatprep.mubr.f32.mxu0 %v862_v56  ;;  %v901_v33 = vsub.f32 %v7562_v17, %v10289_v7  ;;  %v911_v7 = vsub.f32 %v7570_v49, %v10292_v37  ;;  %v921_v56 = vsub.f32 %v7573_v40, %v10293_v30  ;;  %10294 = vst [vmem:[#allocation55_spill] sm:$0xff] %v7627_v42  ;;  %v7635_v30 = vand.u32 4294901760, %v453_v8 }
  0x61   : > { %6525 = vmatmul.mubr.f32.gmra.mxu1 %v7525_v44  ;;  %v7625_v44 = vsub.f32 %v444_v16, %v7601_v15  ;;  %v7633_v49 = vsub.f32 %v447_v28, %v7609_v22  ;;  %v316_v16 = vld [vmem:[%s7143_s15 + $0x170] sm:$0xff]  ;;  %v7641_v10 = vand.u32 4294901760, %v456_v57  ;;  %v7650_v37 = vsub.f32 %v450_v11, %v7627_v42 }
  0x62   : > { %6527 = vmatprep.mubr.f32.mxu1 %v7539_v51  ;;  %v459_v51 = vsel %vm325_vm1, %v314_v39, 0  ;;  %v902_v17 = vand.u32 4294901760, %v901_v33  ;;  %10296 = vst [vmem:[#allocation57_spill] sm:$0xff] %v7635_v30  ;;  %v922_v40 = vand.u32 4294901760, %v921_v56  ;;  %v10299_v33 = vand.u32 4294901760, %v7598_v0 }
  0x63   : > { %6439 = vmatmul.mubr.f32.gmra.mxu0 %v872_v9  ;;  %10295 = vst [vmem:[#allocation56_spill] sm:$0xff] %v7633_v49  ;;  %v912_v9 = vand.u32 4294901760, %v911_v7  ;;  %10297 = vst [vmem:[#allocation58_spill] sm:$0xff] %v7641_v10  ;;  %v7643_v39 = vand.u32 4294901760, %v459_v51  ;;  %v462_v7 = vsel %vm325_vm1, %v315_v24, 0  ;;  %v10301_v56 = vand.u32 4294901760, %v7607_v63 }
  0x64   : > { %6441 = vmatprep.mubr.f32.mxu0 %v882_v59  ;;  %v931_v28 = vsub.f32 %v7598_v0, %v10299_v33  ;;  %v10067_v59 = vand.u32 4294901760, %v7625_v44  ;;  %10300 = vst [vmem:[#allocation60_spill] sm:$0xff] %v7650_v37  ;;  %v465_v35 = vsel %vm325_vm1, %v316_v16, 0  ;;  %v317_v33 = vld [vmem:[%s7143_s15 + $0x178] sm:$0xff]  ;;  %v7665_v11 = vsub.f32 %v456_v57, %v7641_v10  ;;  %v319_v0 = vld [vmem:[%s7143_s15 + $0x188] sm:$0xff] }
  0x65   : > { %6528 = vmatmul.mubr.f32.gmra.mxu1 %v7547_v13  ;;  %10298 = vst [vmem:[#allocation59_spill] sm:$0xff] %v7643_v39  ;;  %v7670_v24 = vand.u32 4294901760, %v462_v7  ;;  %v10072_v13 = vand.u32 4294901760, %v7650_v37 }
  0x66   : > { %6530 = vmatprep.mubr.f32.mxu1 %v7549_v14  ;;  %v941_v14 = vsub.f32 %v7607_v63, %v10301_v56  ;;  %10303 = vst [vmem:[#allocation62_spill] sm:$0xff] %v7665_v11  ;;  %v318_v56 = vld [vmem:[%s7143_s15 + $0x180] sm:$0xff]  ;;  %v951_v16 = vsub.f32 %v7625_v44, %v10067_v59 }
  0x67   : > { %6442 = vmatmul.mubr.f32.gmra.mxu0 %v892_v23  ;;  %v7658_v23 = vsub.f32 %v453_v8, %v7635_v30  ;;  %v932_v8 = vand.u32 4294901760, %v931_v28  ;;  %v471_v28 = vsel %vm325_vm1, %v318_v56, 0 }
  0x68   : > { %6444 = vmatprep.mubr.f32.mxu0 %v902_v17  ;;  %v7668_v17 = vsub.f32 %v459_v51, %v7643_v39  ;;  %v942_v57 = vand.u32 4294901760, %v941_v14  ;;  %v952_v63 = vand.u32 4294901760, %v951_v16 }
  0x69   : > { %10302 = vst [vmem:[#allocation61_spill] sm:$0xff] %v7658_v23  ;;  %6531 = vmatmul.mubr.f32.gmra.mxu1 %v7575_v61  ;;  %v10305_v61 = vand.u32 4294901760, %v7633_v49  ;;  %v10307_v14 = vand.u32 4294901760, %v7658_v23 }
  0x6a   : > { %6533 = vmatprep.mubr.f32.mxu1 %v7585_v20  ;;  %v7677_v20 = vand.u32 4294901760, %v465_v35 }
  0x6b   : > { %6445 = vmatmul.mubr.f32.gmra.mxu0 %v912_v9  ;;  %v961_v51 = vsub.f32 %v7633_v49, %v10305_v61  ;;  %v468_v9 = vsel %vm325_vm1, %v317_v33, 0  ;;  %v320_v61 = vld [vmem:[%s7143_s15 + $0x190] sm:$0xff]  ;;  %v971_v33 = vsub.f32 %v7650_v37, %v10072_v13  ;;  %v321_v13 = vld [vmem:[%s7143_s15 + $0x198] sm:$0xff]  ;;  %v322_v37 = vld [vmem:[%s7143_s15 + $0x1a0] sm:$0xff] }
  0x6c   : > { %10304 = vst [vmem:[#allocation63_spill] sm:$0xff] %v7677_v20  ;;  %6447 = vmatprep.mubr.f32.mxu0 %v922_v40  ;;  %v7691_v40 = vsub.f32 %v462_v7, %v7670_v24  ;;  %v7698_v56 = vsub.f32 %v465_v35, %v7677_v20  ;;  %v981_v7 = vsub.f32 %v7658_v23, %v10307_v14  ;;  %v477_v16 = vsel %vm325_vm1, %v320_v61, 0 }
  0x6d   : > { %6534 = vmatmul.mubr.f32.gmra.mxu1 %v7601_v15  ;;  %v962_v59 = vand.u32 4294901760, %v961_v51  ;;  %v7705_v15 = vand.u32 4294901760, %v471_v28  ;;  %v10308_v35 = vand.u32 4294901760, %v7665_v11  ;;  %v10309_v51 = vand.u32 4294901760, %v7668_v17 }
  0x6e   : > { %6536 = vmatprep.mubr.f32.mxu1 %v7609_v22  ;;  %v7700_v22 = vand.u32 4294901760, %v468_v9  ;;  %v982_v49 = vand.u32 4294901760, %v981_v7 }
  0x6f   : > { %6448 = vmatmul.mubr.f32.gmra.mxu0 %v932_v8  ;;  %v474_v8 = vsel %vm325_vm1, %v319_v0, 0  ;;  %v1001_v14 = vsub.f32 %v7668_v17, %v10309_v51  ;;  %v972_v0 = vand.u32 4294901760, %v971_v33  ;;  %v480_v51 = vsel %vm325_vm1, %v321_v13, 0  ;;  %v323_v33 = vld [vmem:[%s7143_s15 + $0x1a8] sm:$0xff]  ;;  %s5747_s15 = scalar_lea.sflag [#allocation4], %s257_s11 }
  0x70   : > { %10306 = vst [vmem:[#allocation64_spill] sm:$0xff] %v7700_v22  ;;  %6450 = vmatprep.mubr.f32.mxu0 %v942_v57  ;;  %v991_v57 = vsub.f32 %v7665_v11, %v10308_v35  ;;  %v7722_v61 = vsub.f32 %v468_v9, %v7700_v22  ;;  %v7727_v35 = vsub.f32 %v471_v28, %v7705_v15  ;;  %v7729_v11 = vand.u32 4294901760, %v477_v16 }
  0x71   : > { %6537 = vmatmul.mubr.f32.gmra.mxu1 %v7627_v42  ;;  %v1002_v23 = vand.u32 4294901760, %v1001_v14  ;;  %v10310_v9 = vand.u32 4294901760, %v7691_v40  ;;  %v10311_v28 = vand.u32 4294901760, %v7698_v56 }
  0x72   : > { %6539 = vmatprep.mubr.f32.mxu1 %v7635_v30  ;;  %v7724_v30 = vand.u32 4294901760, %v474_v8  ;;  %v992_v42 = vand.u32 4294901760, %v991_v57  ;;  %v10091_v13 = vand.u32 4294901760, %v7722_v61  ;;  %v7750_v14 = vsub.f32 %v477_v16, %v7729_v11 }
  0x73   : > { %6451 = vmatmul.mubr.f32.gmra.mxu0 %v952_v63  ;;  %v483_v63 = vsel %vm325_vm1, %v322_v37, 0  ;;  %v1021_v7 = vsub.f32 %v7698_v56, %v10311_v28  ;;  %v7746_v37 = vand.u32 4294901760, %v480_v51 }
  0x74   : > { %6453 = vmatprep.mubr.f32.mxu0 %v962_v59  ;;  %v1011_v59 = vsub.f32 %v7691_v40, %v10310_v9 }
  0x75   : > { %6540 = vmatmul.mubr.f32.gmra.mxu1 %v7641_v10  ;;  %v7744_v10 = vsub.f32 %v474_v8, %v7724_v30  ;;  %v1031_v8 = vsub.f32 %v7722_v61, %v10091_v13  ;;  %v7762_v28 = vsub.f32 %v480_v51, %v7746_v37  ;;  %v1022_v57 = vand.u32 4294901760, %v1021_v7 }
  0x76   : > { %6542 = vmatprep.mubr.f32.mxu1 %v7643_v39  ;;  %v7752_v39 = vand.u32 4294901760, %v483_v63  ;;  %v1012_v9 = vand.u32 4294901760, %v1011_v59 }
  0x77   : > { %6454 = vmatmul.mubr.f32.gmra.mxu0 %v972_v0  ;;  %v486_v0 = vsel %vm325_vm1, %v323_v33, 0  ;;  %v10312_v33 = vand.u32 4294901760, %v7727_v35  ;;  %v1032_v51 = vand.u32 4294901760, %v1031_v8  ;;  %v1070_v7 = vand.u32 4294901760, %v7762_v28 }
  0x78   : > { %6456 = vmatprep.mubr.f32.mxu0 %v982_v49  ;;  %v1050_v49 = vand.u32 4294901760, %v7744_v10  ;;  %v7764_v16 = vand.u32 4294901760, %v486_v0 }
  0x79   : > { %6543 = vmatmul.mubr.f32.gmra.mxu1 %v7670_v24  ;;  %v1041_v59 = vsub.f32 %v7727_v35, %v10312_v33  ;;  %v1071_v8 = vsub.f32 %v7762_v28, %v1070_v7 }
  0x7a   : > { %6545 = vmatprep.mubr.f32.mxu1 %v7677_v20  ;;  %v10094_v20 = vand.u32 4294901760, %v7750_v14  ;;  %v7780_v13 = vsub.f32 %v486_v0, %v7764_v16 }
  0x7b   : > { %6457 = vmatmul.mubr.f32.gmra.mxu0 %v992_v42  ;;  %v7771_v42 = vsub.f32 %v483_v63, %v7752_v39  ;;  %v1042_v33 = vand.u32 4294901760, %v1041_v59 }
  0x7c   : > { %6459 = vmatprep.mubr.f32.mxu0 %v1002_v23  ;;  %v1051_v23 = vsub.f32 %v7744_v10, %v1050_v49  ;;  %v1061_v63 = vsub.f32 %v7750_v14, %v10094_v20  ;;  %v1090_v0 = vand.u32 4294901760, %v7780_v13  ;;  %v1072_v20 = vand.u32 4294901760, %v1071_v8 }
  0x7d   : > { %6546 = vmatmul.mubr.f32.gmra.mxu1 %v7700_v22  ;;  %v10095_v22 = vand.u32 4294901760, %v7771_v42  ;;  %v10316_v8 = vand.u32 4294901760, %v7183_v29 }
  0x7e   : > { %6548 = vmatprep.mubr.f32.mxu1 %v7705_v15 }
  0x7f   : > { %6460 = vmatmul.mubr.f32.gmra.mxu0 %v1012_v9  ;;  %v1052_v9 = vand.u32 4294901760, %v1051_v23  ;;  %v1081_v59 = vsub.f32 %v7771_v42, %v10095_v22  ;;  %v10314_v22 = vand.u32 4294901760, %v7175_v26 }
  0x80   : > { %6462 = vmatprep.mubr.f32.mxu0 %v1022_v57  ;;  %v1062_v57 = vand.u32 4294901760, %v1061_v63 }
  0x81   : > { %6549 = vmatmul.mubr.f32.gmra.mxu1 %v7724_v30  ;;  %v1082_v23 = vand.u32 4294901760, %v1081_v59 }
  0x82   : > { %6551 = vmatprep.mubr.f32.mxu1 %v7729_v11 }
  0x83   : > { %6463 = vmatmul.mubr.f32.gmra.mxu0 %v1032_v51  ;;  %v1091_v51 = vsub.f32 %v7780_v13, %v1090_v0 }
  0x84   : > { %6465 = vmatprep.mubr.f32.mxu0 %v1042_v33  ;;  %v10313_v33 = vand.u32 4294901760, %v7171_v25 }
  0x85   : > { %6552 = vmatmul.mubr.f32.gmra.mxu1 %v7746_v37  ;;  %v1092_v63 = vand.u32 4294901760, %v1091_v51  ;;  %v10350_v51 = vld [vmem:[#allocation46_spill] sm:$0xff] }
  0x86   : > { %6554 = vmatprep.mubr.f32.mxu1 %v7752_v39 }
  0x87   : > { %6466 = vmatmul.mubr.f32.gmra.mxu0 %v1052_v9  ;;  %v10315_v9 = vand.u32 4294901760, %v7178_v27 }
  0x88   : > { %6468 = vmatprep.mubr.f32.mxu0 %v1062_v57  ;;  %v10317_v57 = vand.u32 4294901760, %v7193_v36 }
  0x89   : > { %6555 = vmatmul.mubr.f32.gmra.mxu1 %v7764_v16 }
  0x8a   : > { %6642 = vmatprep.mubr.f32.mxu1 %v10313_v33  ;;  %v10354_v33 = vld [vmem:[#allocation48_spill] sm:$0xff] }
  0x8b   : > { %6469 = vmatmul.mubr.f32.gmra.mxu0 %v1072_v20  ;;  %v10318_v20 = vand.u32 4294901760, %v7198_v38 }
  0x8c   : > { %6471 = vmatprep.mubr.f32.mxu0 %v1082_v23  ;;  %v10351_v23 = vand.u32 4294901760, %v10350_v51 }
  0x8d   : > { %6643 = vmatmul.mubr.f32.vlgmr.msra.gmra.mxu1 %v10314_v22  ;;  %v10321_v22 = vand.u32 4294901760, %v7265_v19 }
  0x8e   : > { %6645 = vmatprep.mubr.f32.mxu1 %v10315_v9  ;;  %6807 = vmatpush3.msra.mxu1 %v7126_v2  ;;  %v10319_v2 = vand.u32 4294901760, %v7222_v47  ;;  %v10358_v9 = vld [vmem:[#allocation53_spill] sm:$0xff] }
  0x8f   : > { %6472 = vmatmul.mubr.f32.gmra.mxu0 %v1092_v63  ;;  %v10355_v63 = vand.u32 4294901760, %v10354_v33 }
  0x90   : > { %6559 = vmatprep.mubr.f32.mxu0 %v7171_v25  ;;  %v10320_v25 = vand.u32 4294901760, %v7225_v48 }
  0x91   : > { %6646 = vmatmul.mubr.f32.gmra.mxu1 %v10316_v8  ;;  %v10359_v8 = vand.u32 4294901760, %v10358_v9 }
  0x92   : > { %6648 = vmatprep.mubr.f32.mxu1 %v10317_v57  ;;  %v10360_v57 = vand.u32 4294901760, %v7625_v44 }
  0x93   : > { %6560 = vmatmul.mubr.f32.vlgmr.msra.gmra.mxu0 %v7175_v26  ;;  %v10323_v26 = vand.u32 4294901760, %v7275_v3 }
  0x94   : > { %6562 = vmatprep.mubr.f32.mxu0 %v7178_v27  ;;  %6724 = vmatpush3.msra.mxu0 %v7138_v4  ;;  %v10322_v4 = vand.u32 4294901760, %v7272_v21  ;;  %v10324_v27 = vand.u32 4294901760, %v7283_v41 }
  0x95   : > { %6649 = vmatmul.mubr.f32.gmra.mxu1 %v10318_v20  ;;  %v10361_v20 = vld [vmem:[#allocation56_spill] sm:$0xff] }
  0x96   : > { %6651 = vmatprep.mubr.f32.mxu1 %v10319_v2  ;;  %v10362_v2 = vand.u32 4294901760, %v10361_v20 }
  0x97   : > { %6563 = vmatmul.mubr.f32.gmra.mxu0 %v7183_v29  ;;  %v10325_v29 = vand.u32 4294901760, %v7291_v50 }
  0x98   : > { %6565 = vmatprep.mubr.f32.mxu0 %v7193_v36  ;;  %v10326_v36 = vand.u32 4294901760, %v7301_v54 }
  0x99   : > { %6652 = vmatmul.mubr.f32.gmra.mxu1 %v10320_v25  ;;  %v10363_v25 = vld [vmem:[#allocation60_spill] sm:$0xff] }
  0x9a   : > { %6654 = vmatprep.mubr.f32.mxu1 %v10321_v22  ;;  %v10364_v22 = vand.u32 4294901760, %v10363_v25 }
  0x9b   : > { %6566 = vmatmul.mubr.f32.gmra.mxu0 %v7198_v38  ;;  %v10327_v38 = vand.u32 4294901760, %v7313_v62 }
  0x9c   : > { %6568 = vmatprep.mubr.f32.mxu0 %v7222_v47  ;;  %v10328_v47 = vand.u32 4294901760, %v7334_v53 }
  0x9d   : > { %6655 = vmatmul.mubr.f32.gmra.mxu1 %v10322_v4  ;;  %v10365_v4 = vld [vmem:[#allocation61_spill] sm:$0xff] }
  0x9e   : > { %6657 = vmatprep.mubr.f32.mxu1 %v10323_v26  ;;  %v10366_v26 = vand.u32 4294901760, %v10365_v4 }
  0x9f   : > { %6569 = vmatmul.mubr.f32.gmra.mxu0 %v7225_v48  ;;  %v10329_v48 = vand.u32 4294901760, %v7343_v60 }
  0xa0   : > { %6571 = vmatprep.mubr.f32.mxu0 %v7265_v19  ;;  %v10330_v19 = vand.u32 4294901760, %v7359_v6 }
  0xa1   : > { %6658 = vmatmul.mubr.f32.gmra.mxu1 %v10324_v27 }
  0xa2   : > { %6660 = vmatprep.mubr.f32.mxu1 %v10325_v29  ;;  %v10367_v29 = vld [vmem:[#allocation62_spill] sm:$0xff] }
  0xa3   : > { %6572 = vmatmul.mubr.f32.gmra.mxu0 %v7272_v21  ;;  %v10331_v21 = vand.u32 4294901760, %v7368_v46 }
  0xa4   : > { %6574 = vmatprep.mubr.f32.mxu0 %v7275_v3  ;;  %v10332_v3 = vand.u32 4294901760, %v7375_v18 }
  0xa5   : > { %6661 = vmatmul.mubr.f32.gmra.mxu1 %v10326_v36  ;;  %v10368_v36 = vand.u32 4294901760, %v10367_v29 }
  0xa6   : > { %6663 = vmatprep.mubr.f32.mxu1 %v10327_v38  ;;  %v10369_v38 = vand.u32 4294901760, %v7668_v17 }
  0xa7   : > { %6575 = vmatmul.mubr.f32.gmra.mxu0 %v7283_v41  ;;  %v10333_v41 = vand.u32 4294901760, %v7393_v34 }
  0xa8   : > { %6577 = vmatprep.mubr.f32.mxu0 %v7291_v50  ;;  %v10334_v50 = vand.u32 4294901760, %v7406_v32 }
  0xa9   : > { %6664 = vmatmul.mubr.f32.gmra.mxu1 %v10328_v47 }
  0xaa   : > { %6666 = vmatprep.mubr.f32.mxu1 %v10329_v48 }
  0xab   : > { %6578 = vmatmul.mubr.f32.gmra.mxu0 %v7301_v54  ;;  %v10335_v54 = vand.u32 4294901760, %v7409_v52 }
  0xac   : > { %6580 = vmatprep.mubr.f32.mxu0 %v7313_v62  ;;  %v10337_v62 = vand.u32 4294901760, %v7436_v58 }
  0xad   : > { %6667 = vmatmul.mubr.f32.gmra.mxu1 %v10330_v19  ;;  %v10370_v19 = vand.u32 4294901760, %v7691_v40 }
  0xae   : > { %6669 = vmatprep.mubr.f32.mxu1 %v10331_v21 }
  0xaf   : > { %6581 = vmatmul.mubr.f32.gmra.mxu0 %v7334_v53  ;;  %v10336_v53 = vand.u32 4294901760, %v7433_v43 }
  0xb0   : > { %6583 = vmatprep.mubr.f32.mxu0 %v7343_v60  ;;  %v10341_v60 = vand.u32 4294901760, %v7487_v5 }
  0xb1   : > { %6670 = vmatmul.mubr.f32.gmra.mxu1 %v10332_v3 }
  0xb2   : > { %6672 = vmatprep.mubr.f32.mxu1 %v10333_v41 }
  0xb3   : > { %6584 = vmatmul.mubr.f32.gmra.mxu0 %v7359_v6  ;;  %v10339_v6 = vand.u32 4294901760, %v7463_v55 }
  0xb4   : > { %6586 = vmatprep.mubr.f32.mxu0 %v7368_v46  ;;  %v10338_v46 = vand.u32 4294901760, %v7455_v45 }
  0xb5   : > { %6673 = vmatmul.mubr.f32.gmra.mxu1 %v10334_v50 }
  0xb6   : > { %6675 = vmatprep.mubr.f32.mxu1 %v10335_v54 }
  0xb7   : > { %6587 = vmatmul.mubr.f32.gmra.mxu0 %v7375_v18  ;;  %v10342_v18 = vand.u32 4294901760, %v7501_v12 }
  0xb8   : > { %6589 = vmatprep.mubr.f32.mxu0 %v7393_v34  ;;  %v10340_v34 = vand.u32 4294901760, %v7475_v31 }
  0xb9   : > { %6676 = vmatmul.mubr.f32.gmra.mxu1 %v10336_v53  ;;  %v10372_v53 = vand.u32 4294901760, %v7722_v61 }
  0xba   : > { %6678 = vmatprep.mubr.f32.mxu1 %v10337_v62 }
  0xbb   : > { %6590 = vmatmul.mubr.f32.gmra.mxu0 %v7406_v32  ;;  %v10343_v32 = vand.u32 4294901760, %v7514_v1 }
  0xbc   : > { %6592 = vmatprep.mubr.f32.mxu0 %v7409_v52  ;;  %v10344_v52 = vld [vmem:[#allocation40_spill] sm:$0xff] }
  0xbd   : > { %6679 = vmatmul.mubr.f32.gmra.mxu1 %v10338_v46  ;;  %v10374_v46 = vand.u32 4294901760, %v7727_v35 }
  0xbe   : > { %6681 = vmatprep.mubr.f32.mxu1 %v10339_v6 }
  0xbf   : > { %6593 = vmatmul.mubr.f32.gmra.mxu0 %v7433_v43  ;;  %v10346_v43 = vld [vmem:[#allocation41_spill] sm:$0xff] }
  0xc0   : > { %6595 = vmatprep.mubr.f32.mxu0 %v7436_v58  ;;  %v10345_v58 = vand.u32 4294901760, %v10344_v52  ;;  %v10347_v59 = vand.u32 4294901760, %v10346_v43 }
  0xc1   : > { %6682 = vmatmul.mubr.f32.gmra.mxu1 %v10340_v34 }
  0xc2   : > { %6684 = vmatprep.mubr.f32.mxu1 %v10341_v60 }
  0xc3   : > { %6596 = vmatmul.mubr.f32.gmra.mxu0 %v7455_v45 }
  0xc4   : > { %6598 = vmatprep.mubr.f32.mxu0 %v7463_v55  ;;  %v10348_v55 = vld [vmem:[#allocation43_spill] sm:$0xff] }
  0xc5   : > { %6685 = vmatmul.mubr.f32.gmra.mxu1 %v10342_v18  ;;  %v10349_v45 = vand.u32 4294901760, %v10348_v55 }
  0xc6   : > { %6687 = vmatprep.mubr.f32.mxu1 %v10343_v32 }
  0xc7   : > { %6599 = vmatmul.mubr.f32.gmra.mxu0 %v7475_v31 }
  0xc8   : > { %6601 = vmatprep.mubr.f32.mxu0 %v7487_v5  ;;  %v10352_v5 = vld [vmem:[#allocation47_spill] sm:$0xff] }
  0xc9   : > { %6688 = vmatmul.mubr.f32.gmra.mxu1 %v10345_v58  ;;  %v10353_v31 = vand.u32 4294901760, %v10352_v5 }
  0xca   : > { %6690 = vmatprep.mubr.f32.mxu1 %v10347_v59 }
  0xcb   : > { %6602 = vmatmul.mubr.f32.gmra.mxu0 %v7501_v12  ;;  %v10356_v12 = vld [vmem:[#allocation51_spill] sm:$0xff] }
  0xcc   : > { %6604 = vmatprep.mubr.f32.mxu0 %v7514_v1  ;;  %v10357_v1 = vand.u32 4294901760, %v10356_v12 }
  0xcd   : > { %6691 = vmatmul.mubr.f32.gmra.mxu1 %v10349_v45 }
  0xce   : > { %6693 = vmatprep.mubr.f32.mxu1 %v10351_v23 }
  0xcf   : > { %6605 = vmatmul.mubr.f32.gmra.mxu0 %v10344_v52  ;;  %v10376_v52 = vand.u32 4294901760, %v7750_v14 }
  0xd0   : > { %6607 = vmatprep.mubr.f32.mxu0 %v10346_v43 }
  0xd1   : > { %6694 = vmatmul.mubr.f32.gmra.mxu1 %v10353_v31 }
  0xd2   : > { %6696 = vmatprep.mubr.f32.mxu1 %v10355_v63 }
  0xd3   : > { %6608 = vmatmul.mubr.f32.gmra.mxu0 %v10348_v55 }
  0xd4   : > { %6610 = vmatprep.mubr.f32.mxu0 %v10350_v51 }
  0xd5   : > { %6697 = vmatmul.mubr.f32.gmra.mxu1 %v10357_v1 }
  0xd6   : > { %6699 = vmatprep.mubr.f32.mxu1 %v10359_v8 }
  0xd7   : > { %6611 = vmatmul.mubr.f32.gmra.mxu0 %v10352_v5 }
  0xd8   : > { %6613 = vmatprep.mubr.f32.mxu0 %v10354_v33 }
  0xd9   : > { %6700 = vmatmul.mubr.f32.gmra.mxu1 %v10360_v57 }
  0xda   : > { %6702 = vmatprep.mubr.f32.mxu1 %v10362_v2  ;;  %v10383_v2 = vld [vmem:[#allocation9_spill] sm:$0xff] }
  0xdb   : > { %6614 = vmatmul.mubr.f32.gmra.mxu0 %v10356_v12 }
  0xdc   : > { %6616 = vmatprep.mubr.f32.mxu0 %v10358_v9  ;;  %v10382_v9 = vld [vmem:[#allocation8_spill] sm:$0xff] }
  0xdd   : > { %6703 = vmatmul.mubr.f32.gmra.mxu1 %v10364_v22 }
  0xde   : > { %6705 = vmatprep.mubr.f32.mxu1 %v10366_v26 }
  0xdf   : > { %6617 = vmatmul.mubr.f32.gmra.mxu0 %v7625_v44  ;;  %v10371_v44 = vand.u32 4294901760, %v7698_v56 }
  0xe0   : > { %6619 = vmatprep.mubr.f32.mxu0 %v10361_v20 }
  0xe1   : > { %v6478_v27 = vpop.f32.mrf.mxu1  ;;  %6706 = vmatmul.mubr.f32.gmra.mxu1 %v10368_v36 }
  0xe2   : > { %6708 = vmatprep.mubr.f32.mxu1 %v10369_v38  ;;  %v10386_v38 = vld [vmem:[#allocation12_spill] sm:$0xff] }
  0xe3   : > { %6620 = vmatmul.mubr.f32.gmra.mxu0 %v10363_v25  ;;  %v1170_v47 = vpop.f32.mrf.mxu1  ;;  %v10384_v25 = vld [vmem:[#allocation10_spill] sm:$0xff] }
  0xe4   : > { %6622 = vmatprep.mubr.f32.mxu0 %v10365_v4 }
  0xe5   : > { %v6481_v48 = vpop.f32.mrf.mxu1  ;;  %6709 = vmatmul.mubr.f32.gmra.mxu1 %v10370_v19 }
  0xe6   : > { %6711 = vmatprep.mubr.f32.mxu1 %v10371_v44 }
  0xe7   : > { %v6395_v21 = vpop.f32.mrf.mxu0  ;;  %6623 = vmatmul.mubr.f32.gmra.mxu0 %v10367_v29  ;;  %v1182_v3 = vpop.f32.mrf.mxu1  ;;  %v10385_v29 = vld [vmem:[#allocation11_spill] sm:$0xff] }
  0xe8   : > { %v7941_v41 = vadd.f32 %v6478_v27, %v6395_v21  ;;  %6625 = vmatprep.mubr.f32.mxu0 %v7668_v17 }
  0xe9   : > { %v564_v50 = vpop.f32.mrf.mxu0  ;;  %v6484_v54 = vpop.f32.mrf.mxu1  ;;  %6712 = vmatmul.mubr.f32.gmra.mxu1 %v10372_v53 }
  0xea   : > { %v7946_v62 = vadd.f32 %v1170_v47, %v564_v50  ;;  %6714 = vmatprep.mubr.f32.mxu1 %v10374_v46 }
  0xeb   : > { %v6398_v6 = vpop.f32.mrf.mxu0  ;;  %6626 = vmatmul.mubr.f32.gmra.mxu0 %v7691_v40  ;;  %v1194_v34 = vpop.f32.mrf.mxu1 }
  0xec   : > { %10373 = vst [vmem:[#allocation40_spill] sm:$0xff] %v7946_v62  ;;  %v7951_v60 = vadd.f32 %v6481_v48, %v6398_v6  ;;  %6628 = vmatprep.mubr.f32.mxu0 %v7698_v56  ;;  %v10421_v62 = vld [vmem:[#allocation50_spill] sm:$0xff] }
  0xed   : > { %v584_v18 = vpop.f32.mrf.mxu0  ;;  %v6487_v17 = vpop.f32.mrf.mxu1  ;;  %6715 = vmatmul.mubr.f32.gmra.mxu1 %v1050_v49  ;;  %v10378_v49 = vand.u32 4294901760, %v7771_v42 }
  0xee   : > { %v7956_v32 = vadd.f32 %v1182_v3, %v584_v18  ;;  %6717 = vmatprep.mubr.f32.mxu1 %v10376_v52  ;;  %v10387_v3 = vld [vmem:[#allocation13_spill] sm:$0xff] }
  0xef   : > { %v6401_v58 = vpop.f32.mrf.mxu0  ;;  %6629 = vmatmul.mubr.f32.gmra.mxu0 %v7722_v61  ;;  %v1206_v43 = vpop.f32.mrf.mxu1 }
  0xf0   : > { %10375 = vst [vmem:[#allocation41_spill] sm:$0xff] %v7956_v32  ;;  %v7961_v40 = vadd.f32 %v6484_v54, %v6401_v58  ;;  %6631 = vmatprep.mubr.f32.mxu0 %v7727_v35  ;;  %v10388_v54 = vld [vmem:[#allocation14_spill] sm:$0xff]  ;;  %v10390_v58 = vld [vmem:[#allocation16_spill] sm:$0xff] }
  0xf1   : > { %v604_v59 = vpop.f32.mrf.mxu0  ;;  %v6490_v56 = vpop.f32.mrf.mxu1  ;;  %6718 = vmatmul.mubr.f32.gmra.mxu1 %v1070_v7  ;;  %v10380_v7 = vld [vmem:[#allocation6_spill] sm:$0xff] }
  0xf2   : > { %v7966_v55 = vadd.f32 %v1194_v34, %v604_v59  ;;  %6720 = vmatprep.mubr.f32.mxu1 %v10378_v49 }
  0xf3   : > { %v6404_v45 = vpop.f32.mrf.mxu0  ;;  %6632 = vmatmul.mubr.f32.gmra.mxu0 %v7744_v10  ;;  %v1218_v51 = vpop.f32.mrf.mxu1 }
  0xf4   : > { %10377 = vst [vmem:[#allocation43_spill] sm:$0xff] %v7966_v55  ;;  %v7971_v61 = vadd.f32 %v6487_v17, %v6404_v45  ;;  %6634 = vmatprep.mubr.f32.mxu0 %v7750_v14  ;;  %v10381_v14 = vld [vmem:[#allocation7_spill] sm:$0xff]  ;;  %v10417_v55 = vld [vmem:[#allocation45_spill] sm:$0xff] }
  0xf5   : > { %v624_v23 = vpop.f32.mrf.mxu0  ;;  %v6493_v35 = vpop.f32.mrf.mxu1  ;;  %6721 = vmatmul.mubr.f32.gmra.mxu1 %v1090_v0  ;;  %v10389_v17 = vld [vmem:[#allocation15_spill] sm:$0xff] }
  0xf6   : > { %v7976_v5 = vadd.f32 %v1206_v43, %v624_v23  ;;  %6808 = vmatprep.mubr.f32.mxu1 %v10380_v7 }
  0xf7   : > { %v6407_v31 = vpop.f32.mrf.mxu0  ;;  %6635 = vmatmul.mubr.f32.gmra.mxu0 %v7762_v28  ;;  %v1230_v33 = vpop.f32.mrf.mxu1 }
  0xf8   : > { %10379 = vst [vmem:[#allocation46_spill] sm:$0xff] %v7976_v5  ;;  %v7980_v63 = vadd.f32 %v6490_v56, %v6407_v31  ;;  %6637 = vmatprep.mubr.f32.mxu0 %v7771_v42 }
  0xf9   : > { %v644_v10 = vpop.f32.mrf.mxu0  ;;  %v6496_v12 = vpop.f32.mrf.mxu1  ;;  %6809 = vmatmul.mubr.f32.vlgmr.msra.gmra.mxu1 %v10381_v14 }
  0xfa   : > { %v7984_v1 = vadd.f32 %v1218_v51, %v644_v10  ;;  %6811 = vmatprep.mubr.f32.mxu1 %v10382_v9  ;;  %v10391_v51 = vld [vmem:[#allocation17_spill] sm:$0xff] }
  0xfb   : > { %v6410_v0 = vpop.f32.mrf.mxu0  ;;  %6638 = vmatmul.mubr.f32.gmra.mxu0 %v7780_v13  ;;  %v1242_v8 = vpop.f32.mrf.mxu1 }
  0xfc   : > { %v7988_v57 = vadd.f32 %v6493_v35, %v6410_v0  ;;  %6725 = vmatprep.mubr.f32.mxu0 %v10380_v7  ;;  %v10392_v35 = vld [vmem:[#allocation18_spill] sm:$0xff]  ;;  %v10394_v0 = vld [vmem:[#allocation20_spill] sm:$0xff] }
  0xfd   : > { %v664_v28 = vpop.f32.mrf.mxu0  ;;  %v6499_v20 = vpop.f32.mrf.mxu1  ;;  %6812 = vmatmul.mubr.f32.gmra.mxu1 %v10383_v2 }
  0xfe   : > { %v7992_v42 = vadd.f32 %v1230_v33, %v664_v28  ;;  %6814 = vmatprep.mubr.f32.mxu1 %v10384_v25 }
  0xff   : > { %v6413_v22 = vpop.f32.mrf.mxu0  ;;  %6726 = vmatmul.mubr.f32.vlgmr.msra.gmra.mxu0 %v10381_v14  ;;  %v1254_v4 = vpop.f32.mrf.mxu1  ;;  %v10393_v14 = vld [vmem:[#allocation19_spill] sm:$0xff] }
 0x100   : > { %v7996_v26 = vadd.f32 %v6496_v12, %v6413_v22  ;;  %6728 = vmatprep.mubr.f32.mxu0 %v10382_v9  ;;  %v10395_v22 = vld [vmem:[#allocation21_spill] sm:$0xff] }
 0x101   : > { %v684_v13 = vpop.f32.mrf.mxu0  ;;  %v6502_v27 = vpop.f32.mrf.mxu1  ;;  %6815 = vmatmul.mubr.f32.gmra.mxu1 %v10385_v29 }
 0x102   : > { %v8000_v36 = vadd.f32 %v1242_v8, %v684_v13  ;;  %6817 = vmatprep.mubr.f32.mxu1 %v10386_v38  ;;  %v10396_v13 = vld [vmem:[#allocation22_spill] sm:$0xff] }
 0x103   : > { %v6416_v47 = vpop.f32.mrf.mxu0  ;;  %6729 = vmatmul.mubr.f32.gmra.mxu0 %v10383_v2  ;;  %v1266_v48 = vpop.f32.mrf.mxu1 }
 0x104   : > { %v8004_v19 = vadd.f32 %v6499_v20, %v6416_v47  ;;  %6731 = vmatprep.mubr.f32.mxu0 %v10384_v25 }
 0x105   : > { %v704_v44 = vpop.f32.mrf.mxu0  ;;  %v6505_v21 = vpop.f32.mrf.mxu1  ;;  %6818 = vmatmul.mubr.f32.gmra.mxu1 %v10387_v3 }
 0x106   : > { %v8008_v50 = vadd.f32 %v1254_v4, %v704_v44  ;;  %6820 = vmatprep.mubr.f32.mxu1 %v10388_v54  ;;  %v10397_v44 = vld [vmem:[#allocation23_spill] sm:$0xff] }
 0x107   : > { %v6419_v53 = vpop.f32.mrf.mxu0  ;;  %6732 = vmatmul.mubr.f32.gmra.mxu0 %v10385_v29  ;;  %v1278_v46 = vpop.f32.mrf.mxu1 }
 0x108   : > { %v8012_v6 = vadd.f32 %v6502_v27, %v6419_v53  ;;  %6734 = vmatprep.mubr.f32.mxu0 %v10386_v38 }
 0x109   : > { %v724_v34 = vpop.f32.mrf.mxu0  ;;  %v6508_v18 = vpop.f32.mrf.mxu1  ;;  %6821 = vmatmul.mubr.f32.gmra.mxu1 %v10389_v17 }
 0x10a   : > { %v8016_v52 = vadd.f32 %v1266_v48, %v724_v34  ;;  %6823 = vmatprep.mubr.f32.mxu1 %v10390_v58 }
 0x10b   : > { %v6422_v43 = vpop.f32.mrf.mxu0  ;;  %6735 = vmatmul.mubr.f32.gmra.mxu0 %v10387_v3  ;;  %v1290_v59 = vpop.f32.mrf.mxu1  ;;  %v10398_v3 = vld [vmem:[#allocation24_spill] sm:$0xff] }
 0x10c   : > { %v8020_v56 = vadd.f32 %v6505_v21, %v6422_v43  ;;  %6737 = vmatprep.mubr.f32.mxu0 %v10388_v54  ;;  %v10400_v43 = vld [vmem:[#allocation26_spill] sm:$0xff] }
 0x10d   : > { %v744_v49 = vpop.f32.mrf.mxu0  ;;  %v6511_v45 = vpop.f32.mrf.mxu1  ;;  %6824 = vmatmul.mubr.f32.gmra.mxu1 %v10391_v51 }
 0x10e   : > { %v8024_v23 = vadd.f32 %v1278_v46, %v744_v49  ;;  %6826 = vmatprep.mubr.f32.mxu1 %v10392_v35 }
 0x10f   : > { %v6425_v7 = vpop.f32.mrf.mxu0  ;;  %6738 = vmatmul.mubr.f32.gmra.mxu0 %v10389_v17  ;;  %v1302_v31 = vpop.f32.mrf.mxu1  ;;  %v10399_v17 = vld [vmem:[#allocation25_spill] sm:$0xff] }
 0x110   : > { %v8028_v33 = vadd.f32 %v6508_v18, %v6425_v7  ;;  %6740 = vmatprep.mubr.f32.mxu0 %v10390_v58  ;;  %v10401_v7 = vld [vmem:[#allocation27_spill] sm:$0xff] }
 0x111   : > { %v764_v10 = vpop.f32.mrf.mxu0  ;;  %v6514_v12 = vpop.f32.mrf.mxu1  ;;  %6827 = vmatmul.mubr.f32.gmra.mxu1 %v10393_v14 }
 0x112   : > { %v8032_v9 = vadd.f32 %v1290_v59, %v764_v10  ;;  %6829 = vmatprep.mubr.f32.mxu1 %v10394_v0  ;;  %v10402_v10 = vld [vmem:[#allocation28_spill] sm:$0xff] }
 0x113   : > { %v6428_v8 = vpop.f32.mrf.mxu0  ;;  %6741 = vmatmul.mubr.f32.gmra.mxu0 %v10391_v51  ;;  %v1314_v28 = vpop.f32.mrf.mxu1 }
 0x114   : > { %v8036_v20 = vadd.f32 %v6511_v45, %v6428_v8  ;;  %6743 = vmatprep.mubr.f32.mxu0 %v10392_v35 }
 0x115   : > { %v784_v2 = vpop.f32.mrf.mxu0  ;;  %v6517_v25 = vpop.f32.mrf.mxu1  ;;  %6830 = vmatmul.mubr.f32.gmra.mxu1 %v10395_v22 }
 0x116   : > { %v8040_v4 = vadd.f32 %v1302_v31, %v784_v2  ;;  %6832 = vmatprep.mubr.f32.mxu1 %v10396_v13  ;;  %v10403_v2 = vld [vmem:[#allocation29_spill] sm:$0xff] }
 0x117   : > { %v6431_v27 = vpop.f32.mrf.mxu0  ;;  %6744 = vmatmul.mubr.f32.gmra.mxu0 %v10393_v14  ;;  %v1326_v29 = vpop.f32.mrf.mxu1 }
 0x118   : > { %v8044_v38 = vadd.f32 %v6514_v12, %v6431_v27  ;;  %6746 = vmatprep.mubr.f32.mxu0 %v10394_v0 }
 0x119   : > { %v804_v47 = vpop.f32.mrf.mxu0  ;;  %v6520_v48 = vpop.f32.mrf.mxu1  ;;  %6833 = vmatmul.mubr.f32.gmra.mxu1 %v10397_v44 }
 0x11a   : > { %v8048_v21 = vadd.f32 %v1314_v28, %v804_v47  ;;  %6835 = vmatprep.mubr.f32.mxu1 %v10398_v3 }
 0x11b   : > { %v6434_v54 = vpop.f32.mrf.mxu0  ;;  %6747 = vmatmul.mubr.f32.gmra.mxu0 %v10395_v22  ;;  %v1338_v53 = vpop.f32.mrf.mxu1  ;;  %v10404_v22 = vld [vmem:[#allocation30_spill] sm:$0xff] }
 0x11c   : > { %v8052_v46 = vadd.f32 %v6517_v25, %v6434_v54  ;;  %6749 = vmatprep.mubr.f32.mxu0 %v10396_v13  ;;  %v10406_v54 = vld [vmem:[#allocation32_spill] sm:$0xff] }
 0x11d   : > { %v824_v34 = vpop.f32.mrf.mxu0  ;;  %v6523_v18 = vpop.f32.mrf.mxu1  ;;  %6836 = vmatmul.mubr.f32.gmra.mxu1 %v10399_v17 }
 0x11e   : > { %v8056_v58 = vadd.f32 %v1326_v29, %v824_v34  ;;  %6838 = vmatprep.mubr.f32.mxu1 %v10400_v43 }
 0x11f   : > { %v6437_v59 = vpop.f32.mrf.mxu0  ;;  %6750 = vmatmul.mubr.f32.gmra.mxu0 %v10397_v44  ;;  %v1350_v49 = vpop.f32.mrf.mxu1  ;;  %v10405_v44 = vld [vmem:[#allocation31_spill] sm:$0xff] }
 0x120   : > { %v8060_v45 = vadd.f32 %v6520_v48, %v6437_v59  ;;  %6752 = vmatprep.mubr.f32.mxu0 %v10398_v3  ;;  %v10407_v59 = vld [vmem:[#allocation33_spill] sm:$0xff] }
 0x121   : > { %v844_v51 = vpop.f32.mrf.mxu0  ;;  %v6526_v35 = vpop.f32.mrf.mxu1  ;;  %6839 = vmatmul.mubr.f32.gmra.mxu1 %v10401_v7 }
 0x122   : > { %v8064_v31 = vadd.f32 %v1338_v53, %v844_v51  ;;  %6841 = vmatprep.mubr.f32.mxu1 %v10402_v10  ;;  %v10408_v51 = vld [vmem:[#allocation34_spill] sm:$0xff] }
 0x123   : > { %v6440_v12 = vpop.f32.mrf.mxu0  ;;  %6753 = vmatmul.mubr.f32.gmra.mxu0 %v10399_v17  ;;  %v1362_v14 = vpop.f32.mrf.mxu1 }
 0x124   : > { %v8068_v0 = vadd.f32 %v6523_v18, %v6440_v12  ;;  %6755 = vmatprep.mubr.f32.mxu0 %v10400_v43 }
 0x125   : > { %v864_v8 = vpop.f32.mrf.mxu0  ;;  %v6529_v28 = vpop.f32.mrf.mxu1  ;;  %6842 = vmatmul.mubr.f32.gmra.mxu1 %v10403_v2 }
 0x126   : > { %v8072_v25 = vadd.f32 %v1350_v49, %v864_v8  ;;  %6844 = vmatprep.mubr.f32.mxu1 %v10404_v22  ;;  %v10409_v8 = vld [vmem:[#allocation35_spill] sm:$0xff] }
 0x127   : > { %v6443_v13 = vpop.f32.mrf.mxu0  ;;  %6756 = vmatmul.mubr.f32.gmra.mxu0 %v10401_v7  ;;  %v1374_v27 = vpop.f32.mrf.mxu1 }
 0x128   : > { %v8076_v29 = vadd.f32 %v6526_v35, %v6443_v13  ;;  %6758 = vmatprep.mubr.f32.mxu0 %v10402_v10 }
 0x129   : > { %v884_v47 = vpop.f32.mrf.mxu0  ;;  %v6532_v48 = vpop.f32.mrf.mxu1  ;;  %6845 = vmatmul.mubr.f32.gmra.mxu1 %v10405_v44 }
 0x12a   : > { %v8080_v3 = vadd.f32 %v1362_v14, %v884_v47  ;;  %6847 = vmatprep.mubr.f32.mxu1 %v10406_v54 }
 0x12b   : > { %v6446_v53 = vpop.f32.mrf.mxu0  ;;  %6759 = vmatmul.mubr.f32.gmra.mxu0 %v10403_v2  ;;  %v1386_v34 = vpop.f32.mrf.mxu1  ;;  %v10410_v2 = vld [vmem:[#allocation36_spill] sm:$0xff] }
 0x12c   : > { %v8084_v18 = vadd.f32 %v6529_v28, %v6446_v53  ;;  %6761 = vmatprep.mubr.f32.mxu0 %v10404_v22  ;;  %v10412_v53 = vld [vmem:[#allocation38_spill] sm:$0xff] }
 0x12d   : > { %v904_v17 = vpop.f32.mrf.mxu0  ;;  %v6535_v43 = vpop.f32.mrf.mxu1  ;;  %6848 = vmatmul.mubr.f32.gmra.mxu1 %v10407_v59 }
 0x12e   : > { %v8088_v49 = vadd.f32 %v1374_v27, %v904_v17  ;;  %6850 = vmatprep.mubr.f32.mxu1 %v10408_v51 }
 0x12f   : > { %v6449_v35 = vpop.f32.mrf.mxu0  ;;  %6762 = vmatmul.mubr.f32.gmra.mxu0 %v10405_v44  ;;  %v1398_v7 = vpop.f32.mrf.mxu1  ;;  %v10411_v44 = vld [vmem:[#allocation37_spill] sm:$0xff] }
 0x130   : > { %v8092_v10 = vadd.f32 %v6532_v48, %v6449_v35  ;;  %6764 = vmatprep.mubr.f32.mxu0 %v10406_v54 }
 0x131   : > { %v924_v12 = vpop.f32.mrf.mxu0  ;;  %v6538_v14 = vpop.f32.mrf.mxu1  ;;  %6851 = vmatmul.mubr.f32.gmra.mxu1 %v10409_v8 }
 0x132   : > { %v8096_v28 = vadd.f32 %v1386_v34, %v924_v12  ;;  %6853 = vmatprep.mubr.f32.mxu1 %v10410_v2  ;;  %v10413_v12 = vld [vmem:[#allocation39_spill] sm:$0xff] }
 0x133   : > { %v6452_v22 = vpop.f32.mrf.mxu0  ;;  %6765 = vmatmul.mubr.f32.gmra.mxu0 %v10407_v59  ;;  %v1410_v13 = vpop.f32.mrf.mxu1 }
 0x134   : > { %v8100_v27 = vadd.f32 %v6535_v43, %v6452_v22  ;;  %6767 = vmatprep.mubr.f32.mxu0 %v10408_v51  ;;  %v10414_v22 = vld [vmem:[#allocation42_spill] sm:$0xff] }
 0x135   : > { %v944_v47 = vpop.f32.mrf.mxu0  ;;  %v6541_v48 = vpop.f32.mrf.mxu1  ;;  %6854 = vmatmul.mubr.f32.gmra.mxu1 %v10411_v44 }
 0x136   : > { %v8104_v54 = vadd.f32 %v1398_v7, %v944_v47  ;;  %6856 = vmatprep.mubr.f32.mxu1 %v10412_v53 }
 0x137   : > { %v6455_v34 = vpop.f32.mrf.mxu0  ;;  %6768 = vmatmul.mubr.f32.gmra.mxu0 %v10409_v8  ;;  %v1422_v17 = vpop.f32.mrf.mxu1 }
 0x138   : > { %v8108_v35 = vadd.f32 %v6538_v14, %v6455_v34  ;;  %6770 = vmatprep.mubr.f32.mxu0 %v10410_v2  ;;  %v10415_v34 = vld [vmem:[#allocation44_spill] sm:$0xff] }
 0x139   : > { %v964_v43 = vpop.f32.mrf.mxu0  ;;  %v6544_v59 = vpop.f32.mrf.mxu1  ;;  %6857 = vmatmul.mubr.f32.gmra.mxu1 %v10413_v12 }
 0x13a   : > { %v8112_v51 = vadd.f32 %v1410_v13, %v964_v43  ;;  %6859 = vmatprep.mubr.f32.mxu1 %v10414_v22 }
 0x13b   : > { %v6458_v7 = vpop.f32.mrf.mxu0  ;;  %6771 = vmatmul.mubr.f32.gmra.mxu0 %v10411_v44  ;;  %v1434_v47 = vpop.f32.mrf.mxu1 }
 0x13c   : > { %v8116_v5 = vadd.f32 %v6541_v48, %v6458_v7  ;;  %6773 = vmatprep.mubr.f32.mxu0 %v10412_v53  ;;  %v10419_v7 = vld [vmem:[#allocation49_spill] sm:$0xff] }
 0x13d   : > { %v984_v14 = vpop.f32.mrf.mxu0  ;;  %v6547_v8 = vpop.f32.mrf.mxu1  ;;  %6860 = vmatmul.mubr.f32.gmra.mxu1 %v10415_v34 }
 0x13e   : > { %v8120_v2 = vadd.f32 %v1422_v17, %v984_v14  ;;  %6862 = vmatprep.mubr.f32.mxu1 %v10417_v55 }
 0x13f   : > { %v6461_v13 = vpop.f32.mrf.mxu0  ;;  %6774 = vmatmul.mubr.f32.gmra.mxu0 %v10413_v12  ;;  %v1446_v43 = vpop.f32.mrf.mxu1 }
 0x140   : > { %10416 = vst [vmem:[#allocation47_spill] sm:$0xff] %v8120_v2  ;;  %v8124_v32 = vadd.f32 %v6544_v59, %v6461_v13  ;;  %6776 = vmatprep.mubr.f32.mxu0 %v10414_v22  ;;  %v10423_v13 = vld [vmem:[#allocation52_spill] sm:$0xff] }
 0x141   : > { %v1004_v48 = vpop.f32.mrf.mxu0  ;;  %v6550_v44 = vpop.f32.mrf.mxu1  ;;  %6863 = vmatmul.mubr.f32.gmra.mxu1 %v10419_v7 }
 0x142   : > { %10418 = vst [vmem:[#allocation48_spill] sm:$0xff] %v8124_v32  ;;  %v8128_v53 = vadd.f32 %v1434_v47, %v1004_v48  ;;  %6865 = vmatprep.mubr.f32.mxu1 %v10421_v62  ;;  %v10424_v32 = vld [vmem:[#allocation54_spill] sm:$0xff] }
 0x143   : > { %v6464_v17 = vpop.f32.mrf.mxu0  ;;  %6777 = vmatmul.mubr.f32.gmra.mxu0 %v10415_v34  ;;  %v1458_v14 = vpop.f32.mrf.mxu1 }
 0x144   : > { %10420 = vst [vmem:[#allocation51_spill] sm:$0xff] %v8128_v53  ;;  %v8132_v2 = vadd.f32 %v6547_v8, %v6464_v17  ;;  %6779 = vmatprep.mubr.f32.mxu0 %v10417_v55  ;;  %v10426_v55 = vld [vmem:[#allocation55_spill] sm:$0xff] }
 0x145   : > { %v1024_v59 = vpop.f32.mrf.mxu0  ;;  %v6553_v12 = vpop.f32.mrf.mxu1  ;;  %6866 = vmatmul.mubr.f32.gmra.mxu1 %v10423_v13 }
 0x146   : > { %10422 = vst [vmem:[#allocation53_spill] sm:$0xff] %v8132_v2  ;;  %v8136_v22 = vadd.f32 %v1446_v43, %v1024_v59  ;;  %6868 = vmatprep.mubr.f32.mxu1 %v10424_v32  ;;  %v10428_v2 = vld [vmem:[#allocation57_spill] sm:$0xff] }
 0x147   : > { %v6467_v47 = vpop.f32.mrf.mxu0  ;;  %6780 = vmatmul.mubr.f32.gmra.mxu0 %v10419_v7  ;;  %v8140_v48 = vpop.f32.mrf.mxu1 }
 0x148   : > { %10425 = vst [vmem:[#allocation56_spill] sm:$0xff] %v8140_v48  ;;  %v8142_v53 = vadd.f32 %v6550_v44, %v6467_v47  ;;  %6782 = vmatprep.mubr.f32.mxu0 %v10421_v62  ;;  %v10430_v47 = vld [vmem:[#allocation58_spill] sm:$0xff]  ;;  %v10431_v48 = vld [vmem:[#allocation59_spill] sm:$0xff] }
 0x149   : > { %v1044_v8 = vpop.f32.mrf.mxu0  ;;  %v6556_v34 = vpop.f32.mrf.mxu1  ;;  %6869 = vmatmul.mubr.f32.gmra.mxu1 %v10426_v55 }
 0x14a   : > { %v8146_v17 = vadd.f32 %v1458_v14, %v1044_v8  ;;  %6871 = vmatprep.mubr.f32.mxu1 %v10428_v2 }
 0x14b   : > { %v6470_v43 = vpop.f32.mrf.mxu0  ;;  %6783 = vmatmul.mubr.f32.gmra.mxu0 %v10423_v13  ;;  %v8150_v59 = vpop.f32.mrf.mxu1 }
 0x14c   : > { %10427 = vst [vmem:[#allocation60_spill] sm:$0xff] %v8146_v17  ;;  %10429 = vst [vmem:[#allocation61_spill] sm:$0xff] %v8150_v59  ;;  %v8152_v7 = vadd.f32 %v6553_v12, %v6470_v43  ;;  %6785 = vmatprep.mubr.f32.mxu0 %v10424_v32  ;;  %v10435_v32 = vld [vmem:[#allocation63_spill] sm:$0xff] }
 0x14d   : > { %v8155_v44 = vpop.f32.mrf.mxu0  ;;  %v6644_v62 = vpop.f32.mrf.mxu1  ;;  %6872 = vmatmul.mubr.f32.gmra.mxu1 %v10430_v47 }
 0x14e   : > { %6874 = vmatprep.mubr.f32.mxu1 %v10431_v48 }
 0x14f   : > { %v6473_v14 = vpop.f32.mrf.mxu0  ;;  %6786 = vmatmul.mubr.f32.gmra.mxu0 %v10426_v55  ;;  %v8160_v8 = vpop.f32.mrf.mxu1 }
 0x150   : > { %10432 = vst [vmem:[#allocation62_spill] sm:$0xff] %v8160_v8  ;;  %v8162_v17 = vadd.f32 %v6556_v34, %v6473_v14  ;;  %6788 = vmatprep.mubr.f32.mxu0 %v10428_v2  ;;  %v10436_v2 = vld [vmem:[#allocation64_spill] sm:$0xff] }
 0x151   : > { %v8165_v12 = vpop.f32.mrf.mxu0  ;;  %v6647_v13 = vpop.f32.mrf.mxu1  ;;  %6875 = vmatmul.mubr.f32.gmra.mxu1 %v7670_v24 }
 0x152   : > { %10433 = vst [vmem:[#allocation6_spill] sm:$0xff] %v8162_v17  ;;  %10434 = vst [vmem:[#allocation7_spill] sm:$0xff] %v8165_v12  ;;  %6877 = vmatprep.mubr.f32.mxu1 %v10435_v32 }
 0x153   : > { %v6561_v43 = vpop.f32.mrf.mxu0  ;;  %6789 = vmatmul.mubr.f32.gmra.mxu0 %v10430_v47  ;;  %v8170_v59 = vpop.f32.mrf.mxu1 }
 0x154   : > { %v1570_v55 = vadd.f32 %v6561_v43, %v7941_v41  ;;  %6791 = vmatprep.mubr.f32.mxu0 %v10431_v48 }
 0x155   : > { %v8174_v34 = vpop.f32.mrf.mxu0  ;;  %v6650_v14 = vpop.f32.mrf.mxu1  ;;  %6878 = vmatmul.mubr.f32.gmra.mxu1 %v10436_v2 }
 0x156   : > { %v8177_v8 = vadd.f32 %v6644_v62, %v1570_v55  ;;  %6880 = vmatprep.mubr.f32.mxu1 %v7705_v15 }
 0x157   : > { %v6564_v17 = vpop.f32.mrf.mxu0  ;;  %6792 = vmatmul.mubr.f32.gmra.mxu0 %v7670_v24  ;;  %v8181_v12 = vpop.f32.mrf.mxu1 }
 0x158   : > { %10437 = vst [vmem:[#allocation8_spill] sm:$0xff] %v8181_v12  ;;  %v1584_v47 = vadd.f32 %v6564_v17, %v7951_v60  ;;  %6794 = vmatprep.mubr.f32.mxu0 %v10435_v32 }
 0x159   : > { %v8185_v41 = vpop.f32.mrf.mxu0  ;;  %v6653_v48 = vpop.f32.mrf.mxu1  ;;  %6881 = vmatmul.mubr.f32.gmra.mxu1 %v7724_v30 }
 0x15a   : > { %v8188_v43 = vadd.f32 %v6647_v13, %v1584_v47  ;;  %6883 = vmatprep.mubr.f32.mxu1 %v7729_v11 }
 0x15b   : > { %v6567_v62 = vpop.f32.mrf.mxu0  ;;  %6795 = vmatmul.mubr.f32.gmra.mxu0 %v10436_v2  ;;  %v8192_v55 = vpop.f32.mrf.mxu1 }
 0x15c   : > { %10438 = vst [vmem:[#allocation9_spill] sm:$0xff] %v8192_v55  ;;  %v1598_v24 = vadd.f32 %v6567_v62, %v7961_v40  ;;  %6797 = vmatprep.mubr.f32.mxu0 %v7705_v15 }
 0x15d   : > { %v8196_v60 = vpop.f32.mrf.mxu0  ;;  %v6656_v17 = vpop.f32.mrf.mxu1  ;;  %6884 = vmatmul.mubr.f32.gmra.mxu1 %v7746_v37 }
 0x15e   : > { %v8199_v32 = vadd.f32 %v6650_v14, %v1598_v24  ;;  %6886 = vmatprep.mubr.f32.mxu1 %v7752_v39 }
 0x15f   : > { %v6570_v13 = vpop.f32.mrf.mxu0  ;;  %6798 = vmatmul.mubr.f32.gmra.mxu0 %v7724_v30  ;;  %v2071_v47 = vpop.f32.mrf.mxu1 }
 0x160   : > { %10439 = vst [vmem:[#allocation10_spill] sm:$0xff] %v8199_v32  ;;  %v1612_v2 = vadd.f32 %v6570_v13, %v7971_v61  ;;  %6800 = vmatprep.mubr.f32.mxu0 %v7729_v11 }
 0x161   : > { %v8205_v40 = vpop.f32.mrf.mxu0  ;;  %v6659_v15 = vpop.f32.mrf.mxu1  ;;  %6887 = vmatmul.mubr.f32.gmra.mxu1 %v7764_v16 }
 0x162   : > { %10440 = vst [vmem:[#allocation11_spill] sm:$0xff] %v8205_v40  ;;  %v8208_v62 = vadd.f32 %v6653_v48, %v1612_v2 }
 0x163   : > { %v6573_v55 = vpop.f32.mrf.mxu0  ;;  %6801 = vmatmul.mubr.f32.gmra.mxu0 %v7746_v37  ;;  %v2087_v14 = vpop.f32.mrf.mxu1 }
 0x164   : > { %10441 = vst [vmem:[#allocation12_spill] sm:$0xff] %v8208_v62  ;;  %v1626_v24 = vadd.f32 %v6573_v55, %v7980_v63  ;;  %6803 = vmatprep.mubr.f32.mxu0 %v7752_v39 }
 0x165   : > { %v1618_v30 = vpop.f32.mrf.mxu0  ;;  %v6662_v32 = vpop.f32.mrf.mxu1 }
 0x166   : > { %v8213_v61 = vadd.f32 %v6656_v17, %v1626_v24  ;;  %v1619_v11 = vadd.f32 %v1618_v30, %v7984_v1 }
 0x167   : > { %v6576_v13 = vpop.f32.mrf.mxu0  ;;  %6804 = vmatmul.mubr.f32.gmra.mxu0 %v7764_v16  ;;  %v2103_v40 = vpop.f32.mrf.mxu1 }
 0x168   : > { %v8217_v48 = vadd.f32 %v2071_v47, %v1619_v11  ;;  %v1640_v2 = vadd.f32 %v6576_v13, %v7988_v57 }
 0x169   : > { %v1632_v37 = vpop.f32.mrf.mxu0  ;;  %v6665_v62 = vpop.f32.mrf.mxu1 }
 0x16a   : > { %v8220_v12 = vadd.f32 %v6659_v15, %v1640_v2  ;;  %v1633_v39 = vadd.f32 %v1632_v37, %v7992_v42 }
 0x16b   : > { %v6579_v63 = vpop.f32.mrf.mxu0  ;;  %v2119_v55 = vpop.f32.mrf.mxu1 }
 0x16c   : > { %v8223_v17 = vadd.f32 %v2087_v14, %v1633_v39  ;;  %v1654_v1 = vadd.f32 %v6579_v63, %v7996_v26 }
 0x16d   : > { %v1646_v24 = vpop.f32.mrf.mxu0  ;;  %v6668_v30 = vpop.f32.mrf.mxu1 }
 0x16e   : > { %v8226_v16 = vadd.f32 %v6662_v32, %v1654_v1  ;;  %v1647_v47 = vadd.f32 %v1646_v24, %v8000_v36 }
 0x16f   : > { %v6582_v11 = vpop.f32.mrf.mxu0  ;;  %v2135_v57 = vpop.f32.mrf.mxu1 }
 0x170   : > { %v8229_v13 = vadd.f32 %v2103_v40, %v1647_v47  ;;  %v1668_v15 = vadd.f32 %v6582_v11, %v8004_v19 }
 0x171   : > { %v1660_v2 = vpop.f32.mrf.mxu0  ;;  %v6671_v42 = vpop.f32.mrf.mxu1 }
 0x172   : > { %v8232_v37 = vadd.f32 %v6665_v62, %v1668_v15  ;;  %v1661_v14 = vadd.f32 %v1660_v2, %v8008_v50 }
 0x173   : > { %v6585_v39 = vpop.f32.mrf.mxu0  ;;  %v2151_v26 = vpop.f32.mrf.mxu1 }
 0x174   : > { %v8235_v63 = vadd.f32 %v2119_v55, %v1661_v14  ;;  %v1682_v32 = vadd.f32 %v6585_v39, %v8012_v6 }
 0x175   : > { %v1674_v1 = vpop.f32.mrf.mxu0  ;;  %v6674_v36 = vpop.f32.mrf.mxu1 }
 0x176   : > { %v8238_v24 = vadd.f32 %v6668_v30, %v1682_v32  ;;  %v1675_v40 = vadd.f32 %v1674_v1, %v8016_v52 }
 0x177   : > { %v6588_v47 = vpop.f32.mrf.mxu0  ;;  %v2167_v19 = vpop.f32.mrf.mxu1 }
 0x178   : > { %v8241_v11 = vadd.f32 %v2135_v57, %v1675_v40  ;;  %v1696_v62 = vadd.f32 %v6588_v47, %v8020_v56 }
 0x179   : > { %v1688_v15 = vpop.f32.mrf.mxu0  ;;  %v6677_v50 = vpop.f32.mrf.mxu1 }
 0x17a   : > { %v8244_v2 = vadd.f32 %v6671_v42, %v1696_v62  ;;  %v1689_v55 = vadd.f32 %v1688_v15, %v8024_v23 }
 0x17b   : > { %v6591_v14 = vpop.f32.mrf.mxu0  ;;  %v2183_v6 = vpop.f32.mrf.mxu1 }
 0x17c   : > { %v8247_v39 = vadd.f32 %v2151_v26, %v1689_v55  ;;  %v1710_v30 = vadd.f32 %v6591_v14, %v8028_v33 }
 0x17d   : > { %v1702_v32 = vpop.f32.mrf.mxu0  ;;  %v6680_v52 = vpop.f32.mrf.mxu1 }
 0x17e   : > { %v8250_v1 = vadd.f32 %v6674_v36, %v1710_v30  ;;  %v1703_v57 = vadd.f32 %v1702_v32, %v8032_v9 }
 0x17f   : > { %v6594_v40 = vpop.f32.mrf.mxu0  ;;  %v2199_v56 = vpop.f32.mrf.mxu1 }
 0x180   : > { %v8253_v47 = vadd.f32 %v2167_v19, %v1703_v57  ;;  %v1724_v42 = vadd.f32 %v6594_v40, %v8036_v20 }
 0x181   : > { %v1716_v62 = vpop.f32.mrf.mxu0  ;;  %v6683_v23 = vpop.f32.mrf.mxu1 }
 0x182   : > { %v8256_v15 = vadd.f32 %v6677_v50, %v1724_v42  ;;  %v1717_v26 = vadd.f32 %v1716_v62, %v8040_v4 }
 0x183   : > { %v6597_v55 = vpop.f32.mrf.mxu0  ;;  %v2215_v33 = vpop.f32.mrf.mxu1 }
 0x184   : > { %v8259_v14 = vadd.f32 %v2183_v6, %v1717_v26  ;;  %v1738_v36 = vadd.f32 %v6597_v55, %v8044_v38 }
 0x185   : > { %v1730_v30 = vpop.f32.mrf.mxu0  ;;  %v6686_v9 = vpop.f32.mrf.mxu1 }
 0x186   : > { %v8262_v32 = vadd.f32 %v6680_v52, %v1738_v36  ;;  %v1731_v19 = vadd.f32 %v1730_v30, %v8048_v21 }
 0x187   : > { %v6600_v57 = vpop.f32.mrf.mxu0  ;;  %v2231_v20 = vpop.f32.mrf.mxu1 }
 0x188   : > { %v8265_v40 = vadd.f32 %v2199_v56, %v1731_v19  ;;  %v1752_v50 = vadd.f32 %v6600_v57, %v8052_v46 }
 0x189   : > { %v1744_v42 = vpop.f32.mrf.mxu0  ;;  %v6689_v4 = vpop.f32.mrf.mxu1 }
 0x18a   : > { %v8268_v62 = vadd.f32 %v6683_v23, %v1752_v50  ;;  %v1745_v6 = vadd.f32 %v1744_v42, %v8056_v58 }
 0x18b   : > { %v6603_v26 = vpop.f32.mrf.mxu0  ;;  %v2247_v38 = vpop.f32.mrf.mxu1 }
 0x18c   : > { %v8271_v55 = vadd.f32 %v2215_v33, %v1745_v6  ;;  %v1766_v52 = vadd.f32 %v6603_v26, %v8060_v45 }
 0x18d   : > { %v1758_v36 = vpop.f32.mrf.mxu0  ;;  %v6692_v21 = vpop.f32.mrf.mxu1 }
 0x18e   : > { %v8274_v30 = vadd.f32 %v6686_v9, %v1766_v52  ;;  %v1759_v56 = vadd.f32 %v1758_v36, %v8064_v31 }
 0x18f   : > { %v6606_v19 = vpop.f32.mrf.mxu0  ;;  %v2263_v46 = vpop.f32.mrf.mxu1 }
 0x190   : > { %v8277_v57 = vadd.f32 %v2231_v20, %v1759_v56  ;;  %v1780_v23 = vadd.f32 %v6606_v19, %v8068_v0 }
 0x191   : > { %v1772_v50 = vpop.f32.mrf.mxu0  ;;  %v6695_v58 = vpop.f32.mrf.mxu1 }
 0x192   : > { %v8280_v42 = vadd.f32 %v6689_v4, %v1780_v23  ;;  %v1773_v33 = vadd.f32 %v1772_v50, %v8072_v25 }
 0x193   : > { %v6609_v6 = vpop.f32.mrf.mxu0  ;;  %v2279_v45 = vpop.f32.mrf.mxu1 }
 0x194   : > { %v8283_v26 = vadd.f32 %v2247_v38, %v1773_v33  ;;  %v1794_v9 = vadd.f32 %v6609_v6, %v8076_v29 }
 0x195   : > { %v1786_v52 = vpop.f32.mrf.mxu0  ;;  %v6698_v31 = vpop.f32.mrf.mxu1 }
 0x196   : > { %v8286_v36 = vadd.f32 %v6692_v21, %v1794_v9  ;;  %v1787_v20 = vadd.f32 %v1786_v52, %v8080_v3 }
 0x197   : > { %v6612_v56 = vpop.f32.mrf.mxu0  ;;  %v2295_v0 = vpop.f32.mrf.mxu1 }
 0x198   : > { %v8289_v19 = vadd.f32 %v2263_v46, %v1787_v20  ;;  %v1808_v4 = vadd.f32 %v6612_v56, %v8084_v18 }
 0x199   : > { %v1800_v23 = vpop.f32.mrf.mxu0  ;;  %v6701_v25 = vpop.f32.mrf.mxu1 }
 0x19a   : > { %v8292_v50 = vadd.f32 %v6695_v58, %v1808_v4  ;;  %v1801_v38 = vadd.f32 %v1800_v23, %v8088_v49 }
 0x19b   : > { %v6615_v33 = vpop.f32.mrf.mxu0  ;;  %v2311_v29 = vpop.f32.mrf.mxu1 }
 0x19c   : > { %v8295_v6 = vadd.f32 %v2279_v45, %v1801_v38  ;;  %v1822_v21 = vadd.f32 %v6615_v33, %v8092_v10 }
 0x19d   : > { %v1814_v9 = vpop.f32.mrf.mxu0  ;;  %v6704_v3 = vpop.f32.mrf.mxu1 }
 0x19e   : > { %v8298_v52 = vadd.f32 %v6698_v31, %v1822_v21  ;;  %v1815_v46 = vadd.f32 %v1814_v9, %v8096_v28 }
 0x19f   : > { %v6618_v20 = vpop.f32.mrf.mxu0  ;;  %v2327_v18 = vpop.f32.mrf.mxu1 }
 0x1a0   : > { %v8301_v56 = vadd.f32 %v2295_v0, %v1815_v46  ;;  %v1836_v58 = vadd.f32 %v6618_v20, %v8100_v27 }
 0x1a1   : > { %v1828_v4 = vpop.f32.mrf.mxu0  ;;  %v6707_v49 = vpop.f32.mrf.mxu1 }
 0x1a2   : > { %v8304_v23 = vadd.f32 %v6701_v25, %v1836_v58  ;;  %v1829_v45 = vadd.f32 %v1828_v4, %v8104_v54 }
 0x1a3   : > { %v6621_v38 = vpop.f32.mrf.mxu0  ;;  %v2343_v10 = vpop.f32.mrf.mxu1 }
 0x1a4   : > { %v8307_v33 = vadd.f32 %v2311_v29, %v1829_v45  ;;  %v1850_v31 = vadd.f32 %v6621_v38, %v8108_v35  ;;  %v10446_v29 = vld [vmem:[#allocation47_spill] sm:$0xff] }
 0x1a5   : > { %v1842_v21 = vpop.f32.mrf.mxu0  ;;  %v6710_v28 = vpop.f32.mrf.mxu1 }
 0x1a6   : > { %10442 = vst [vmem:[#allocation13_spill] sm:$0xff] %v8307_v33  ;;  %v8310_v9 = vadd.f32 %v6704_v3, %v1850_v31  ;;  %v1843_v0 = vadd.f32 %v1842_v21, %v8112_v51  ;;  %v10447_v3 = vld [vmem:[#allocation48_spill] sm:$0xff] }
 0x1a7   : > { %v6624_v46 = vpop.f32.mrf.mxu0  ;;  %v2359_v27 = vpop.f32.mrf.mxu1 }
 0x1a8   : > { %10443 = vst [vmem:[#allocation14_spill] sm:$0xff] %v8310_v9  ;;  %v8313_v20 = vadd.f32 %v2327_v18, %v1843_v0  ;;  %v1864_v25 = vadd.f32 %v6624_v46, %v8116_v5  ;;  %v10448_v18 = vld [vmem:[#allocation51_spill] sm:$0xff] }
 0x1a9   : > { %v1856_v58 = vpop.f32.mrf.mxu0  ;;  %v6713_v54 = vpop.f32.mrf.mxu1 }
 0x1aa   : > { %10444 = vst [vmem:[#allocation15_spill] sm:$0xff] %v8313_v20  ;;  %v8316_v4 = vadd.f32 %v6707_v49, %v1864_v25  ;;  %v1857_v45 = vadd.f32 %v1856_v58, %v10446_v29  ;;  %v10450_v49 = vld [vmem:[#allocation53_spill] sm:$0xff] }
 0x1ab   : > { %v6627_v33 = vpop.f32.mrf.mxu0  ;;  %v2375_v35 = vpop.f32.mrf.mxu1 }
 0x1ac   : > { %10445 = vst [vmem:[#allocation16_spill] sm:$0xff] %v8316_v4  ;;  %v8319_v38 = vadd.f32 %v2343_v10, %v1857_v45  ;;  %v1878_v31 = vadd.f32 %v6627_v33, %v10447_v3 }
 0x1ad   : > { %v1870_v9 = vpop.f32.mrf.mxu0  ;;  %v6716_v51 = vpop.f32.mrf.mxu1 }
 0x1ae   : > { %v8322_v21 = vadd.f32 %v6710_v28, %v1878_v31  ;;  %v1871_v0 = vadd.f32 %v1870_v9, %v10448_v18 }
 0x1af   : > { %v6630_v20 = vpop.f32.mrf.mxu0  ;;  %v2391_v5 = vpop.f32.mrf.mxu1 }
 0x1b0   : > { %v8325_v46 = vadd.f32 %v2359_v27, %v1871_v0  ;;  %v1892_v25 = vadd.f32 %v6630_v20, %v10450_v49  ;;  %v10454_v27 = vld [vmem:[#allocation60_spill] sm:$0xff] }
 0x1b1   : > { %v1884_v4 = vpop.f32.mrf.mxu0  ;;  %v6719_v58 = vpop.f32.mrf.mxu1  ;;  %v10455_v49 = vld [vmem:[#allocation56_spill] sm:$0xff] }
 0x1b2   : > { %10449 = vst [vmem:[#allocation17_spill] sm:$0xff] %v8325_v46  ;;  %v8328_v29 = vadd.f32 %v6713_v54, %v1892_v25  ;;  %v1885_v10 = vadd.f32 %v1884_v4, %v8136_v22  ;;  %v1471_v54 = vadd.f32 %v10455_v49, %v8155_v44  ;;  %v10461_v44 = vld [vmem:[#allocation6_spill] sm:$0xff] }
 0x1b3   : > { %v6633_v45 = vpop.f32.mrf.mxu0  ;;  %v2407_v33 = vpop.f32.mrf.mxu1 }
 0x1b4   : > { %10451 = vst [vmem:[#allocation18_spill] sm:$0xff] %v8328_v29  ;;  %v8331_v3 = vadd.f32 %v2375_v35, %v1885_v10  ;;  %v1906_v28 = vadd.f32 %v6633_v45, %v8142_v53 }
 0x1b5   : > { %v1898_v31 = vpop.f32.mrf.mxu0  ;;  %v6722_v9 = vpop.f32.mrf.mxu1 }
 0x1b6   : > { %10452 = vst [vmem:[#allocation19_spill] sm:$0xff] %v8331_v3  ;;  %v8334_v18 = vadd.f32 %v6716_v51, %v1906_v28  ;;  %v1899_v0 = vadd.f32 %v1898_v31, %v10454_v27  ;;  %v10458_v51 = vld [vmem:[#allocation7_spill] sm:$0xff]  ;;  %v10459_v28 = vld [vmem:[#allocation61_spill] sm:$0xff]  ;;  %v10460_v31 = vld [vmem:[#allocation40_spill] sm:$0xff] }
 0x1b7   : > { %v6636_v46 = vpop.f32.mrf.mxu0  ;;  %v2423_v20 = vpop.f32.mrf.mxu1  ;;  %v1563_v27 = vadd.f32 %v8174_v34, %v10460_v31  ;;  %v10464_v31 = vld [vmem:[#allocation43_spill] sm:$0xff] }
 0x1b8   : > { %10453 = vst [vmem:[#allocation20_spill] sm:$0xff] %v8334_v18  ;;  %v8339_v25 = vadd.f32 %v2391_v5, %v1899_v0  ;;  %v1920_v22 = vadd.f32 %v6636_v46, %v8152_v7  ;;  %v1483_v18 = vadd.f32 %v10459_v28, %v10458_v51 }
 0x1b9   : > { %v1912_v4 = vpop.f32.mrf.mxu0  ;;  %v6810_v35 = vpop.f32.mrf.mxu1 }
 0x1ba   : > { %10456 = vst [vmem:[#allocation21_spill] sm:$0xff] %v8339_v25  ;;  %v8342_v10 = vadd.f32 %v6719_v58, %v1920_v22  ;;  %v1913_v53 = vadd.f32 %v1912_v4, %v1471_v54  ;;  %v10462_v54 = vld [vmem:[#allocation62_spill] sm:$0xff] }
 0x1bb   : > { %v6639_v45 = vpop.f32.mrf.mxu0  ;;  %v2895_v3 = vpop.f32.mrf.mxu1  ;;  %v2008_v4 = vadd.f32 %v10462_v54, %v1563_v27 }
 0x1bc   : > { %10457 = vst [vmem:[#allocation22_spill] sm:$0xff] %v8342_v10  ;;  %v8348_v29 = vadd.f32 %v2407_v33, %v1913_v53  ;;  %v1934_v5 = vadd.f32 %v6639_v45, %v10461_v44  ;;  %v10463_v10 = vld [vmem:[#allocation41_spill] sm:$0xff] }
 0x1bd   : > { %v1926_v0 = vpop.f32.mrf.mxu0  ;;  %v6813_v49 = vpop.f32.mrf.mxu1  ;;  %v1577_v25 = vadd.f32 %v8185_v41, %v10463_v10 }
 0x1be   : > { %v8351_v7 = vadd.f32 %v6722_v9, %v1934_v5  ;;  %v1927_v46 = vadd.f32 %v1926_v0, %v1483_v18  ;;  %v1591_v9 = vadd.f32 %v8196_v60, %v10464_v31 }
 0x1bf   : > { %v6727_v58 = vpop.f32.mrf.mxu0  ;;  %v2907_v22 = vpop.f32.mrf.mxu1  ;;  %v2024_v5 = vadd.f32 %v8170_v59, %v1577_v25  ;;  %v10468_v25 = vld [vmem:[#allocation10_spill] sm:$0xff] }
 0x1c0   : > { %v8356_v51 = vadd.f32 %v2423_v20, %v1927_v46  ;;  %v2512_v34 = vadd.f32 %v6727_v58, %v8177_v8  ;;  %v10465_v58 = vld [vmem:[#allocation8_spill] sm:$0xff] }
 0x1c1   : > { %v2505_v33 = vpop.f32.mrf.mxu0  ;;  %v6816_v53 = vpop.f32.mrf.mxu1  ;;  %v2040_v54 = vadd.f32 %v10465_v58, %v1591_v9 }
 0x1c2   : > { %v2902_v28 = vadd.f32 %v6810_v35, %v2512_v34  ;;  %v2506_v45 = vadd.f32 %v2505_v33, %v2008_v4  ;;  %v10466_v34 = vld [vmem:[#allocation46_spill] sm:$0xff]  ;;  %v10467_v33 = vld [vmem:[#allocation11_spill] sm:$0xff] }
 0x1c3   : > { %v6730_v18 = vpop.f32.mrf.mxu0  ;;  %v2919_v44 = vpop.f32.mrf.mxu1  ;;  %v1605_v31 = vadd.f32 %v10467_v33, %v10466_v34 }
 0x1c4   : > { %v3218_v27 = vmax.f32 %v2902_v28, 0.0  ;;  %v2896_v0 = vadd.f32 %v2895_v3, %v2506_v45  ;;  %v2524_v41 = vadd.f32 %v6730_v18, %v8188_v43 }
 0x1c5   : > { %v2517_v20 = vpop.f32.mrf.mxu0  ;;  %v6819_v10 = vpop.f32.mrf.mxu1 }
 0x1c6   : > { %3273 = vst.msk [vmem:[#allocation2 + $0x8] sm:$0xff] %vm3271_vm2, %v3218_v27  ;;  %v3217_v8 = vmax.f32 %v2896_v0, 0.0  ;;  %v2914_v46 = vadd.f32 %v6813_v49, %v2524_v41  ;;  %v2518_v35 = vadd.f32 %v2517_v20, %v2024_v5  ;;  %v10469_v0 = vld [vmem:[#allocation9_spill] sm:$0xff] }
 0x1c7   : > { %v6733_v4 = vpop.f32.mrf.mxu0  ;;  %v2931_v60 = vpop.f32.mrf.mxu1  ;;  %v2056_v41 = vadd.f32 %v10469_v0, %v1605_v31 }
 0x1c8   : > { %3272 = vst.msk [vmem:[#allocation2] sm:$0xff] %vm3271_vm2, %v3217_v8  ;;  %v3220_v59 = vmax.f32 %v2914_v46, 0.0  ;;  %v2908_v3 = vadd.f32 %v2907_v22, %v2518_v35  ;;  %v2536_v43 = vadd.f32 %v6733_v4, %v10468_v25  ;;  %v10470_v8 = vld [vmem:[#allocation12_spill] sm:$0xff] }
 0x1c9   : > { %v2529_v28 = vpop.f32.mrf.mxu0  ;;  %v6822_v45 = vpop.f32.mrf.mxu1 }
 0x1ca   : > { %3275 = vst.msk [vmem:[#allocation2 + $0x18] sm:$0xff] %vm3271_vm2, %v3220_v59  ;;  %v3219_v18 = vmax.f32 %v2908_v3, 0.0  ;;  %v2926_v49 = vadd.f32 %v6816_v53, %v2536_v43  ;;  %v2530_v5 = vadd.f32 %v2529_v28, %v2040_v54 }
 0x1cb   : > { %v6736_v27 = vpop.f32.mrf.mxu0  ;;  %v2943_v9 = vpop.f32.mrf.mxu1 }
 0x1cc   : > { %3274 = vst.msk [vmem:[#allocation2 + $0x10] sm:$0xff] %vm3271_vm2, %v3219_v18  ;;  %v3222_v20 = vmax.f32 %v2926_v49, 0.0  ;;  %v2920_v58 = vadd.f32 %v2919_v44, %v2530_v5  ;;  %v2548_v46 = vadd.f32 %v6736_v27, %v10470_v8 }
 0x1cd   : > { %v2541_v22 = vpop.f32.mrf.mxu0  ;;  %v6825_v35 = vpop.f32.mrf.mxu1 }
 0x1ce   : > { %3277 = vst.msk [vmem:[#allocation2 + $0x28] sm:$0xff] %vm3271_vm2, %v3222_v20  ;;  %v3221_v4 = vmax.f32 %v2920_v58, 0.0  ;;  %v2938_v34 = vadd.f32 %v6819_v10, %v2548_v46  ;;  %v2542_v33 = vadd.f32 %v2541_v22, %v2056_v41 }
 0x1cf   : > { %v6739_v59 = vpop.f32.mrf.mxu0  ;;  %v2955_v53 = vpop.f32.mrf.mxu1 }
 0x1d0   : > { %3276 = vst.msk [vmem:[#allocation2 + $0x20] sm:$0xff] %vm3271_vm2, %v3221_v4  ;;  %v3224_v54 = vmax.f32 %v2938_v34, 0.0  ;;  %v2932_v3 = vadd.f32 %v2931_v60, %v2542_v33  ;;  %v2560_v31 = vadd.f32 %v6739_v59, %v8213_v61 }
 0x1d1   : > { %v2553_v25 = vpop.f32.mrf.mxu0  ;;  %v6828_v43 = vpop.f32.mrf.mxu1 }
 0x1d2   : > { %3279 = vst.msk [vmem:[#allocation2 + $0x38] sm:$0xff] %vm3271_vm2, %v3224_v54  ;;  %v3223_v44 = vmax.f32 %v2932_v3, 0.0  ;;  %v2950_v28 = vadd.f32 %v6822_v45, %v2560_v31  ;;  %v2554_v18 = vadd.f32 %v2553_v25, %v8217_v48 }
 0x1d3   : > { %v6742_v49 = vpop.f32.mrf.mxu0  ;;  %v2967_v5 = vpop.f32.mrf.mxu1 }
 0x1d4   : > { %3278 = vst.msk [vmem:[#allocation2 + $0x30] sm:$0xff] %vm3271_vm2, %v3223_v44  ;;  %v3226_v10 = vmax.f32 %v2950_v28, 0.0  ;;  %v2944_v27 = vadd.f32 %v2943_v9, %v2554_v18  ;;  %v2572_v0 = vadd.f32 %v6742_v49, %v8220_v12 }
 0x1d5   : > { %v2565_v41 = vpop.f32.mrf.mxu0  ;;  %v6831_v60 = vpop.f32.mrf.mxu1 }
 0x1d6   : > { %3281 = vst.msk [vmem:[#allocation2 + $0x48] sm:$0xff] %vm3271_vm2, %v3226_v10  ;;  %v3225_v61 = vmax.f32 %v2944_v27, 0.0  ;;  %v2962_v20 = vadd.f32 %v6825_v35, %v2572_v0  ;;  %v2566_v58 = vadd.f32 %v2565_v41, %v8223_v17 }
 0x1d7   : > { %v6745_v8 = vpop.f32.mrf.mxu0  ;;  %v2979_v45 = vpop.f32.mrf.mxu1 }
 0x1d8   : > { %3280 = vst.msk [vmem:[#allocation2 + $0x40] sm:$0xff] %vm3271_vm2, %v3225_v61  ;;  %v3228_v48 = vmax.f32 %v2962_v20, 0.0  ;;  %v2956_v46 = vadd.f32 %v2955_v53, %v2566_v58  ;;  %v2584_v22 = vadd.f32 %v6745_v8, %v8226_v16 }
 0x1d9   : > { %v2577_v4 = vpop.f32.mrf.mxu0  ;;  %v6834_v9 = vpop.f32.mrf.mxu1 }
 0x1da   : > { %3283 = vst.msk [vmem:[#allocation2 + $0x58] sm:$0xff] %vm3271_vm2, %v3228_v48  ;;  %v3227_v12 = vmax.f32 %v2956_v46, 0.0  ;;  %v2974_v34 = vadd.f32 %v6828_v43, %v2584_v22  ;;  %v2578_v33 = vadd.f32 %v2577_v4, %v8229_v13 }
 0x1db   : > { %v6748_v59 = vpop.f32.mrf.mxu0  ;;  %v2991_v35 = vpop.f32.mrf.mxu1 }
 0x1dc   : > { %3282 = vst.msk [vmem:[#allocation2 + $0x50] sm:$0xff] %vm3271_vm2, %v3227_v12  ;;  %v3230_v17 = vmax.f32 %v2974_v34, 0.0  ;;  %v2968_v54 = vadd.f32 %v2967_v5, %v2578_v33  ;;  %v2596_v3 = vadd.f32 %v6748_v59, %v8232_v37 }
 0x1dd   : > { %v2589_v31 = vpop.f32.mrf.mxu0  ;;  %v6837_v53 = vpop.f32.mrf.mxu1  ;;  %v3332_v41 = vld [vmem:[#allocation2 + $0x48] sm:$0xff] }
 0x1de   : > { %3285 = vst.msk [vmem:[#allocation2 + $0x68] sm:$0xff] %vm3271_vm2, %v3230_v17  ;;  %v3229_v16 = vmax.f32 %v2968_v54, 0.0  ;;  %v2986_v25 = vadd.f32 %v6831_v60, %v2596_v3  ;;  %v2590_v44 = vadd.f32 %v2589_v31, %v8235_v63  ;;  %v8397_v63 = vld [vmem:[%s9949_s3] ss:$0 sm:$0xff] }
 0x1df   : > { %v6751_v28 = vpop.f32.mrf.mxu0  ;;  %v3003_v43 = vpop.f32.mrf.mxu1  ;;  %v3369_v33 = vmul.f32 %v8397_v63, %v3332_v41 }
 0x1e0   : > { %3284 = vst.msk [vmem:[#allocation2 + $0x60] sm:$0xff] %vm3271_vm2, %v3229_v16  ;;  %v3232_v13 = vmax.f32 %v2986_v25, 0.0  ;;  %v2980_v18 = vadd.f32 %v2979_v45, %v2590_v44  ;;  %v2608_v49 = vadd.f32 %v6751_v28, %v8238_v24  ;;  %v8402_v24 = vld [vmem:[%s9949_s3 + $0x1] ss:$0 sm:$0xff] }
 0x1e1   : > { %v2601_v10 = vpop.f32.mrf.mxu0  ;;  %v6840_v5 = vpop.f32.mrf.mxu1 }
 0x1e2   : > { %3287 = vst.msk [vmem:[#allocation2 + $0x78] sm:$0xff] %vm3271_vm2, %v3232_v13  ;;  %v3231_v37 = vmax.f32 %v2980_v18, 0.0  ;;  %v2998_v27 = vadd.f32 %v6834_v9, %v2608_v49  ;;  %v2602_v0 = vadd.f32 %v2601_v10, %v8241_v11 }
 0x1e3   : > { %v6754_v60 = vpop.f32.mrf.mxu0  ;;  %v3015_v61 = vpop.f32.mrf.mxu1  ;;  %v3333_v20 = vld [vmem:[#allocation2 + $0x50] sm:$0xff] }
 0x1e4   : > { %v3434_v58 = vld [vmem:[#allocation2 + $0x51] sm:$0xff]  ;;  %3286 = vst.msk [vmem:[#allocation2 + $0x70] sm:$0xff] %vm3271_vm2, %v3231_v37  ;;  %v3234_v8 = vmax.f32 %v2998_v27, 0.0  ;;  %v2992_v45 = vadd.f32 %v2991_v35, %v2602_v0  ;;  %v2620_v11 = vadd.f32 %v6754_v60, %v8244_v2  ;;  %v3370_v48 = vmul.f32 %v8397_v63, %v3333_v20  ;;  %v3433_v22 = vld [vmem:[#allocation2 + $0x49] sm:$0xff]  ;;  %v8415_v2 = vld [vmem:[%s9949_s3 + $0x2] ss:$0 sm:$0xff] }
 0x1e5   : > { %v3535_v46 = vld [vmem:[#allocation2 + $0x52] sm:$0xff]  ;;  %v3534_v4 = vld [vmem:[#allocation2 + $0x4a] sm:$0xff]  ;;  %v2613_v9 = vpop.f32.mrf.mxu0  ;;  %v6843_v12 = vpop.f32.mrf.mxu1  ;;  %v3471_v34 = vmul.f32 %v8402_v24, %v3434_v58  ;;  %v3470_v59 = vmul.f32 %v8402_v24, %v3433_v22  ;;  %v8426_v27 = vld [vmem:[%s9949_s3 + $0x3] ss:$0 sm:$0xff] }
 0x1e6   : > { %3289 = vst.msk [vmem:[#allocation2 + $0x88] sm:$0xff] %vm3271_vm2, %v3234_v8  ;;  %v3233_v17 = vmax.f32 %v2992_v45, 0.0  ;;  %v3010_v54 = vadd.f32 %v6837_v53, %v2620_v11  ;;  %v2614_v35 = vadd.f32 %v2613_v9, %v8247_v39  ;;  %v3335_v3 = vld [vmem:[#allocation2 + $0x68] sm:$0xff]  ;;  %v3572_v18 = vmul.f32 %v8415_v2, %v3535_v46 }
 0x1e7   : > { %v6757_v31 = vpop.f32.mrf.mxu0  ;;  %v8417_v16 = vpop.f32.mrf.mxu1  ;;  %v3334_v25 = vld [vmem:[#allocation2 + $0x60] sm:$0xff]  ;;  %v3503_v13 = vadd.f32 %v3471_v34, %v3370_v48  ;;  %v3502_v49 = vadd.f32 %v3470_v59, %v3369_v33  ;;  %v3571_v53 = vmul.f32 %v8415_v2, %v3534_v4  ;;  %v3372_v58 = vmul.f32 %v8397_v63, %v3335_v3 }
 0x1e8   : > { %v3435_v44 = vld [vmem:[#allocation2 + $0x61] sm:$0xff]  ;;  %3288 = vst.msk [vmem:[#allocation2 + $0x80] sm:$0xff] %vm3271_vm2, %v3233_v17  ;;  %v3236_v39 = vmax.f32 %v3010_v54, 0.0  ;;  %v3004_v10 = vadd.f32 %v3003_v43, %v2614_v35  ;;  %v2632_v37 = vadd.f32 %v6757_v31, %v8250_v1  ;;  %v3371_v0 = vmul.f32 %v8397_v63, %v3334_v25 }
 0x1e9   : > { %v3536_v28 = vld [vmem:[#allocation2 + $0x62] sm:$0xff]  ;;  %v2625_v41 = vpop.f32.mrf.mxu0  ;;  %v6846_v60 = vpop.f32.mrf.mxu1  ;;  %v3336_v20 = vld [vmem:[#allocation2 + $0x78] sm:$0xff]  ;;  %v3472_v8 = vmul.f32 %v8402_v24, %v3435_v44  ;;  %v3604_v45 = vadd.f32 %v3572_v18, %v3503_v13  ;;  %v3674_v11 = vmul.f32 %v8426_v27, %v3335_v3  ;;  %v3603_v54 = vadd.f32 %v3571_v53, %v3502_v49 }
 0x1ea   : > { %3291 = vst.msk [vmem:[#allocation2 + $0x98] sm:$0xff] %vm3271_vm2, %v3236_v39  ;;  %v3235_v1 = vmax.f32 %v3004_v10, 0.0  ;;  %v3022_v43 = vadd.f32 %v6840_v5, %v2632_v37  ;;  %v2626_v48 = vadd.f32 %v2625_v41, %v8253_v47  ;;  %v3573_v46 = vmul.f32 %v8415_v2, %v3536_v28  ;;  %v8444_v47 = vld [vmem:[%s9949_s3 + $0x4] ss:$0 sm:$0xff]  ;;  %v8454_v10 = vld [vmem:[%s9949_s3 + $0x5] ss:$0 sm:$0xff] }
 0x1eb   : > { %v6760_v22 = vpop.f32.mrf.mxu0  ;;  %v8435_v4 = vpop.f32.mrf.mxu1  ;;  %v3373_v9 = vmul.f32 %v8397_v63, %v3336_v20  ;;  %v3436_v34 = vld [vmem:[#allocation2 + $0x69] sm:$0xff]  ;;  %v3504_v59 = vadd.f32 %v3472_v8, %v3371_v0  ;;  %v3675_v17 = vmul.f32 %v8426_v27, %v3336_v20  ;;  %v3706_v18 = vadd.f32 %v3674_v11, %v3604_v45 }
 0x1ec   : > { %v3537_v33 = vld [vmem:[#allocation2 + $0x6a] sm:$0xff]  ;;  %3290 = vst.msk [vmem:[#allocation2 + $0x90] sm:$0xff] %vm3271_vm2, %v3235_v1  ;;  %v3238_v35 = vmax.f32 %v3022_v43, 0.0  ;;  %v3016_v3 = vadd.f32 %v3015_v61, %v2626_v48  ;;  %v2644_v5 = vadd.f32 %v6760_v22, %v8256_v15  ;;  %v3473_v31 = vmul.f32 %v8402_v24, %v3436_v34 }
 0x1ed   : > { %v2637_v44 = vpop.f32.mrf.mxu0  ;;  %v6849_v28 = vpop.f32.mrf.mxu1  ;;  %v3605_v13 = vadd.f32 %v3573_v46, %v3504_v59  ;;  %v3775_v39 = vmul.f32 %v8444_v47, %v3436_v34  ;;  %v3673_v49 = vmul.f32 %v8426_v27, %v3334_v25  ;;  %v3574_v37 = vmul.f32 %v8415_v2, %v3537_v33 }
 0x1ee   : > { %3293 = vst.msk [vmem:[#allocation2 + $0xa8] sm:$0xff] %vm3271_vm2, %v3238_v35  ;;  %v3237_v61 = vmax.f32 %v3016_v3, 0.0  ;;  %v3034_v53 = vadd.f32 %v6843_v12, %v2644_v5  ;;  %v2638_v15 = vadd.f32 %v2637_v44, %v8259_v14  ;;  %v3505_v25 = vadd.f32 %v3473_v31, %v3372_v58 }
 0x1ef   : > { %v6763_v0 = vpop.f32.mrf.mxu0  ;;  %v8457_v41 = vpop.f32.mrf.mxu1  ;;  %v3337_v20 = vld [vmem:[#allocation2 + $0x80] sm:$0xff]  ;;  %v8459_v11 = vadd.f32 %v3675_v17, %v3605_v13  ;;  %v8461_v1 = vadd.f32 %v3775_v39, %v3706_v18  ;;  %v8464_v14 = vmul.f32 %v8454_v10, %v3537_v33  ;;  %v8473_v5 = vadd.f32 %v3673_v49, %v3603_v54 }
 0x1f0   : > { %v3438_v8 = vld [vmem:[#allocation2 + $0x81] sm:$0xff]  ;;  %3292 = vst.msk [vmem:[#allocation2 + $0xa0] sm:$0xff] %vm3271_vm2, %v3237_v61  ;;  %v3240_v12 = vmax.f32 %v3034_v53, 0.0  ;;  %v3028_v43 = vadd.f32 %v8417_v16, %v2638_v15  ;;  %v2656_v48 = vadd.f32 %v6763_v0, %v8262_v32  ;;  %v3374_v46 = vmul.f32 %v8397_v63, %v3337_v20  ;;  %v3437_v22 = vld [vmem:[#allocation2 + $0x79] sm:$0xff] }
 0x1f1   : > { %v3539_v45 = vld [vmem:[#allocation2 + $0x82] sm:$0xff]  ;;  %10471 = vst [vmem:[#allocation23_spill] sm:$0xff] %v8459_v11  ;;  %10472 = vst [vmem:[#allocation24_spill] sm:$0xff] %v8461_v1  ;;  %v3538_v34 = vld [vmem:[#allocation2 + $0x7a] sm:$0xff]  ;;  %v2649_v59 = vpop.f32.mrf.mxu0  ;;  %v6852_v58 = vpop.f32.mrf.mxu1  ;;  %v3475_v35 = vmul.f32 %v8402_v24, %v3438_v8  ;;  %v3474_v33 = vmul.f32 %v8402_v24, %v3437_v22  ;;  %v8494_v22 = vadd.f32 %v3574_v37, %v3505_v25 }
 0x1f2   : > { %10473 = vst [vmem:[#allocation25_spill] sm:$0xff] %v8464_v14  ;;  %v3339_v17 = vld [vmem:[#allocation2 + $0x98] sm:$0xff]  ;;  %v3576_v3 = vmul.f32 %v8415_v2, %v3539_v45  ;;  %10474 = vst [vmem:[#allocation26_spill] sm:$0xff] %v8473_v5  ;;  %v3239_v16 = vmax.f32 %v3028_v43, 0.0  ;;  %v3046_v31 = vadd.f32 %v6846_v60, %v2656_v48  ;;  %v2650_v32 = vadd.f32 %v2649_v59, %v8265_v40 }
 0x1f3   : > { %3295 = vst.msk [vmem:[#allocation2 + $0xb8] sm:$0xff] %vm3271_vm2, %v3240_v12  ;;  %v3575_v44 = vmul.f32 %v8415_v2, %v3538_v34  ;;  %v6766_v13 = vpop.f32.mrf.mxu0  ;;  %v3063_v18 = vpop.f32.mrf.mxu1  ;;  %v3376_v39 = vmul.f32 %v8397_v63, %v3339_v17  ;;  %v3338_v61 = vld [vmem:[#allocation2 + $0x90] sm:$0xff]  ;;  %v3507_v0 = vadd.f32 %v3475_v35, %v3374_v46  ;;  %v3678_v54 = vmul.f32 %v8426_v27, %v3339_v17 }
 0x1f4   : > { %v8479_v53 = vld [vmem:[#allocation2 + $0x91] sm:$0xff]  ;;  %v3506_v49 = vadd.f32 %v3474_v33, %v3373_v9  ;;  %3294 = vst.msk [vmem:[#allocation2 + $0xb0] sm:$0xff] %vm3271_vm2, %v3239_v16  ;;  %v3242_v60 = vmax.f32 %v3046_v31, 0.0  ;;  %v3040_v40 = vadd.f32 %v8435_v4, %v2650_v32  ;;  %v2668_v20 = vadd.f32 %v6766_v13, %v8268_v62  ;;  %10476 = vst [vmem:[#allocation28_spill] sm:$0xff] %v8494_v22 }
 0x1f5   : > { %v8481_v15 = vld [vmem:[#allocation2 + $0x92] sm:$0xff]  ;;  %v3375_v8 = vmul.f32 %v8397_v63, %v3338_v61  ;;  %v2661_v45 = vpop.f32.mrf.mxu0  ;;  %v6855_v12 = vpop.f32.mrf.mxu1  ;;  %v8488_v43 = vld [vmem:[#allocation2 + $0xa8] sm:$0xff]  ;;  %v3476_v48 = vmul.f32 %v8402_v24, %v8479_v53  ;;  %v3608_v9 = vadd.f32 %v3576_v3, %v3507_v0  ;;  %v3677_v37 = vmul.f32 %v8426_v27, %v3338_v61 }
 0x1f6   : > { %10475 = vst [vmem:[#allocation27_spill] sm:$0xff] %v8488_v43  ;;  %v3577_v46 = vmul.f32 %v8415_v2, %v8481_v15  ;;  %3297 = vst.msk [vmem:[#allocation2 + $0xc8] sm:$0xff] %vm3271_vm2, %v3242_v60  ;;  %v3241_v4 = vmax.f32 %v3040_v40, 0.0  ;;  %v3058_v34 = vadd.f32 %v6849_v28, %v2668_v20  ;;  %v2662_v62 = vadd.f32 %v2661_v45, %v8271_v55 }
 0x1f7   : > { %v3607_v59 = vadd.f32 %v3575_v44, %v3506_v49  ;;  %v6769_v17 = vpop.f32.mrf.mxu0  ;;  %v3075_v35 = vpop.f32.mrf.mxu1  ;;  %v3377_v33 = vmul.f32 %v8397_v63, %v8488_v43  ;;  %v3440_v16 = vld [vmem:[#allocation2 + $0x99] sm:$0xff]  ;;  %v3508_v32 = vadd.f32 %v3476_v48, %v3375_v8  ;;  %v3679_v3 = vmul.f32 %v8426_v27, %v8488_v43 }
 0x1f8   : > { %v3541_v31 = vld [vmem:[#allocation2 + $0x9a] sm:$0xff]  ;;  %3296 = vst.msk [vmem:[#allocation2 + $0xc0] sm:$0xff] %vm3271_vm2, %v3241_v4  ;;  %v3244_v25 = vmax.f32 %v3058_v34, 0.0  ;;  %v3052_v28 = vadd.f32 %v8457_v41, %v2662_v62  ;;  %v2680_v55 = vadd.f32 %v6769_v17, %v8274_v30  ;;  %v3477_v44 = vmul.f32 %v8402_v24, %v3440_v16 }
 0x1f9   : > { %v2673_v13 = vpop.f32.mrf.mxu0  ;;  %v6858_v0 = vpop.f32.mrf.mxu1  ;;  %v3578_v49 = vmul.f32 %v8415_v2, %v3541_v31  ;;  %v3609_v60 = vadd.f32 %v3577_v46, %v3508_v32  ;;  %v3710_v40 = vadd.f32 %v3678_v54, %v3608_v9  ;;  %v3779_v20 = vmul.f32 %v8444_v47, %v3440_v16 }
 0x1fa   : > { %3299 = vst.msk [vmem:[#allocation2 + $0xd8] sm:$0xff] %vm3271_vm2, %v3244_v25  ;;  %v3243_v61 = vmax.f32 %v3052_v28, 0.0  ;;  %v3070_v8 = vadd.f32 %v6852_v58, %v2680_v55  ;;  %v2674_v45 = vadd.f32 %v2673_v13, %v8277_v57  ;;  %v8512_v41 = vmul.f32 %v8454_v10, %v3541_v31 }
 0x1fb   : > { %v6772_v30 = vpop.f32.mrf.mxu0  ;;  %v8514_v48 = vpop.f32.mrf.mxu1  ;;  %v8516_v4 = vld [vmem:[#allocation2 + $0xb0] sm:$0xff]  ;;  %v3509_v54 = vadd.f32 %v3477_v44, %v3376_v39  ;;  %v8522_v9 = vadd.f32 %v3679_v3, %v3609_v60  ;;  %v8524_v62 = vadd.f32 %v3779_v20, %v3710_v40  ;;  %v8526_v58 = vadd.f32 %v3677_v37, %v3607_v59 }
 0x1fc   : > { %v8518_v34 = vld [vmem:[#allocation2 + $0xb1] sm:$0xff]  ;;  %3298 = vst.msk [vmem:[#allocation2 + $0xd0] sm:$0xff] %vm3271_vm2, %v3243_v61  ;;  %v3246_v57 = vmax.f32 %v3070_v8, 0.0  ;;  %v3064_v17 = vadd.f32 %v3063_v18, %v2674_v45  ;;  %v2692_v16 = vadd.f32 %v6772_v30, %v8280_v42  ;;  %v3378_v31 = vmul.f32 %v8397_v63, %v8516_v4  ;;  %v8532_v32 = vld [vmem:[#allocation2 + $0xa9] sm:$0xff] }
 0x1fd   : > { %v8520_v46 = vld [vmem:[#allocation2 + $0xb2] sm:$0xff]  ;;  %v8534_v25 = vld [vmem:[#allocation2 + $0xaa] sm:$0xff]  ;;  %v2685_v39 = vpop.f32.mrf.mxu0  ;;  %v6861_v3 = vpop.f32.mrf.mxu1  ;;  %v3479_v28 = vmul.f32 %v8402_v24, %v8518_v34  ;;  %v3478_v42 = vmul.f32 %v8402_v24, %v8532_v32  ;;  %v3610_v14 = vadd.f32 %v3578_v49, %v3509_v54  ;;  %v3781_v22 = vmul.f32 %v8444_v47, %v8518_v34 }
 0x1fe   : > { %v3580_v59 = vmul.f32 %v8415_v2, %v8520_v46  ;;  %v8540_v37 = vld [vmem:[#allocation2 + $0xc8] sm:$0xff]  ;;  %v3579_v18 = vmul.f32 %v8415_v2, %v8534_v25  ;;  %3301 = vst.msk [vmem:[#allocation2 + $0xe8] sm:$0xff] %vm3271_vm2, %v3246_v57  ;;  %v3245_v55 = vmax.f32 %v3064_v17, 0.0  ;;  %v3082_v44 = vadd.f32 %v6855_v12, %v2692_v16 }
 0x1ff   : > { %v2686_v13 = vadd.f32 %v2685_v39, %v8283_v26  ;;  %v3682_v60 = vmul.f32 %v8426_v27, %v8540_v37  ;;  %v6775_v40 = vpop.f32.mrf.mxu0  ;;  %v3099_v20 = vpop.f32.mrf.mxu1  ;;  %v3511_v61 = vadd.f32 %v3479_v28, %v3378_v31  ;;  %v3510_v8 = vadd.f32 %v3478_v42, %v3377_v33  ;;  %v8550_v45 = vld [vmem:[#allocation2 + $0xc0] sm:$0xff] }
 0x200   : > { %v8552_v30 = vld [vmem:[#allocation2 + $0xc1] sm:$0xff]  ;;  %v3680_v57 = vmul.f32 %v8426_v27, %v8516_v4  ;;  %3300 = vst.msk [vmem:[#allocation2 + $0xe0] sm:$0xff] %vm3271_vm2, %v3245_v55  ;;  %v3248_v26 = vmax.f32 %v3082_v44, 0.0  ;;  %v2704_v17 = vadd.f32 %v6775_v40, %v8286_v36  ;;  %v3681_v16 = vmul.f32 %v8426_v27, %v8550_v45 }
 0x201   : > { %v8554_v5 = vld [vmem:[#allocation2 + $0xc2] sm:$0xff]  ;;  %v3076_v12 = vadd.f32 %v3075_v35, %v2686_v13  ;;  %v2697_v33 = vpop.f32.mrf.mxu0  ;;  %v6864_v31 = vpop.f32.mrf.mxu1  ;;  %v3612_v49 = vadd.f32 %v3580_v59, %v3511_v61  ;;  %v3611_v54 = vadd.f32 %v3579_v18, %v3510_v8  ;;  %v3782_v28 = vmul.f32 %v8444_v47, %v8552_v30  ;;  %v3948_v42 = vld [vmem:[#allocation2 + $0xd8] sm:$0xff] }
 0x202   : > { %v8565_v39 = vld [vmem:[%s9949_s3 + $0x6] ss:$0 sm:$0xff]  ;;  %v3883_v35 = vmul.f32 %v8454_v10, %v8554_v5  ;;  %3303 = vst.msk [vmem:[#allocation2 + $0xf8] sm:$0xff] %vm3271_vm2, %v3248_v26  ;;  %v3094_v55 = vadd.f32 %v6858_v0, %v2704_v17  ;;  %v2698_v44 = vadd.f32 %v2697_v33, %v8289_v19  ;;  %v3712_v8 = vadd.f32 %v3680_v57, %v3610_v14 }
 0x203   : > { %v3247_v36 = vmax.f32 %v3076_v12, 0.0  ;;  %v3985_v13 = vmul.f32 %v8565_v39, %v3948_v42  ;;  %v6778_v40 = vpop.f32.mrf.mxu0  ;;  %v3111_v1 = vpop.f32.mrf.mxu1  ;;  %v3714_v11 = vadd.f32 %v3682_v60, %v3612_v49  ;;  %v3746_v59 = vld [vmem:[#allocation2 + $0xc9] sm:$0xff]  ;;  %v3713_v61 = vadd.f32 %v3681_v16, %v3611_v54 }
 0x204   : > { %v3847_v18 = vld [vmem:[#allocation2 + $0xca] sm:$0xff]  ;;  %v3250_v43 = vmax.f32 %v3094_v55, 0.0  ;;  %v3088_v26 = vadd.f32 %v8514_v48, %v2698_v44  ;;  %v2716_v0 = vadd.f32 %v6778_v40, %v8292_v50  ;;  %v3783_v19 = vmul.f32 %v8444_v47, %v3746_v59  ;;  %v8588_v50 = vld [vmem:[%s9949_s3 + $0x7] ss:$0 sm:$0xff] }
 0x205   : > { %3302 = vst.msk [vmem:[#allocation2 + $0xf0] sm:$0xff] %vm3271_vm2, %v3247_v36  ;;  %v2709_v12 = vpop.f32.mrf.mxu0  ;;  %v6867_v17 = vpop.f32.mrf.mxu1  ;;  %v3884_v60 = vmul.f32 %v8454_v10, %v3847_v18  ;;  %v3814_v33 = vadd.f32 %v3782_v28, %v3713_v61  ;;  %v3813_v49 = vadd.f32 %v3781_v22, %v3712_v8  ;;  %v3882_v14 = vmul.f32 %v8454_v10, %v8520_v46 }
 0x206   : > { %3305 = vst.msk [vmem:[#allocation2 + $0x108] sm:$0xff] %vm3271_vm2, %v3250_v43  ;;  %v3249_v57 = vmax.f32 %v3088_v26, 0.0  ;;  %v3106_v16 = vadd.f32 %v6861_v3, %v2716_v0  ;;  %v2710_v54 = vadd.f32 %v2709_v12, %v8295_v6  ;;  %v3815_v48 = vadd.f32 %v3783_v19, %v3714_v11  ;;  %v8598_v11 = vld [vmem:[%s9949_s3 + $0x8] ss:$0 sm:$0xff] }
 0x207   : > { %v6781_v42 = vpop.f32.mrf.mxu0  ;;  %v3123_v36 = vpop.f32.mrf.mxu1  ;;  %v3949_v55 = vld [vmem:[#allocation2 + $0xe0] sm:$0xff]  ;;  %v3915_v44 = vadd.f32 %v3883_v35, %v3814_v33  ;;  %v3914_v40 = vadd.f32 %v3882_v14, %v3813_v49  ;;  %v3984_v43 = vmul.f32 %v8565_v39, %v8540_v37  ;;  %v4085_v3 = vmul.f32 %v8588_v50, %v3746_v59 }
 0x208   : > { %v4050_v28 = vld [vmem:[#allocation2 + $0xe1] sm:$0xff]  ;;  %3304 = vst.msk [vmem:[#allocation2 + $0x100] sm:$0xff] %vm3271_vm2, %v3249_v57  ;;  %v3252_v6 = vmax.f32 %v3106_v16, 0.0  ;;  %v3100_v61 = vadd.f32 %v3099_v20, %v2710_v54  ;;  %v2728_v8 = vadd.f32 %v6781_v42, %v8298_v52  ;;  %v3916_v26 = vadd.f32 %v3884_v60, %v3815_v48  ;;  %v4049_v0 = vld [vmem:[#allocation2 + $0xd9] sm:$0xff] }
 0x209   : > { %v4151_v22 = vld [vmem:[#allocation2 + $0xe2] sm:$0xff]  ;;  %v4150_v35 = vld [vmem:[#allocation2 + $0xda] sm:$0xff]  ;;  %v2721_v19 = vpop.f32.mrf.mxu0  ;;  %v6870_v12 = vpop.f32.mrf.mxu1  ;;  %v3986_v37 = vmul.f32 %v8565_v39, %v3949_v55  ;;  %v4087_v59 = vmul.f32 %v8588_v50, %v4050_v28  ;;  %v4017_v49 = vadd.f32 %v3985_v13, %v3915_v44  ;;  %v4086_v57 = vmul.f32 %v8588_v50, %v4049_v0 }
 0x20a   : > { %v4188_v33 = vmul.f32 %v8598_v11, %v4151_v22  ;;  %3307 = vst.msk [vmem:[#allocation2 + $0x118] sm:$0xff] %vm3271_vm2, %v3252_v6  ;;  %v3251_v52 = vmax.f32 %v3100_v61, 0.0  ;;  %v3118_v20 = vadd.f32 %v6864_v31, %v2728_v8  ;;  %v2722_v14 = vadd.f32 %v2721_v19, %v8301_v56  ;;  %v8619_v19 = vld [vmem:[%s9949_s3 + $0x9] ss:$0 sm:$0xff] }
 0x20b   : > { %v6784_v60 = vpop.f32.mrf.mxu0  ;;  %v3135_v16 = vpop.f32.mrf.mxu1  ;;  %v4018_v54 = vadd.f32 %v3986_v37, %v3916_v26  ;;  %v4187_v48 = vmul.f32 %v8598_v11, %v4150_v35  ;;  %v4016_v42 = vadd.f32 %v3984_v43, %v3914_v40  ;;  %v4186_v55 = vmul.f32 %v8598_v11, %v3847_v18  ;;  %v10477_v43 = vld [vmem:[#allocation13_spill] sm:$0xff] }
 0x20c   : > { %3306 = vst.msk [vmem:[#allocation2 + $0x110] sm:$0xff] %vm3271_vm2, %v3251_v52  ;;  %v3254_v28 = vmax.f32 %v3118_v20, 0.0  ;;  %v3112_v13 = vadd.f32 %v3111_v1, %v2722_v14  ;;  %v2740_v22 = vadd.f32 %v6784_v60, %v8304_v23  ;;  %v4118_v44 = vadd.f32 %v4086_v57, %v4017_v49  ;;  %v10478_v20 = vld [vmem:[#allocation14_spill] sm:$0xff] }
 0x20d   : > { %v2733_v31 = vpop.f32.mrf.mxu0  ;;  %v6873_v6 = vpop.f32.mrf.mxu1  ;;  %v4119_v56 = vadd.f32 %v4087_v59, %v4018_v54  ;;  %v4117_v61 = vadd.f32 %v4085_v3, %v4016_v42  ;;  %v3780_v8 = vmul.f32 %v8444_v47, %v8532_v32  ;;  %v3881_v26 = vmul.f32 %v8454_v10, %v8534_v25 }
 0x20e   : > { %3309 = vst.msk [vmem:[#allocation2 + $0x128] sm:$0xff] %vm3271_vm2, %v3254_v28  ;;  %v3253_v18 = vmax.f32 %v3112_v13, 0.0  ;;  %v3130_v40 = vadd.f32 %v6867_v17, %v2740_v22  ;;  %v2734_v0 = vadd.f32 %v2733_v31, %v10477_v43  ;;  %v4219_v1 = vadd.f32 %v4187_v48, %v4118_v44  ;;  %v10479_v28 = vld [vmem:[#allocation15_spill] sm:$0xff] }
 0x20f   : > { %v6787_v35 = vpop.f32.mrf.mxu0  ;;  %v3147_v23 = vpop.f32.mrf.mxu1  ;;  %v4220_v3 = vadd.f32 %v4188_v33, %v4119_v56  ;;  %v4218_v37 = vadd.f32 %v4186_v55, %v4117_v61  ;;  %v3812_v59 = vadd.f32 %v3780_v8, %v8522_v9  ;;  %v3983_v49 = vmul.f32 %v8565_v39, %v8550_v45 }
 0x210   : > { %3308 = vst.msk [vmem:[#allocation2 + $0x120] sm:$0xff] %vm3271_vm2, %v3253_v18  ;;  %v3256_v17 = vmax.f32 %v3130_v40, 0.0  ;;  %v3124_v52 = vadd.f32 %v3123_v36, %v2734_v0  ;;  %v2752_v14 = vadd.f32 %v6787_v35, %v10478_v20  ;;  %v4256_v57 = vadd.f32 %v8619_v19, %v4219_v1 }
 0x211   : > { %v2745_v60 = vpop.f32.mrf.mxu0  ;;  %v6876_v54 = vpop.f32.mrf.mxu1  ;;  %v4257_v48 = vadd.f32 %v8619_v19, %v4220_v3  ;;  %v4255_v33 = vadd.f32 %v8619_v19, %v4218_v37  ;;  %v3913_v42 = vadd.f32 %v3881_v26, %v3812_v59  ;;  %v4084_v9 = vmul.f32 %v8588_v50, %v8552_v30  ;;  %v10480_v30 = vld [vmem:[#allocation16_spill] sm:$0xff] }
 0x212   : > { %3311 = vst.msk [vmem:[#allocation2 + $0x138] sm:$0xff] %vm3271_vm2, %v3256_v17  ;;  %v3255_v45 = vmax.f32 %v3124_v52, 0.0  ;;  %v3142_v55 = vadd.f32 %v6870_v12, %v2752_v14  ;;  %v2746_v36 = vadd.f32 %v2745_v60, %v10479_v28  ;;  %v4288_v13 = vmax.f32 %v4256_v57, 0.0 }
 0x213   : > { %v6790_v22 = vpop.f32.mrf.mxu0  ;;  %v3159_v44 = vpop.f32.mrf.mxu1  ;;  %v4289_v31 = vmax.f32 %v4257_v48, 0.0  ;;  %v4287_v56 = vmax.f32 %v4255_v33, 0.0  ;;  %v4015_v61 = vadd.f32 %v3983_v49, %v3913_v42  ;;  %v4185_v8 = vmul.f32 %v8598_v11, %v8554_v5 }
 0x214   : > { %3310 = vst.msk [vmem:[#allocation2 + $0x130] sm:$0xff] %vm3271_vm2, %v3255_v45  ;;  %v3258_v26 = vmax.f32 %v3142_v55, 0.0  ;;  %v3136_v18 = vadd.f32 %v3135_v16, %v2746_v36  ;;  %v2764_v40 = vadd.f32 %v6790_v22, %v10480_v30  ;;  %v4357_v43 = vsel %vm3271_vm2, %v4288_v13, 0 }
 0x215   : > { %v2757_v12 = vpop.f32.mrf.mxu0  ;;  %v6879_v0 = vpop.f32.mrf.mxu1  ;;  %v4360_v1 = vsel %vm3271_vm2, %v4289_v31, 0  ;;  %v8639_v35 = vand.u32 4294901760, %v4357_v43  ;;  %v4354_v3 = vsel %vm3271_vm2, %v4287_v56, 0  ;;  %v4116_v37 = vadd.f32 %v4084_v9, %v4015_v61 }
 0x216   : > { %3313 = vst.msk [vmem:[#allocation2 + $0x148] sm:$0xff] %vm3271_vm2, %v3258_v26  ;;  %v3257_v5 = vmax.f32 %v3136_v18, 0.0  ;;  %v3154_v59 = vadd.f32 %v6873_v6, %v2764_v40  ;;  %v2758_v49 = vadd.f32 %v2757_v12, %v8319_v38  ;;  %v8644_v16 = vand.u32 4294901760, %v4360_v1  ;;  %v10489_v18 = vld [vmem:[#allocation18_spill] sm:$0xff] }
 0x217   : > { %10481 = vst [vmem:[#allocation29_spill] sm:$0xff] %v8639_v35  ;;  %v6793_v17 = vpop.f32.mrf.mxu0  ;;  %v3171_v52 = vpop.f32.mrf.mxu1  ;;  %v8647_v20 = vsub.f32 %v4357_v43, %v8639_v35  ;;  %v8649_v14 = vand.u32 4294901760, %v4354_v3  ;;  %v4217_v57 = vadd.f32 %v4185_v8, %v4116_v37  ;;  %v3912_v60 = vadd.f32 %v8512_v41, %v8524_v62 }
 0x218   : > { %10482 = vst [vmem:[#allocation30_spill] sm:$0xff] %v8644_v16  ;;  %3312 = vst.msk [vmem:[#allocation2 + $0x140] sm:$0xff] %vm3271_vm2, %v3257_v5  ;;  %v3260_v48 = vmax.f32 %v3154_v59, 0.0  ;;  %v3148_v33 = vadd.f32 %v3147_v23, %v2758_v49  ;;  %v2776_v6 = vadd.f32 %v6793_v17, %v8322_v21  ;;  %v8656_v38 = vsub.f32 %v4360_v1, %v8644_v16  ;;  %v10487_v21 = vld [vmem:[#allocation17_spill] sm:$0xff]  ;;  %v10491_v5 = vld [vmem:[#allocation19_spill] sm:$0xff] }
 0x219   : > { %10483 = vst [vmem:[#allocation31_spill] sm:$0xff] %v8647_v20  ;;  %10484 = vst [vmem:[#allocation32_spill] sm:$0xff] %v8649_v14  ;;  %v2769_v42 = vpop.f32.mrf.mxu0  ;;  %v6882_v9 = vpop.f32.mrf.mxu1  ;;  %v8659_v45 = vsub.f32 %v4354_v3, %v8649_v14  ;;  %v4254_v55 = vadd.f32 %v8619_v19, %v4217_v57  ;;  %v10097_v28 = vand.u32 4294901760, %v8647_v20  ;;  %v3982_v41 = vmul.f32 %v8565_v39, %v8516_v4  ;;  %v8692_v17 = vld [vmem:[#allocation2 + $0x138] sm:$0xff] }
 0x21a   : > { %10485 = vst [vmem:[#allocation33_spill] sm:$0xff] %v8656_v38  ;;  %3315 = vst.msk [vmem:[#allocation2 + $0x158] sm:$0xff] %vm3271_vm2, %v3260_v48  ;;  %v3259_v62 = vmax.f32 %v3148_v33, 0.0  ;;  %v3166_v23 = vadd.f32 %v6876_v54, %v2776_v6  ;;  %v2770_v36 = vadd.f32 %v2769_v42, %v10487_v21  ;;  %v10099_v13 = vand.u32 4294901760, %v8656_v38 }
 0x21b   : > { %10486 = vst [vmem:[#allocation34_spill] sm:$0xff] %v8659_v45  ;;  %v6796_v22 = vpop.f32.mrf.mxu0  ;;  %v3183_v31 = vpop.f32.mrf.mxu1  ;;  %v4286_v56 = vmax.f32 %v4254_v55, 0.0  ;;  %v8671_v61 = vsub.f32 %v8647_v20, %v10097_v28  ;;  %v4014_v8 = vadd.f32 %v3982_v41, %v3912_v60  ;;  %v4083_v4 = vmul.f32 %v8588_v50, %v8518_v34  ;;  %10492 = vst [vmem:[#allocation37_spill] sm:$0xff] %v8692_v17 }
 0x21c   : > { %3314 = vst.msk [vmem:[#allocation2 + $0x150] sm:$0xff] %vm3271_vm2, %v3259_v62  ;;  %v3262_v26 = vmax.f32 %v3166_v23, 0.0  ;;  %v3160_v54 = vadd.f32 %v3159_v44, %v2770_v36  ;;  %v2788_v30 = vadd.f32 %v6796_v22, %v10489_v18  ;;  %v8680_v40 = vsub.f32 %v8656_v38, %v10099_v13  ;;  %v10494_v62 = vld [vmem:[#allocation20_spill] sm:$0xff]  ;;  %v10496_v18 = vld [vmem:[#allocation21_spill] sm:$0xff] }
 0x21d   : > { %10488 = vst [vmem:[#allocation35_spill] sm:$0xff] %v8671_v61  ;;  %v2781_v43 = vpop.f32.mrf.mxu0  ;;  %v4351_v12 = vsel %vm3271_vm2, %v4286_v56, 0  ;;  %v4115_v1 = vadd.f32 %v4083_v4, %v4014_v8  ;;  %v4184_v3 = vmul.f32 %v8598_v11, %v8520_v46  ;;  %v8687_v34 = vmul.f32 %v8444_v47, %v8479_v53  ;;  %v6885_v60 = vpop.f32.mrf.mxu1 }
 0x21e   : > { %10490 = vst [vmem:[#allocation36_spill] sm:$0xff] %v8680_v40  ;;  %3317 = vst.msk [vmem:[#allocation2 + $0x168] sm:$0xff] %vm3271_vm2, %v3262_v26  ;;  %v3261_v44 = vmax.f32 %v3160_v54, 0.0  ;;  %v3178_v37 = vadd.f32 %v6879_v0, %v2788_v30  ;;  %v2782_v59 = vadd.f32 %v2781_v43, %v10491_v5  ;;  %v8695_v33 = vand.u32 4294901760, %v4351_v12 }
 0x21f   : > { %v6799_v57 = vpop.f32.mrf.mxu0  ;;  %v8697_v46 = vld [vmem:[#allocation2 + $0x140] sm:$0xff]  ;;  %v4216_v42 = vadd.f32 %v4184_v3, %v4115_v1  ;;  %v10098_v0 = vand.u32 4294901760, %v8659_v45  ;;  %v8718_v26 = vmul.f32 %v8397_v63, %v8692_v17  ;;  %v3195_v1 = vpop.f32.mrf.mxu1 }
 0x220   : > { %10493 = vst [vmem:[#allocation38_spill] sm:$0xff] %v8695_v33  ;;  %v8699_v53 = vld [vmem:[#allocation2 + $0x141] sm:$0xff]  ;;  %3316 = vst.msk [vmem:[#allocation2 + $0x160] sm:$0xff] %vm3271_vm2, %v3261_v44  ;;  %v3264_v55 = vmax.f32 %v3178_v37, 0.0  ;;  %v3172_v41 = vadd.f32 %v3171_v52, %v2782_v59  ;;  %v2800_v23 = vadd.f32 %v6799_v57, %v10494_v62  ;;  %v3390_v21 = vmul.f32 %v8397_v63, %v8697_v46 }
 0x221   : > { %v8701_v6 = vld [vmem:[#allocation2 + $0x142] sm:$0xff]  ;;  %v2793_v36 = vpop.f32.mrf.mxu0  ;;  %v8708_v22 = vld [vmem:[#allocation2 + $0x158] sm:$0xff]  ;;  %v8711_v56 = vsub.f32 %v4351_v12, %v8695_v33  ;;  %v3491_v8 = vmul.f32 %v8402_v24, %v8699_v53  ;;  %v4253_v4 = vadd.f32 %v8619_v19, %v4216_v42 }
 0x222   : > { %3319 = vst.msk [vmem:[#allocation2 + $0x178] sm:$0xff] %vm3271_vm2, %v3264_v55  ;;  %v3263_v52 = vmax.f32 %v3172_v41, 0.0  ;;  %v3190_v54 = vadd.f32 %v6882_v9, %v2800_v23  ;;  %v2794_v30 = vadd.f32 %v2793_v36, %v10496_v18  ;;  %v3592_v43 = vmul.f32 %v8415_v2, %v8701_v6  ;;  %v10497_v41 = vld [vmem:[#allocation22_spill] sm:$0xff] }
 0x223   : > { %10495 = vst [vmem:[#allocation39_spill] sm:$0xff] %v8711_v56  ;;  %v6802_v12 = vpop.f32.mrf.mxu0  ;;  %v3392_v3 = vmul.f32 %v8397_v63, %v8708_v22  ;;  %v8726_v44 = vld [vmem:[#allocation2 + $0x150] sm:$0xff]  ;;  %v3523_v59 = vadd.f32 %v3491_v8, %v3390_v21  ;;  %v3694_v9 = vmul.f32 %v8426_v27, %v8708_v22  ;;  %v4285_v57 = vmax.f32 %v4253_v4, 0.0 }
 0x224   : > { %v8728_v37 = vld [vmem:[#allocation2 + $0x151] sm:$0xff]  ;;  %3318 = vst.msk [vmem:[#allocation2 + $0x170] sm:$0xff] %vm3271_vm2, %v3263_v52  ;;  %v3266_v42 = vmax.f32 %v3190_v54, 0.0  ;;  %v3184_v55 = vadd.f32 %v3183_v31, %v2794_v30  ;;  %v2812_v62 = vadd.f32 %v6802_v12, %v10497_v41  ;;  %v3391_v23 = vmul.f32 %v8397_v63, %v8726_v44  ;;  %v6888_v41 = vpop.f32.mrf.mxu1 }
 0x225   : > { %v8730_v5 = vld [vmem:[#allocation2 + $0x152] sm:$0xff]  ;;  %v2805_v36 = vpop.f32.mrf.mxu0  ;;  %v8738_v18 = vld [vmem:[#allocation2 + $0x168] sm:$0xff]  ;;  %v3492_v28 = vmul.f32 %v8402_v24, %v8728_v37  ;;  %v3624_v21 = vadd.f32 %v3592_v43, %v3523_v59  ;;  %v4348_v8 = vsel %vm3271_vm2, %v4285_v57, 0  ;;  %v8746_v4 = vsub.f32 %v8659_v45, %v10098_v0 }
 0x226   : > { %3321 = vst.msk [vmem:[#allocation2 + $0x188] sm:$0xff] %vm3271_vm2, %v3266_v42  ;;  %v3265_v31 = vmax.f32 %v3184_v55, 0.0  ;;  %v3202_v52 = vadd.f32 %v6885_v60, %v2812_v62  ;;  %v2806_v54 = vadd.f32 %v2805_v36, %v8348_v29  ;;  %v3593_v30 = vmul.f32 %v8415_v2, %v8730_v5 }
 0x227   : > { %10498 = vst [vmem:[#allocation42_spill] sm:$0xff] %v8746_v4  ;;  %v6805_v12 = vpop.f32.mrf.mxu0  ;;  %v3393_v43 = vmul.f32 %v8397_v63, %v8738_v18  ;;  %v8754_v59 = vld [vmem:[#allocation2 + $0x159] sm:$0xff]  ;;  %v3524_v0 = vadd.f32 %v3492_v28, %v3391_v23  ;;  %v3695_v42 = vmul.f32 %v8426_v27, %v8738_v18  ;;  %v8760_v55 = vand.u32 4294901760, %v4348_v8 }
 0x228   : > { %v8756_v57 = vld [vmem:[#allocation2 + $0x15a] sm:$0xff]  ;;  %3320 = vst.msk [vmem:[#allocation2 + $0x180] sm:$0xff] %vm3271_vm2, %v3265_v31  ;;  %v3268_v29 = vmax.f32 %v3202_v52, 0.0  ;;  %v3196_v60 = vadd.f32 %v3195_v1, %v2806_v54  ;;  %v2824_v62 = vadd.f32 %v6805_v12, %v8351_v7  ;;  %v3493_v36 = vmul.f32 %v8402_v24, %v8754_v59  ;;  %v3207_v7 = vpop.f32.mrf.mxu1 }
 0x229   : > { %10499 = vst [vmem:[#allocation44_spill] sm:$0xff] %v8756_v57  ;;  %10500 = vst [vmem:[#allocation45_spill] sm:$0xff] %v8760_v55  ;;  %v2817_v13 = vpop.f32.mrf.mxu0  ;;  %v3594_v49 = vmul.f32 %v8415_v2, %v8756_v57  ;;  %v3625_v48 = vadd.f32 %v3593_v30, %v3524_v0  ;;  %v3726_v28 = vadd.f32 %v3694_v9, %v3624_v21 }
 0x22a   : > { %v3795_v23 = vmul.f32 %v8444_v47, %v8754_v59  ;;  %3323 = vst.msk [vmem:[#allocation2 + $0x198] sm:$0xff] %vm3271_vm2, %v3268_v29  ;;  %v3267_v45 = vmax.f32 %v3196_v60, 0.0  ;;  %v3214_v31 = vadd.f32 %v6888_v41, %v2824_v62  ;;  %v2818_v1 = vadd.f32 %v2817_v13, %v8356_v51 }
 0x22b   : > { %v3525_v52 = vadd.f32 %v3493_v36, %v3392_v3  ;;  %v3357_v54 = vld [vmem:[#allocation2 + $0x170] sm:$0xff]  ;;  %v3727_v38 = vadd.f32 %v3695_v42, %v3625_v48  ;;  %v3896_v0 = vmul.f32 %v8454_v10, %v8756_v57  ;;  %v8777_v9 = vsub.f32 %v4348_v8, %v8760_v55 }
 0x22c   : > { %v3458_v12 = vld [vmem:[#allocation2 + $0x171] sm:$0xff]  ;;  %v3827_v17 = vadd.f32 %v3795_v23, %v3726_v28  ;;  %3322 = vst.msk [vmem:[#allocation2 + $0x190] sm:$0xff] %vm3271_vm2, %v3267_v45  ;;  %v3270_v21 = vmax.f32 %v3214_v31, 0.0  ;;  %v3208_v30 = vadd.f32 %v3207_v7, %v2818_v1  ;;  %v3394_v51 = vmul.f32 %v8397_v63, %v3357_v54  ;;  %v8782_v3 = vld [vmem:[#allocation2 + $0x169] sm:$0xff] }
 0x22d   : > { %v8772_v20 = vld [vmem:[#allocation2 + $0x172] sm:$0xff]  ;;  %10501 = vst [vmem:[#allocation49_spill] sm:$0xff] %v8777_v9  ;;  %v3495_v13 = vmul.f32 %v8402_v24, %v3458_v12  ;;  %v8784_v41 = vld [vmem:[#allocation2 + $0x16a] sm:$0xff]  ;;  %v3494_v8 = vmul.f32 %v8402_v24, %v8782_v3  ;;  %v3626_v29 = vadd.f32 %v3594_v49, %v3525_v52  ;;  %v3696_v36 = vmul.f32 %v8426_v27, %v3357_v54 }
 0x22e   : > { %v3596_v48 = vmul.f32 %v8415_v2, %v8772_v20  ;;  %v3661_v42 = vld [vmem:[#allocation2 + $0x188] sm:$0xff]  ;;  %3325 = vst.msk [vmem:[#allocation2 + $0x1a8] sm:$0xff] %vm3271_vm2, %v3270_v21  ;;  %v3269_v60 = vmax.f32 %v3208_v30, 0.0  ;;  %v3595_v62 = vmul.f32 %v8415_v2, %v8784_v41  ;;  %v3797_v24 = vmul.f32 %v8444_v47, %v3458_v12 }
 0x22f   : > { %v3527_v63 = vadd.f32 %v3495_v13, %v3394_v51  ;;  %v3698_v28 = vmul.f32 %v8426_v27, %v3661_v42  ;;  %v3526_v23 = vadd.f32 %v3494_v8, %v3393_v43  ;;  %v3660_v31 = vld [vmem:[#allocation2 + $0x180] sm:$0xff]  ;;  %v3898_v49 = vmul.f32 %v8454_v10, %v8772_v20 }
 0x230   : > { %v3761_v1 = vld [vmem:[#allocation2 + $0x181] sm:$0xff]  ;;  %3324 = vst.msk [vmem:[#allocation2 + $0x1a0] sm:$0xff] %vm3271_vm2, %v3269_v60  ;;  %v3697_v21 = vmul.f32 %v8426_v27, %v3660_v31  ;;  %v4000_v30 = vmul.f32 %v8565_v39, %v3661_v42  ;;  %v3728_v8 = vadd.f32 %v3696_v36, %v3626_v29  ;;  %v3796_v45 = vmul.f32 %v8444_v47, %v8782_v3 }
 0x231   : > { %v3862_v7 = vld [vmem:[#allocation2 + $0x182] sm:$0xff]  ;;  %v3628_v52 = vadd.f32 %v3596_v48, %v3527_v63  ;;  %v3798_v2 = vmul.f32 %v8444_v47, %v3761_v1  ;;  %v3627_v51 = vadd.f32 %v3595_v62, %v3526_v23  ;;  %v3964_v13 = vld [vmem:[#allocation2 + $0x198] sm:$0xff]  ;;  %v3897_v48 = vmul.f32 %v8454_v10, %v8784_v41 }
 0x232   : > { %v3899_v43 = vmul.f32 %v8454_v10, %v3862_v7  ;;  %v4001_v55 = vmul.f32 %v8565_v39, %v3964_v13  ;;  %v3999_v60 = vmul.f32 %v8565_v39, %v3660_v31  ;;  %v3829_v42 = vadd.f32 %v3797_v24, %v3728_v8  ;;  %v8815_v13 = vld [vmem:[#allocation2 + $0x139] sm:$0xff] }
 0x233   : > { %v3730_v4 = vadd.f32 %v3698_v28, %v3628_v52  ;;  %v3762_v63 = vld [vmem:[#allocation2 + $0x189] sm:$0xff]  ;;  %v3729_v33 = vadd.f32 %v3697_v21, %v3627_v51  ;;  %v3828_v62 = vadd.f32 %v3796_v45, %v3727_v38  ;;  %v4100_v23 = vmul.f32 %v8588_v50, %v3761_v1 }
 0x234   : > { %v3863_v61 = vld [vmem:[#allocation2 + $0x18a] sm:$0xff]  ;;  %v3799_v29 = vmul.f32 %v8444_v47, %v3762_v63  ;;  %v4101_v28 = vmul.f32 %v8588_v50, %v3762_v63  ;;  %v4201_v52 = vmul.f32 %v8598_v11, %v3862_v7  ;;  %v3930_v57 = vadd.f32 %v3898_v49, %v3829_v42  ;;  %v8823_v7 = vld [vmem:[%s9949_s3 + $0x1] ss:$0 sm:$0xff] }
 0x235   : > { %v3900_v36 = vmul.f32 %v8454_v10, %v3863_v61  ;;  %v3830_v9 = vadd.f32 %v3798_v2, %v3729_v33  ;;  %v4202_v31 = vmul.f32 %v8598_v11, %v3863_v61  ;;  %v3929_v40 = vadd.f32 %v3897_v48, %v3828_v62 }
 0x236   : > { %v3831_v21 = vadd.f32 %v3799_v29, %v3730_v4  ;;  %v3928_v24 = vadd.f32 %v3896_v0, %v3827_v17  ;;  %v3998_v38 = vmul.f32 %v8565_v39, %v3357_v54  ;;  %v4099_v45 = vmul.f32 %v8588_v50, %v3458_v12 }
 0x237   : > { %v3965_v1 = vld [vmem:[#allocation2 + $0x1a0] sm:$0xff]  ;;  %v3931_v8 = vadd.f32 %v3899_v43, %v3830_v9  ;;  %v4032_v14 = vadd.f32 %v4000_v30, %v3930_v57  ;;  %v4031_v63 = vadd.f32 %v3999_v60, %v3929_v40  ;;  %v3490_v61 = vmul.f32 %v8823_v7, %v8815_v13 }
 0x238   : > { %v4066_v51 = vld [vmem:[#allocation2 + $0x1a1] sm:$0xff]  ;;  %v3932_v33 = vadd.f32 %v3900_v36, %v3831_v21  ;;  %v4002_v17 = vmul.f32 %v8565_v39, %v3965_v1  ;;  %v4065_v54 = vld [vmem:[#allocation2 + $0x199] sm:$0xff]  ;;  %v4200_v0 = vmul.f32 %v8598_v11, %v8772_v20  ;;  %v4030_v60 = vadd.f32 %v3998_v38, %v3928_v24 }
 0x239   : > { %v4103_v4 = vmul.f32 %v8588_v50, %v4066_v51  ;;  %v4166_v12 = vld [vmem:[#allocation2 + $0x19a] sm:$0xff]  ;;  %v4167_v40 = vld [vmem:[#allocation2 + $0x1a2] sm:$0xff]  ;;  %v4033_v9 = vadd.f32 %v4001_v55, %v3931_v8  ;;  %v4102_v49 = vmul.f32 %v8588_v50, %v4065_v54  ;;  %v4133_v30 = vadd.f32 %v4101_v28, %v4032_v14 }
 0x23a   : > { %v8831_v57 = vld [vmem:[#allocation2 + $0x13a] sm:$0xff]  ;;  %v4203_v2 = vmul.f32 %v8598_v11, %v4166_v12  ;;  %v4034_v43 = vadd.f32 %v4002_v17, %v3932_v33  ;;  %v4132_v48 = vadd.f32 %v4100_v23, %v4031_v63  ;;  %v3522_v42 = vadd.f32 %v3490_v61, %v8718_v26  ;;  %v8839_v20 = vld [vmem:[%s9949_s3 + $0x2] ss:$0 sm:$0xff] }
 0x23b   : > { %v4134_v62 = vadd.f32 %v4102_v49, %v4033_v9  ;;  %v4234_v29 = vadd.f32 %v4202_v31, %v4133_v30  ;;  %v3591_v55 = vmul.f32 %v8839_v20, %v8831_v57  ;;  %v3693_v36 = vmul.f32 %v8426_v27, %v8726_v44 }
 0x23c   : > { %v4135_v21 = vadd.f32 %v4103_v4, %v4034_v43  ;;  %v4204_v14 = vmul.f32 %v8598_v11, %v4167_v40  ;;  %v4233_v23 = vadd.f32 %v4201_v52, %v4132_v48  ;;  %v4131_v28 = vadd.f32 %v4099_v45, %v4030_v60 }
 0x23d   : > { %v4235_v24 = vadd.f32 %v4203_v2, %v4134_v62  ;;  %v4271_v26 = vadd.f32 %v8619_v19, %v4234_v29  ;;  %v3623_v31 = vadd.f32 %v3591_v55, %v3522_v42  ;;  %v3794_v38 = vmul.f32 %v8444_v47, %v8728_v37 }
 0x23e   : > { %v4236_v1 = vadd.f32 %v4204_v14, %v4135_v21  ;;  %v4270_v51 = vadd.f32 %v8619_v19, %v4233_v23  ;;  %v4232_v8 = vadd.f32 %v4200_v0, %v4131_v28  ;;  %v3895_v63 = vmul.f32 %v8454_v10, %v8730_v5  ;;  %v10509_v23 = vld [vmem:[#allocation27_spill] sm:$0xff] }
 0x23f   : > { %v4272_v27 = vadd.f32 %v8619_v19, %v4235_v24  ;;  %v4303_v61 = vmax.f32 %v4271_v26, 0.0  ;;  %v3725_v33 = vadd.f32 %v3693_v36, %v3623_v31  ;;  %v3997_v52 = vmul.f32 %v8565_v39, %v8738_v18 }
 0x240   : > { %v4273_v45 = vadd.f32 %v8619_v19, %v4236_v1  ;;  %v4302_v17 = vmax.f32 %v4270_v51, 0.0  ;;  %v4269_v4 = vadd.f32 %v8619_v19, %v4232_v8  ;;  %v4098_v47 = vmul.f32 %v8588_v50, %v8782_v3  ;;  %v8906_v8 = vld [vmem:[#allocation2 + $0x128] sm:$0xff] }
 0x241   : > { %v4304_v54 = vmax.f32 %v4272_v27, 0.0  ;;  %v4402_v12 = vsel %vm3271_vm2, %v4303_v61, 0  ;;  %v3826_v0 = vadd.f32 %v3794_v38, %v3725_v33  ;;  %v3810_v40 = vadd.f32 %v8687_v34, %v8526_v58  ;;  %v8916_v33 = vld [vmem:[#allocation2 + $0x129] sm:$0xff] }
 0x242   : > { %v4305_v9 = vmax.f32 %v4273_v45, 0.0  ;;  %v8862_v49 = vand.u32 4294901760, %v4402_v12  ;;  %v4399_v18 = vsel %vm3271_vm2, %v4302_v17, 0  ;;  %v4301_v2 = vmax.f32 %v4269_v4, 0.0 }
 0x243   : > { %v4405_v30 = vsel %vm3271_vm2, %v4304_v54, 0  ;;  %v8866_v43 = vand.u32 4294901760, %v4399_v18  ;;  %v3927_v48 = vadd.f32 %v3895_v63, %v3826_v0  ;;  %v4199_v3 = vmul.f32 %v8598_v11, %v8784_v41 }
 0x244   : > { %10502 = vst [vmem:[#allocation50_spill] sm:$0xff] %v8862_v49  ;;  %v4408_v60 = vsel %vm3271_vm2, %v4305_v9, 0  ;;  %v8871_v42 = vand.u32 4294901760, %v4405_v30  ;;  %v8874_v58 = vsub.f32 %v4402_v12, %v8862_v49  ;;  %v3879_v34 = vmul.f32 %v8454_v10, %v8481_v15 }
 0x245   : > { %10503 = vst [vmem:[#allocation52_spill] sm:$0xff] %v8866_v43  ;;  %v8878_v62 = vand.u32 4294901760, %v4408_v60  ;;  %v4396_v29 = vsel %vm3271_vm2, %v4301_v2, 0  ;;  %v4029_v55 = vadd.f32 %v3997_v52, %v3927_v48  ;;  %v8882_v36 = vsub.f32 %v4399_v18, %v8866_v43  ;;  %v10520_v18 = vld [vmem:[#allocation28_spill] sm:$0xff] }
 0x246   : > { %10504 = vst [vmem:[#allocation54_spill] sm:$0xff] %v8871_v42  ;;  %10505 = vst [vmem:[#allocation55_spill] sm:$0xff] %v8874_v58  ;;  %v8885_v41 = vsub.f32 %v4405_v30, %v8871_v42  ;;  %v10121_v21 = vand.u32 4294901760, %v8874_v58  ;;  %v3911_v14 = vadd.f32 %v3879_v34, %v3810_v40  ;;  %v3981_v28 = vmul.f32 %v8565_v39, %v10509_v23  ;;  %v8938_v40 = vld [vmem:[%s9949_s3] ss:$0 sm:$0xff] }
 0x247   : > { %10506 = vst [vmem:[#allocation57_spill] sm:$0xff] %v8878_v62  ;;  %10507 = vst [vmem:[#allocation58_spill] sm:$0xff] %v8882_v36  ;;  %6187 = vmatprep.subr.mxu0 %v8878_v62  ;;  %v8892_v10 = vsub.f32 %v4408_v60, %v8878_v62  ;;  %v4130_v15 = vadd.f32 %v4098_v47, %v4029_v55  ;;  %v10120_v24 = vand.u32 4294901760, %v8882_v36  ;;  %v8899_v38 = vand.u32 4294901760, %v4396_v29  ;;  %v8924_v47 = vld [vmem:[#allocation2 + $0x12a] sm:$0xff] }
 0x248   : > { %10508 = vst [vmem:[#allocation59_spill] sm:$0xff] %v8885_v41  ;;  %v4082_v26 = vmul.f32 %v8588_v50, %v8532_v32  ;;  %6188 = vmatpush3.xpose.msra.mxu0 %v8644_v16  ;;  %v10122_v31 = vand.u32 4294901760, %v8885_v41  ;;  %v8904_v1 = vsub.f32 %v8874_v58, %v10121_v21  ;;  %v4013_v51 = vadd.f32 %v3981_v28, %v3911_v14  ;;  %v8954_v23 = vld [vmem:[%s9949_s3 + $0x3] ss:$0 sm:$0xff] }
 0x249   : > { %10510 = vst [vmem:[#allocation63_spill] sm:$0xff] %v8892_v10  ;;  %10511 = vst [vmem:[#allocation64_spill] sm:$0xff] %v8899_v38  ;;  %6189 = vmatprep.subr.mxu0 %v8871_v42  ;;  %v10123_v63 = vand.u32 4294901760, %v8892_v10  ;;  %v4231_v27 = vadd.f32 %v4199_v3, %v4130_v15  ;;  %v8913_v32 = vsub.f32 %v8882_v36, %v10120_v24  ;;  %v10119_v61 = vand.u32 4294901760, %v8711_v56  ;;  %v8961_v15 = vld [vmem:[%s9949_s3 + $0x4] ss:$0 sm:$0xff] }
 0x24a   : > { %v4641_v52 = vsub.f32 %v8885_v41, %v10122_v31  ;;  %v4114_v17 = vadd.f32 %v4082_v26, %v4013_v51  ;;  %v4183_v4 = vmul.f32 %v8598_v11, %v8534_v25  ;;  %v3388_v25 = vmul.f32 %v8938_v40, %v8906_v8  ;;  %v9006_v24 = vld [vmem:[#allocation2 + $0x82] sm:$0xff] }
 0x24b   : > { %v4634_v54 = vsub.f32 %v8892_v10, %v10123_v63  ;;  %v4268_v12 = vadd.f32 %v8619_v19, %v4231_v27  ;;  %v8933_v0 = vsub.f32 %v8711_v56, %v10119_v61  ;;  %v3489_v30 = vmul.f32 %v8823_v7, %v8916_v33  ;;  %v8971_v27 = vld [vmem:[%s9949_s3 + $0x5] ss:$0 sm:$0xff] }
 0x24c   : > { %6190 = vmatpush3.xpose.msra.mxu0 %v8639_v35  ;;  %v4642_v9 = vand.u32 4294901760, %v4641_v52  ;;  %v4215_v2 = vadd.f32 %v4183_v4, %v4114_v17  ;;  %v3590_v34 = vmul.f32 %v8839_v20, %v8924_v47  ;;  %v3692_v28 = vmul.f32 %v8954_v23, %v8697_v46  ;;  %v9010_v31 = vld [vmem:[#allocation2 + $0x120] sm:$0xff] }
 0x24d   : > { %6191 = vmatprep.subr.mxu0 %v8862_v49  ;;  %v4635_v48 = vand.u32 4294901760, %v4634_v54  ;;  %v4300_v3 = vmax.f32 %v4268_v12, 0.0  ;;  %v3521_v14 = vadd.f32 %v3489_v30, %v3388_v25  ;;  %v3793_v26 = vmul.f32 %v8961_v15, %v8699_v53  ;;  %v10512_v54 = vld [vmem:[#allocation32_spill] sm:$0xff] }
 0x24e   : > { %v4252_v55 = vadd.f32 %v8619_v19, %v4215_v2  ;;  %v3894_v52 = vmul.f32 %v8971_v27, %v8701_v6  ;;  %v3996_v17 = vmul.f32 %v8565_v39, %v8708_v22  ;;  %v8979_v4 = vmul.f32 %v8588_v50, %v8754_v59  ;;  %v10513_v12 = vld [vmem:[#allocation36_spill] sm:$0xff] }
 0x24f   : > { %6221 = vmatprep.subr.mxu1 %v4635_v48  ;;  %v8966_v51 = vsel %vm3271_vm2, %v4300_v3, 0  ;;  %v10514_v25 = vand.u32 4294901760, %v10513_v12  ;;  %v3622_v30 = vadd.f32 %v3590_v34, %v3521_v14  ;;  %v10515_v48 = vld [vmem:[#allocation44_spill] sm:$0xff]  ;;  %v8989_v61 = vsub.f32 %v4396_v29, %v8899_v38  ;;  %v10518_v14 = vld [vmem:[#allocation49_spill] sm:$0xff] }
 0x250   : > { %6192 = vmatpush3.xpose.msra.mxu0 %v10512_v54  ;;  %v4284_v2 = vmax.f32 %v4252_v55, 0.0  ;;  %v8986_v3 = vmul.f32 %v8598_v11, %v10515_v48  ;;  %v8993_v22 = vand.u32 4294901760, %v8966_v51  ;;  %v8995_v59 = vld [vmem:[#allocation2 + $0x80] sm:$0xff]  ;;  %v3878_v21 = vmul.f32 %v9006_v24, %v8971_v27  ;;  %v10522_v54 = vld [vmem:[#allocation35_spill] sm:$0xff] }
 0x251   : > { %6222 = vmatpush3.xpose.msra.mxu1 %v10514_v25  ;;  %10516 = vst [vmem:[#allocation47_spill] sm:$0xff] %v8989_v61  ;;  %6193 = vmatprep.subr.mxu0 %v8866_v43  ;;  %v3676_v12 = vmul.f32 %v8995_v59, %v8954_v23  ;;  %v8999_v55 = vld [vmem:[#allocation2 + $0x81] sm:$0xff]  ;;  %v3724_v48 = vadd.f32 %v3692_v28, %v3622_v30  ;;  %v6941_v25 = vld [vmem:[#allocation2 + $0x98] sm:$0xff]  ;;  %v10521_v43 = vld [vmem:[#allocation38_spill] sm:$0xff]  ;;  %v10523_v49 = vand.u32 4294901760, %v10522_v54  ;;  %v10524_v56 = vand.u32 4294901760, %v8989_v61 }
 0x252   : > { %6223 = vmatprep.subr.mxu1 %v4642_v9  ;;  %10517 = vst [vmem:[#allocation48_spill] sm:$0xff] %v8993_v22  ;;  %v3777_v34 = vmul.f32 %v8999_v55, %v8961_v15  ;;  %v4345_v29 = vsel %vm3271_vm2, %v4284_v2, 0  ;;  %v4306_v63 = vld [vmem:[%s9950_s4] sm:$0xff]  ;;  %v3980_v28 = vmul.f32 %v6941_v25, %v8565_v39  ;;  %v10527_v54 = vand.u32 4294901760, %v8904_v1 }
 0x253   : > { %v9015_v60 = vand.u32 4294901760, %v4345_v29  ;;  %v3708_v45 = vadd.f32 %v3676_v12, %v10520_v18  ;;  %v6942_v2 = vld [vmem:[#allocation2 + $0x99] sm:$0xff]  ;;  %v9020_v9 = vld [vmem:[#allocation2 + $0x121] sm:$0xff]  ;;  %v3825_v35 = vadd.f32 %v3793_v26, %v3724_v48  ;;  %v4662_v42 = vsub.f32 %v8989_v61, %v10524_v56 }
 0x254   : > { %v4081_v30 = vmul.f32 %v6942_v2, %v8588_v50  ;;  %6194 = vmatpush3.xpose.msra.mxu0 %v10521_v43  ;;  %v10525_v18 = vand.u32 4294901760, %v10518_v14  ;;  %v9033_v25 = vld [vmem:[#allocation2 + $0x122] sm:$0xff]  ;;  %v9036_v2 = vsel %vm3271_vm2, %v4306_v63, 0  ;;  %v3387_v56 = vmul.f32 %v8938_v40, %v9010_v31 }
 0x255   : > { %10519 = vst [vmem:[#allocation51_spill] sm:$0xff] %v9015_v60  ;;  %6224 = vmatpush3.xpose.msra.mxu1 %v10523_v49  ;;  %10526 = vst [vmem:[#allocation53_spill] sm:$0xff] %v9036_v2  ;;  %6195 = vmatprep.subr.mxu0 %v8899_v38  ;;  %v9042_v49 = vsub.f32 %v4345_v29, %v9015_v60  ;;  %v3809_v26 = vadd.f32 %v3777_v34, %v3708_v45  ;;  %v9047_v48 = vand.u32 4294901760, %v9036_v2  ;;  %v9403_v41 = vld [vmem:[#allocation2 + $0xe2] sm:$0xff] }
 0x256   : > { %v9031_v12 = vsub.f32 %v10518_v14, %v10525_v18  ;;  %6225 = vmatprep.subr.mxu1 %v10527_v54  ;;  %v3926_v18 = vadd.f32 %v3894_v52, %v3825_v35  ;;  %v4663_v43 = vand.u32 4294901760, %v4662_v42  ;;  %v6943_v14 = vld [vmem:[#allocation2 + $0x9a] sm:$0xff]  ;;  %v3488_v38 = vmul.f32 %v8823_v7, %v9020_v9  ;;  %v10530_v54 = vld [vmem:[#allocation37_spill] sm:$0xff]  ;;  %v10532_v42 = vld [vmem:[#allocation42_spill] sm:$0xff] }
 0x257   : > { %10528 = vst [vmem:[#allocation60_spill] sm:$0xff] %v9042_v49  ;;  %10529 = vst [vmem:[#allocation56_spill] sm:$0xff] %v9047_v48  ;;  %v4182_v63 = vmul.f32 %v6943_v14, %v8598_v11  ;;  %v3910_v1 = vadd.f32 %v3878_v21, %v3809_v26  ;;  %v3589_v29 = vmul.f32 %v8839_v20, %v9033_v25  ;;  %6253 = vmatprep.mubr.f32.mxu1 %v9047_v48  ;;  %v10531_v35 = vld [vmem:[#allocation45_spill] sm:$0xff] }
 0x258   : > { %v3691_v45 = vmul.f32 %v8954_v23, %v10530_v54  ;;  %v3792_v34 = vmul.f32 %v8961_v15, %v8815_v13  ;;  %6196 = vmatpush3.xpose.msra.mxu0 %v10531_v35  ;;  %v10533_v52 = vand.u32 4294901760, %v10532_v42  ;;  %v4028_v14 = vadd.f32 %v3996_v17, %v3926_v18  ;;  %v6946_v18 = vld [vmem:[#allocation2 + $0x90] sm:$0xff]  ;;  %v9417_v2 = vld [vmem:[#allocation2 + $0x21] sm:$0xff] }
 0x259   : > { %v4551_v61 = vand.u32 4294901760, %v9031_v12  ;;  %v3520_v21 = vadd.f32 %v3488_v38, %v3387_v56  ;;  %v3893_v26 = vmul.f32 %v8971_v27, %v8831_v57  ;;  %6197 = vmatprep.subr.mxu0 %v8993_v22  ;;  %v10534_v36 = vand.u32 4294901760, %v8913_v32  ;;  %10560 = vst [vmem:[#allocation18_spill] sm:$0xff] %v9417_v2 }
 0x25a   : > { %6226 = vmatpush3.xpose.msra.mxu1 %v10533_v52  ;;  %v4012_v16 = vadd.f32 %v3980_v28, %v3910_v1  ;;  %v3995_v62 = vmul.f32 %v8565_v39, %v8726_v44  ;;  %v4096_v42 = vmul.f32 %v8588_v50, %v8728_v37  ;;  %v4129_v12 = vadd.f32 %v8979_v4, %v4028_v14  ;;  %v9082_v28 = vld [vmem:[#allocation2 + $0x79] sm:$0xff]  ;;  %v6947_v52 = vld [vmem:[#allocation2 + $0x91] sm:$0xff] }
 0x25b   : > { %6227 = vmatprep.subr.mxu1 %v10534_v36  ;;  %v3621_v38 = vadd.f32 %v3589_v29, %v3520_v21  ;;  %v9076_v56 = vmul.f32 %v8598_v11, %v8730_v5  ;;  %v9080_v32 = vsub.f32 %v8966_v51, %v8993_v22  ;;  %v3776_v44 = vmul.f32 %v9082_v28, %v8961_v15  ;;  %v9086_v37 = vld [vmem:[#allocation2 + $0x7a] sm:$0xff]  ;;  %v9091_v5 = vld [vmem:[#allocation2 + $0x110] sm:$0xff] }
 0x25c   : > { %v4113_v36 = vadd.f32 %v4081_v30, %v4012_v16  ;;  %v3877_v4 = vmul.f32 %v9086_v37, %v8971_v27  ;;  %v3979_v1 = vmul.f32 %v6946_v18, %v8565_v39  ;;  %6198 = vmatpush3.xpose.msra.mxu0 %v9015_v60  ;;  %v10536_v51 = vand.u32 4294901760, %v8933_v0  ;;  %v9099_v21 = vld [vmem:[#allocation2 + $0x111] sm:$0xff] }
 0x25d   : > { %10535 = vst [vmem:[#allocation7_spill] sm:$0xff] %v9080_v32  ;;  %v4230_v16 = vadd.f32 %v8986_v3, %v4129_v12  ;;  %v3723_v30 = vadd.f32 %v3691_v45, %v3621_v38  ;;  %v10149_v29 = vand.u32 4294901760, %v9080_v32  ;;  %v4080_v14 = vmul.f32 %v6947_v52, %v8588_v50  ;;  %v10537_v39 = vld [vmem:[#allocation23_spill] sm:$0xff] }
 0x25e   : > { %6228 = vmatpush3.xpose.msra.mxu1 %v10536_v51  ;;  %v4214_v17 = vadd.f32 %v4182_v63, %v4113_v36  ;;  %v3808_v18 = vadd.f32 %v3776_v44, %v10537_v39  ;;  %v6948_v22 = vld [vmem:[#allocation2 + $0x92] sm:$0xff]  ;;  %v10538_v0 = vand.u32 4294901760, %v9042_v49  ;;  %v3487_v44 = vmul.f32 %v8823_v7, %v9099_v21 }
 0x25f   : > { %6229 = vmatprep.subr.mxu1 %v4663_v43  ;;  %v4181_v60 = vmul.f32 %v6948_v22, %v8598_v11  ;;  %v9106_v3 = vld [vmem:[#allocation2 + $0x112] sm:$0xff]  ;;  %v4267_v45 = vadd.f32 %v8619_v19, %v4230_v16  ;;  %v3824_v12 = vadd.f32 %v3792_v34, %v3723_v30  ;;  %v4669_v38 = vsub.f32 %v9080_v32, %v10149_v29 }
 0x260   : > { %v4557_v51 = vsub.f32 %v9042_v49, %v10538_v0  ;;  %v3386_v43 = vmul.f32 %v8938_v40, %v9091_v5  ;;  %v4251_v63 = vadd.f32 %v8619_v19, %v4214_v17  ;;  %v3909_v36 = vadd.f32 %v3877_v4, %v3808_v18 }
 0x261   : > { %v4299_v52 = vmax.f32 %v4267_v45, 0.0  ;;  %v3925_v39 = vadd.f32 %v3893_v26, %v3824_v12  ;;  %v4670_v0 = vand.u32 4294901760, %v4669_v38  ;;  %v3588_v34 = vmul.f32 %v8839_v20, %v9106_v3 }
 0x262   : > { %v4558_v22 = vand.u32 4294901760, %v4557_v51  ;;  %6230 = vmatpush3.xpose.msra.mxu1 %v4551_v61  ;;  %v4283_v16 = vmax.f32 %v4251_v63, 0.0  ;;  %v4011_v30 = vadd.f32 %v3979_v1, %v3909_v36  ;;  %v3519_v29 = vadd.f32 %v3487_v44, %v3386_v43  ;;  %v10543_v44 = vld [vmem:[#allocation24_spill] sm:$0xff] }
 0x263   : > { %v3690_v35 = vmul.f32 %v8954_v23, %v8906_v8  ;;  %v4390_v17 = vsel %vm3271_vm2, %v4299_v52, 0  ;;  %v4027_v4 = vadd.f32 %v3995_v62, %v3925_v39  ;;  %6231 = vmatprep.subr.mxu1 %v4670_v0  ;;  %v3791_v18 = vmul.f32 %v8961_v15, %v8916_v33  ;;  %v9134_v62 = vld [vmem:[%s9949_s3 + $0x6] ss:$0 sm:$0xff]  ;;  %v10544_v52 = vld [vmem:[#allocation25_spill] sm:$0xff]  ;;  %v9162_v0 = vld [vmem:[%s9949_s3 + $0x7] ss:$0 sm:$0xff] }
 0x264   : > { %v3892_v61 = vmul.f32 %v8971_v27, %v8924_v47  ;;  %v9126_v26 = vand.u32 4294901760, %v4390_v17  ;;  %v4342_v51 = vsel %vm3271_vm2, %v4283_v16, 0  ;;  %v4112_v45 = vadd.f32 %v4080_v14, %v4011_v30 }
 0x265   : > { %v3620_v1 = vadd.f32 %v3588_v34, %v3519_v29  ;;  %v9129_v12 = vand.u32 4294901760, %v4342_v51  ;;  %v4128_v38 = vadd.f32 %v4096_v42, %v4027_v4  ;;  %v3994_v43 = vmul.f32 %v9134_v62, %v8697_v46  ;;  %v9166_v34 = vld [vmem:[#allocation2 + $0x109] sm:$0xff] }
 0x266   : > { %10539 = vst [vmem:[#allocation61_spill] sm:$0xff] %v9126_v26  ;;  %6232 = vmatpush3.xpose.msra.mxu1 %v4558_v22  ;;  %v4095_v63 = vmul.f32 %v8588_v50, %v8699_v53  ;;  %6199 = vmatprep.subr.mxu0 %v9126_v26  ;;  %v4213_v36 = vadd.f32 %v4181_v60, %v4112_v45  ;;  %v9155_v60 = vld [vmem:[#allocation2 + $0x108] sm:$0xff] }
 0x267   : > { %10540 = vst [vmem:[#allocation40_spill] sm:$0xff] %v9129_v12  ;;  %v3722_v14 = vadd.f32 %v3690_v35, %v3620_v1  ;;  %v4196_v29 = vmul.f32 %v8598_v11, %v8701_v6  ;;  %v9144_v42 = vsub.f32 %v4390_v17, %v9126_v26  ;;  %6200 = vmatpush3.xpose.msra.mxu0 %v9129_v12  ;;  %v9172_v4 = vld [vmem:[#allocation2 + $0x10a] sm:$0xff] }
 0x268   : > { %v9148_v22 = vsub.f32 %v4342_v51, %v9129_v12  ;;  %v4229_v46 = vadd.f32 %v9076_v56, %v4128_v38  ;;  %v3908_v50 = vadd.f32 %v10544_v52, %v10543_v44  ;;  %v3978_v53 = vmul.f32 %v9134_v62, %v8995_v59  ;;  %v9187_v44 = vld [vmem:[#allocation2 + $0x38] sm:$0xff] }
 0x269   : > { %10541 = vst [vmem:[#allocation6_spill] sm:$0xff] %v9144_v42  ;;  %v4250_v6 = vadd.f32 %v8619_v19, %v4213_v36  ;;  %v3823_v35 = vadd.f32 %v3791_v18, %v3722_v14  ;;  %v10151_v39 = vand.u32 4294901760, %v9144_v42  ;;  %v4079_v56 = vmul.f32 %v9162_v0, %v8999_v55 }
 0x26a   : > { %10542 = vst [vmem:[#allocation62_spill] sm:$0xff] %v9148_v22  ;;  %v4266_v16 = vadd.f32 %v8619_v19, %v4229_v46  ;;  %v4010_v59 = vadd.f32 %v3978_v53, %v3908_v50  ;;  %v4180_v30 = vmul.f32 %v9006_v24, %v8598_v11  ;;  %v10150_v17 = vand.u32 4294901760, %v9148_v22 }
 0x26b   : > { %v4282_v18 = vmax.f32 %v4250_v6, 0.0  ;;  %v3924_v51 = vadd.f32 %v3892_v61, %v3823_v35  ;;  %v4676_v45 = vsub.f32 %v9144_v42, %v10151_v39  ;;  %v3385_v55 = vmul.f32 %v8938_v40, %v9155_v60 }
 0x26c   : > { %v4298_v1 = vmax.f32 %v4266_v16, 0.0  ;;  %v4111_v38 = vadd.f32 %v4079_v56, %v4010_v59  ;;  %v4564_v36 = vsub.f32 %v9148_v22, %v10150_v17  ;;  %v3486_v11 = vmul.f32 %v8823_v7, %v9166_v34 }
 0x26d   : > { %v4339_v24 = vsel %vm3271_vm2, %v4282_v18, 0  ;;  %v4026_v14 = vadd.f32 %v3994_v43, %v3924_v51  ;;  %v4677_v61 = vand.u32 4294901760, %v4676_v45  ;;  %v3587_v46 = vmul.f32 %v8839_v20, %v9172_v4  ;;  %v9200_v51 = vld [vmem:[#allocation2 + $0x61] sm:$0xff] }
 0x26e   : > { %v4387_v52 = vsel %vm3271_vm2, %v4298_v1, 0  ;;  %v9190_v50 = vand.u32 4294901760, %v4339_v24  ;;  %v4212_v53 = vadd.f32 %v4180_v30, %v4111_v38  ;;  %v4565_v6 = vand.u32 4294901760, %v4564_v36 }
 0x26f   : > { %v9192_v35 = vand.u32 4294901760, %v4387_v52  ;;  %v4127_v56 = vadd.f32 %v4095_v63, %v4026_v14  ;;  %6233 = vmatprep.subr.mxu1 %v4677_v61  ;;  %v3518_v16 = vadd.f32 %v3486_v11, %v3385_v55  ;;  %v3689_v43 = vmul.f32 %v8954_v23, %v9010_v31  ;;  %v10549_v14 = vld [vmem:[#allocation26_spill] sm:$0xff] }
 0x270   : > { %10545 = vst [vmem:[#allocation41_spill] sm:$0xff] %v9190_v50  ;;  %v9197_v59 = vsub.f32 %v4339_v24, %v9190_v50  ;;  %v4249_v18 = vadd.f32 %v8619_v19, %v4212_v53  ;;  %6234 = vmatpush3.xpose.msra.mxu1 %v4565_v6  ;;  %v3774_v30 = vmul.f32 %v9200_v51, %v8961_v15  ;;  %v9223_v6 = vld [vmem:[#allocation2 + $0x62] sm:$0xff] }
 0x271   : > { %10546 = vst [vmem:[#allocation43_spill] sm:$0xff] %v9192_v35  ;;  %v9206_v45 = vmul.f32 %v8938_v40, %v9187_v44  ;;  %6201 = vmatprep.subr.mxu0 %v9192_v35  ;;  %v4228_v63 = vadd.f32 %v4196_v29, %v4127_v56  ;;  %v3619_v55 = vadd.f32 %v3587_v46, %v3518_v16  ;;  %v9227_v16 = vld [vmem:[#allocation2 + $0xf8] sm:$0xff] }
 0x272   : > { %10547 = vst [vmem:[#allocation8_spill] sm:$0xff] %v9197_v59  ;;  %v3790_v1 = vmul.f32 %v8961_v15, %v9020_v9  ;;  %v3891_v38 = vmul.f32 %v8971_v27, %v9033_v25  ;;  %6202 = vmatpush3.xpose.msra.mxu0 %v9190_v50  ;;  %v4281_v36 = vmax.f32 %v4249_v18, 0.0  ;;  %v3993_v11 = vmul.f32 %v9134_v62, %v10530_v54  ;;  %v9229_v18 = vld [vmem:[#allocation2 + $0xf9] sm:$0xff] }
 0x273   : > { %v9217_v24 = vsub.f32 %v4387_v52, %v9192_v35  ;;  %v3806_v61 = vadd.f32 %v3774_v30, %v10549_v14  ;;  %v4265_v29 = vadd.f32 %v8619_v19, %v4228_v63  ;;  %v3721_v46 = vadd.f32 %v3689_v43, %v3619_v55  ;;  %v6953_v30 = vld [vmem:[#allocation2 + $0x78] sm:$0xff] }
 0x274   : > { %v4094_v53 = vmul.f32 %v9162_v0, %v8815_v13  ;;  %v3875_v56 = vmul.f32 %v9223_v6, %v8971_v27  ;;  %v4336_v54 = vsel %vm3271_vm2, %v4281_v36, 0  ;;  %v3977_v19 = vmul.f32 %v6953_v30, %v9134_v62  ;;  %v9246_v50 = vld [vmem:[#allocation2 + $0xfa] sm:$0xff] }
 0x275   : > { %10548 = vst [vmem:[#allocation46_spill] sm:$0xff] %v9217_v24  ;;  %v10156_v52 = vand.u32 4294901760, %v9217_v24  ;;  %v4078_v43 = vmul.f32 %v9162_v0, %v9082_v28  ;;  %v4297_v13 = vmax.f32 %v4265_v29, 0.0  ;;  %v9236_v63 = vand.u32 4294901760, %v4336_v54 }
 0x276   : > { %v3822_v55 = vadd.f32 %v3790_v1, %v3721_v46  ;;  %v3907_v14 = vadd.f32 %v3875_v56, %v3806_v61  ;;  %v10161_v39 = vand.u32 4294901760, %v9197_v59  ;;  %v3384_v36 = vmul.f32 %v8938_v40, %v9227_v16  ;;  %v9252_v1 = vld [vmem:[%s9949_s3 + $0x8] ss:$0 sm:$0xff] }
 0x277   : > { %10550 = vst [vmem:[#allocation11_spill] sm:$0xff] %v9236_v63  ;;  %v4683_v17 = vsub.f32 %v9217_v24, %v10156_v52  ;;  %v3485_v30 = vmul.f32 %v8823_v7, %v9229_v18  ;;  %v4384_v28 = vsel %vm3271_vm2, %v4297_v13, 0  ;;  %v4179_v61 = vmul.f32 %v9252_v1, %v9086_v37 }
 0x278   : > { %v3923_v29 = vadd.f32 %v3891_v38, %v3822_v55  ;;  %v4009_v35 = vadd.f32 %v3977_v19, %v3907_v14  ;;  %v9256_v46 = vand.u32 4294901760, %v4384_v28  ;;  %v4571_v52 = vsub.f32 %v9197_v59, %v10161_v39  ;;  %v9265_v55 = vld [vmem:[#allocation2 + $0x39] sm:$0xff] }
 0x279   : > { %v4684_v56 = vand.u32 4294901760, %v4683_v17  ;;  %v3517_v12 = vadd.f32 %v3485_v30, %v3384_v36  ;;  %v3586_v38 = vmul.f32 %v8839_v20, %v9246_v50  ;;  %v3688_v19 = vmul.f32 %v8954_v23, %v9091_v5  ;;  %v9315_v39 = vld [vmem:[#allocation2 + $0x52] sm:$0xff] }
 0x27a   : > { %10551 = vst [vmem:[#allocation10_spill] sm:$0xff] %v9256_v46  ;;  %v4025_v26 = vadd.f32 %v3993_v11, %v3923_v29  ;;  %v4110_v13 = vadd.f32 %v4078_v43, %v4009_v35  ;;  %6203 = vmatprep.subr.mxu0 %v9256_v46  ;;  %v9269_v37 = vsub.f32 %v4336_v54, %v9236_v63  ;;  %v4572_v14 = vand.u32 4294901760, %v4571_v52  ;;  %v9278_v29 = vld [vmem:[#allocation2 + $0x3a] sm:$0xff] }
 0x27b   : > { %v4195_v17 = vmul.f32 %v9252_v1, %v8831_v57  ;;  %6235 = vmatprep.subr.mxu1 %v4684_v56  ;;  %v3789_v35 = vmul.f32 %v8961_v15, %v9099_v21  ;;  %6204 = vmatpush3.xpose.msra.mxu0 %v9236_v63  ;;  %v3618_v36 = vadd.f32 %v3586_v38, %v3517_v12  ;;  %v9292_v12 = vld [vmem:[%s9949_s3 + $0x9] ss:$0 sm:$0xff]  ;;  %v9301_v38 = vld [vmem:[#allocation2 + $0x50] sm:$0xff] }
 0x27c   : > { %10552 = vst [vmem:[#allocation9_spill] sm:$0xff] %v9269_v37  ;;  %v4126_v11 = vadd.f32 %v4094_v53, %v4025_v26  ;;  %v4211_v43 = vadd.f32 %v4179_v61, %v4110_v13  ;;  %v3890_v30 = vmul.f32 %v8971_v27, %v9106_v3  ;;  %6236 = vmatpush3.xpose.msra.mxu1 %v4572_v14  ;;  %v10181_v24 = vand.u32 4294901760, %v9269_v37 }
 0x27d   : > { %v3992_v54 = vmul.f32 %v9134_v62, %v8906_v8  ;;  %v4093_v57 = vmul.f32 %v9162_v0, %v8916_v33  ;;  %v9285_v52 = vsub.f32 %v4384_v28, %v9256_v46  ;;  %v3469_v26 = vmul.f32 %v8823_v7, %v9265_v55 }
 0x27e   : > { %v4227_v53 = vadd.f32 %v4195_v17, %v4126_v11  ;;  %v4248_v61 = vadd.f32 %v9292_v12, %v4211_v43  ;;  %v3720_v56 = vadd.f32 %v3688_v19, %v3618_v36  ;;  %v4194_v8 = vmul.f32 %v9252_v1, %v8924_v47  ;;  %v9306_v19 = vld [vmem:[#allocation2 + $0x51] sm:$0xff] }
 0x27f   : > { %10553 = vst [vmem:[#allocation12_spill] sm:$0xff] %v9285_v52  ;;  %v10172_v33 = vand.u32 4294901760, %v9285_v52  ;;  %v3501_v28 = vadd.f32 %v3469_v26, %v9206_v45  ;;  %v3570_v13 = vmul.f32 %v8839_v20, %v9278_v29  ;;  %v3672_v17 = vmul.f32 %v9301_v38, %v8954_v23  ;;  %v9310_v36 = vld [vmem:[#allocation2 + $0xf0] sm:$0xff] }
 0x280   : > { %v4264_v14 = vadd.f32 %v9292_v12, %v4227_v53  ;;  %v4280_v11 = vmax.f32 %v4248_v61, 0.0  ;;  %v3821_v43 = vadd.f32 %v3789_v35, %v3720_v56  ;;  %v3773_v47 = vmul.f32 %v9306_v19, %v8961_v15  ;;  %v6959_v53 = vld [vmem:[#allocation2 + $0x68] sm:$0xff]  ;;  %v9320_v61 = vld [vmem:[#allocation2 + $0xf1] sm:$0xff] }
 0x281   : > { %v4690_v45 = vsub.f32 %v9285_v52, %v10172_v33  ;;  %v3602_v26 = vadd.f32 %v3570_v13, %v3501_v28  ;;  %v3874_v63 = vmul.f32 %v9315_v39, %v8971_v27  ;;  %v3976_v35 = vmul.f32 %v6959_v53, %v9134_v62  ;;  %v9328_v52 = vld [vmem:[#allocation2 + $0xf2] sm:$0xff] }
 0x282   : > { %v4296_v56 = vmax.f32 %v4264_v14, 0.0  ;;  %v4333_v46 = vsel %vm3271_vm2, %v4280_v11, 0  ;;  %v3922_v59 = vadd.f32 %v3890_v30, %v3821_v43  ;;  %v3383_v13 = vmul.f32 %v8938_v40, %v9310_v36 }
 0x283   : > { %v9324_v22 = vand.u32 4294901760, %v4333_v46  ;;  %v4691_v33 = vand.u32 4294901760, %v4690_v45  ;;  %v3704_v28 = vadd.f32 %v3672_v17, %v3602_v26  ;;  %v4578_v14 = vsub.f32 %v9269_v37, %v10181_v24  ;;  %v6960_v17 = vld [vmem:[#allocation2 + $0x69] sm:$0xff] }
 0x284   : > { %v4381_v42 = vsel %vm3271_vm2, %v4296_v56, 0  ;;  %v4024_v53 = vadd.f32 %v3992_v54, %v3922_v59  ;;  %v3484_v30 = vmul.f32 %v8823_v7, %v9320_v61  ;;  %v4077_v45 = vmul.f32 %v6960_v17, %v9162_v0  ;;  %v6961_v26 = vld [vmem:[#allocation2 + $0x6a] sm:$0xff]  ;;  %v9364_v17 = vld [vmem:[#allocation2 + $0x32] sm:$0xff] }
 0x285   : > { %10554 = vst [vmem:[#allocation13_spill] sm:$0xff] %v9324_v22  ;;  %v9336_v11 = vand.u32 4294901760, %v4381_v42  ;;  %6237 = vmatprep.subr.mxu1 %v4691_v33  ;;  %v3805_v43 = vadd.f32 %v3773_v47, %v3704_v28  ;;  %v4178_v49 = vmul.f32 %v6961_v26, %v9252_v1  ;;  %v4579_v56 = vand.u32 4294901760, %v4578_v14  ;;  %v9342_v24 = vld [vmem:[#allocation2 + $0x30] sm:$0xff] }
 0x286   : > { %v4125_v32 = vadd.f32 %v4093_v57, %v4024_v53  ;;  %v3516_v59 = vadd.f32 %v3484_v30, %v3383_v13  ;;  %v3585_v54 = vmul.f32 %v8839_v20, %v9328_v52  ;;  %v9346_v37 = vsub.f32 %v4333_v46, %v9324_v22  ;;  %v9352_v57 = vld [vmem:[#allocation2 + $0x31] sm:$0xff] }
 0x287   : > { %10555 = vst [vmem:[#allocation14_spill] sm:$0xff] %v9336_v11  ;;  %6205 = vmatprep.subr.mxu0 %v9336_v11  ;;  %v3906_v33 = vadd.f32 %v3874_v63, %v3805_v43  ;;  %v3687_v47 = vmul.f32 %v8954_v23, %v9155_v60  ;;  %v3788_v28 = vmul.f32 %v8961_v15, %v9166_v34 }
 0x288   : > { %10556 = vst [vmem:[#allocation15_spill] sm:$0xff] %v9346_v37  ;;  %6206 = vmatpush3.xpose.msra.mxu0 %v9324_v22  ;;  %v4226_v13 = vadd.f32 %v4194_v8, %v4125_v32  ;;  %6238 = vmatpush3.xpose.msra.mxu1 %v4579_v56  ;;  %v3617_v53 = vadd.f32 %v3585_v54, %v3516_v59 }
 0x289   : > { %v3889_v14 = vmul.f32 %v8971_v27, %v9172_v4  ;;  %v4008_v30 = vadd.f32 %v3976_v35, %v3906_v33  ;;  %v3991_v63 = vmul.f32 %v9134_v62, %v9010_v31  ;;  %v9360_v46 = vsub.f32 %v4381_v42, %v9336_v11 }
 0x28a   : > { %v3367_v43 = vmul.f32 %v8938_v40, %v9342_v24  ;;  %v4263_v26 = vadd.f32 %v9292_v12, %v4226_v13  ;;  %v3719_v32 = vadd.f32 %v3687_v47, %v3617_v53  ;;  %v4092_v8 = vmul.f32 %v9162_v0, %v9020_v9  ;;  %v9380_v53 = vld [vmem:[#allocation2 + $0x48] sm:$0xff] }
 0x28b   : > { %10557 = vst [vmem:[#allocation16_spill] sm:$0xff] %v9360_v46  ;;  %v3468_v35 = vmul.f32 %v8823_v7, %v9352_v57  ;;  %v4109_v56 = vadd.f32 %v4077_v45, %v4008_v30  ;;  %v4193_v31 = vmul.f32 %v9252_v1, %v9033_v25  ;;  %v10186_v42 = vand.u32 4294901760, %v9360_v46  ;;  %v9384_v45 = vld [vmem:[#allocation2 + $0x49] sm:$0xff] }
 0x28c   : > { %v4295_v54 = vmax.f32 %v4263_v26, 0.0  ;;  %v3820_v33 = vadd.f32 %v3788_v28, %v3719_v32  ;;  %v3569_v47 = vmul.f32 %v8839_v20, %v9364_v17  ;;  %v3671_v25 = vmul.f32 %v9380_v53, %v8954_v23  ;;  %v9388_v28 = vld [vmem:[#allocation2 + $0xe0] sm:$0xff] }
 0x28d   : > { %v3500_v22 = vadd.f32 %v3468_v35, %v3367_v43  ;;  %v4210_v13 = vadd.f32 %v4178_v49, %v4109_v56  ;;  %v4697_v9 = vsub.f32 %v9360_v46, %v10186_v42  ;;  %v3772_v30 = vmul.f32 %v9384_v45, %v8961_v15  ;;  %v9390_v43 = vld [vmem:[#allocation2 + $0xe1] sm:$0xff]  ;;  %v9393_v35 = vld [vmem:[#allocation2 + $0x4a] sm:$0xff] }
 0x28e   : > { %v4378_v49 = vsel %vm3271_vm2, %v4295_v54, 0  ;;  %v3921_v26 = vadd.f32 %v3889_v14, %v3820_v33  ;;  %v3873_v56 = vmul.f32 %v9393_v35, %v8971_v27  ;;  %v10559_v46 = vand.u32 4294901760, %v9346_v37 }
 0x28f   : > { %v3601_v32 = vadd.f32 %v3569_v47, %v3500_v22  ;;  %v9397_v42 = vand.u32 4294901760, %v4378_v49  ;;  %v4247_v59 = vadd.f32 %v9292_v12, %v4210_v13  ;;  %v4698_v11 = vand.u32 4294901760, %v4697_v9  ;;  %v6965_v47 = vld [vmem:[#allocation2 + $0x60] sm:$0xff] }
 0x290   : > { %v4585_v58 = vsub.f32 %v9346_v37, %v10559_v46  ;;  %v4023_v10 = vadd.f32 %v3991_v63, %v3921_v26  ;;  %v3382_v22 = vmul.f32 %v8938_v40, %v9388_v28  ;;  %v3483_v14 = vmul.f32 %v8823_v7, %v9390_v43 }
 0x291   : > { %10558 = vst [vmem:[#allocation17_spill] sm:$0xff] %v9397_v42  ;;  %v3703_v54 = vadd.f32 %v3671_v25, %v3601_v32  ;;  %6207 = vmatprep.subr.mxu0 %v9397_v42  ;;  %v4279_v33 = vmax.f32 %v4247_v59, 0.0  ;;  %6239 = vmatprep.subr.mxu1 %v4698_v11  ;;  %v3975_v13 = vmul.f32 %v6965_v47, %v9134_v62  ;;  %v9415_v32 = vld [vmem:[#allocation2 + $0x20] sm:$0xff] }
 0x292   : > { %v4076_v46 = vmul.f32 %v9200_v51, %v9162_v0  ;;  %v4586_v9 = vand.u32 4294901760, %v4585_v58  ;;  %v4124_v37 = vadd.f32 %v4092_v8, %v4023_v10  ;;  %v3515_v25 = vadd.f32 %v3483_v14, %v3382_v22  ;;  %v9428_v22 = vld [vmem:[#allocation2 + $0x22] sm:$0xff] }
 0x293   : > { %v3804_v63 = vadd.f32 %v3772_v30, %v3703_v54  ;;  %v3584_v26 = vmul.f32 %v8839_v20, %v9403_v41  ;;  %v4330_v59 = vsel %vm3271_vm2, %v4279_v33, 0  ;;  %v4177_v11 = vmul.f32 %v9252_v1, %v9223_v6 }
 0x294   : > { %6240 = vmatpush3.xpose.msra.mxu1 %v4586_v9  ;;  %v3686_v51 = vmul.f32 %v8954_v23, %v9227_v16  ;;  %v3787_v58 = vmul.f32 %v8961_v15, %v9229_v18  ;;  %v9426_v10 = vand.u32 4294901760, %v4330_v59  ;;  %v4225_v8 = vadd.f32 %v4193_v31, %v4124_v37 }
 0x295   : > { %v3905_v30 = vadd.f32 %v3873_v56, %v3804_v63  ;;  %v3616_v54 = vadd.f32 %v3584_v26, %v3515_v25  ;;  %v3888_v14 = vmul.f32 %v8971_v27, %v9246_v50  ;;  %v9433_v33 = vsub.f32 %v4378_v49, %v9397_v42 }
 0x296   : > { %v3366_v6 = vmul.f32 %v8938_v40, %v9415_v32  ;;  %v3467_v47 = vmul.f32 %v8823_v7, %v9417_v2  ;;  %6208 = vmatpush3.xpose.msra.mxu0 %v9426_v10  ;;  %v4262_v37 = vadd.f32 %v9292_v12, %v4225_v8  ;;  %v3990_v9 = vmul.f32 %v9134_v62, %v9091_v5 }
 0x297   : > { %v4007_v31 = vadd.f32 %v3975_v13, %v3905_v30  ;;  %v3718_v56 = vadd.f32 %v3686_v51, %v3616_v54  ;;  %v4091_v63 = vmul.f32 %v9162_v0, %v9099_v21  ;;  %v10206_v49 = vand.u32 4294901760, %v9433_v33 }
 0x298   : > { %v3499_v25 = vadd.f32 %v3467_v47, %v3366_v6  ;;  %v3568_v26 = vmul.f32 %v8839_v20, %v9428_v22  ;;  %v9449_v42 = vsub.f32 %v4330_v59, %v9426_v10  ;;  %v4294_v48 = vmax.f32 %v4262_v37, 0.0 }
 0x299   : > { %v4108_v2 = vadd.f32 %v4076_v46, %v4007_v31  ;;  %v3819_v8 = vadd.f32 %v3787_v58, %v3718_v56  ;;  %v4704_v13 = vsub.f32 %v9433_v33, %v10206_v49  ;;  %v3670_v21 = vmul.f32 %v8954_v23, %v9187_v44  ;;  %v9461_v46 = vld [vmem:[#allocation2 + $0xd8] sm:$0xff] }
 0x29a   : > { %10561 = vst [vmem:[#allocation19_spill] sm:$0xff] %v9449_v42  ;;  %v3600_v5 = vadd.f32 %v3568_v26, %v3499_v25  ;;  %v3771_v51 = vmul.f32 %v8961_v15, %v9265_v55  ;;  %v4375_v30 = vsel %vm3271_vm2, %v4294_v48, 0  ;;  %v4192_v59 = vmul.f32 %v9252_v1, %v9106_v3  ;;  %v9463_v58 = vld [vmem:[#allocation2 + $0xd9] sm:$0xff] }
 0x29b   : > { %v4209_v54 = vadd.f32 %v4177_v11, %v4108_v2  ;;  %v3920_v6 = vadd.f32 %v3888_v14, %v3819_v8  ;;  %v9465_v47 = vand.u32 4294901760, %v4375_v30  ;;  %v4705_v37 = vand.u32 4294901760, %v4704_v13  ;;  %v9473_v3 = vld [vmem:[#allocation2 + $0xda] sm:$0xff] }
 0x29c   : > { %v3702_v31 = vadd.f32 %v3670_v21, %v3600_v5  ;;  %v3872_v56 = vmul.f32 %v8971_v27, %v9278_v29  ;;  %v3974_v2 = vmul.f32 %v9301_v38, %v9134_v62  ;;  %v10205_v48 = vand.u32 4294901760, %v9449_v42 }
 0x29d   : > { %10562 = vst [vmem:[#allocation20_spill] sm:$0xff] %v9465_v47  ;;  %v4246_v25 = vadd.f32 %v9292_v12, %v4209_v54  ;;  %v4022_v26 = vadd.f32 %v3990_v9, %v3920_v6  ;;  %6209 = vmatprep.subr.mxu0 %v9465_v47  ;;  %6241 = vmatprep.subr.mxu1 %v4705_v37 }
 0x29e   : > { %v3803_v11 = vadd.f32 %v3771_v51, %v3702_v31  ;;  %v3381_v14 = vmul.f32 %v8938_v40, %v9461_v46  ;;  %v3482_v8 = vmul.f32 %v8823_v7, %v9463_v58  ;;  %v4075_v9 = vmul.f32 %v9306_v19, %v9162_v0  ;;  %v9492_v19 = vld [vmem:[#allocation2 + $0x18] sm:$0xff] }
 0x29f   : > { %v4278_v13 = vmax.f32 %v4246_v25, 0.0  ;;  %v4123_v5 = vadd.f32 %v4091_v63, %v4022_v26  ;;  %v4592_v38 = vsub.f32 %v9449_v42, %v10205_v48  ;;  %v3583_v51 = vmul.f32 %v8839_v20, %v9473_v3  ;;  %v9494_v26 = vld [vmem:[#allocation2 + $0x19] sm:$0xff] }
 0x2a0   : > { %v3904_v21 = vadd.f32 %v3872_v56, %v3803_v11  ;;  %v3514_v54 = vadd.f32 %v3482_v8, %v3381_v14  ;;  %v3685_v6 = vmul.f32 %v8954_v23, %v9310_v36  ;;  %v4176_v63 = vmul.f32 %v9315_v39, %v9252_v1  ;;  %v9500_v8 = vld [vmem:[#allocation2 + $0x1a] sm:$0xff] }
 0x2a1   : > { %v4327_v37 = vsel %vm3271_vm2, %v4278_v13, 0  ;;  %v4224_v31 = vadd.f32 %v4192_v59, %v4123_v5  ;;  %v4593_v25 = vand.u32 4294901760, %v4592_v38  ;;  %v3786_v14 = vmul.f32 %v8961_v15, %v9320_v61 }
 0x2a2   : > { %v9496_v48 = vand.u32 4294901760, %v4327_v37  ;;  %v4006_v56 = vadd.f32 %v3974_v2, %v3904_v21  ;;  %v3615_v11 = vadd.f32 %v3583_v51, %v3514_v54  ;;  %v3887_v39 = vmul.f32 %v8971_v27, %v9328_v52 }
 0x2a3   : > { %v4261_v13 = vadd.f32 %v9292_v12, %v4224_v31  ;;  %6242 = vmatpush3.xpose.msra.mxu1 %v4593_v25  ;;  %v3989_v59 = vmul.f32 %v9134_v62, %v9155_v60  ;;  %v9508_v5 = vsub.f32 %v4375_v30, %v9465_v47  ;;  %v3365_v21 = vmul.f32 %v8938_v40, %v9492_v19 }
 0x2a4   : > { %10563 = vst [vmem:[#allocation21_spill] sm:$0xff] %v9496_v48  ;;  %6210 = vmatpush3.xpose.msra.mxu0 %v9496_v48  ;;  %v4107_v2 = vadd.f32 %v4075_v9, %v4006_v56  ;;  %v3717_v38 = vadd.f32 %v3685_v6, %v3615_v11  ;;  %v3466_v54 = vmul.f32 %v8823_v7, %v9494_v26 }
 0x2a5   : > { %10564 = vst [vmem:[#allocation22_spill] sm:$0xff] %v9508_v5  ;;  %v9516_v51 = vsub.f32 %v4327_v37, %v9496_v48  ;;  %v4293_v31 = vmax.f32 %v4261_v13, 0.0  ;;  %v10209_v25 = vand.u32 4294901760, %v9508_v5  ;;  %v3567_v60 = vmul.f32 %v8839_v20, %v9500_v8  ;;  %v3343_v13 = vld [vmem:[#allocation2 + $0xc8] sm:$0xff] }
 0x2a6   : > { %v4208_v30 = vadd.f32 %v4176_v63, %v4107_v2  ;;  %v3818_v49 = vadd.f32 %v3786_v14, %v3717_v38  ;;  %v3498_v47 = vadd.f32 %v3466_v54, %v3365_v21  ;;  %v3669_v9 = vmul.f32 %v8954_v23, %v9342_v24  ;;  %v3444_v2 = vld [vmem:[#allocation2 + $0xc9] sm:$0xff] }
 0x2a7   : > { %v4372_v6 = vsel %vm3271_vm2, %v4293_v31, 0  ;;  %v4090_v7 = vmul.f32 %v9162_v0, %v9166_v34  ;;  %v4191_v37 = vmul.f32 %v9252_v1, %v9172_v4  ;;  %v4711_v56 = vsub.f32 %v9508_v5, %v10209_v25  ;;  %v3545_v54 = vld [vmem:[#allocation2 + $0xca] sm:$0xff] }
 0x2a8   : > { %v9531_v11 = vand.u32 4294901760, %v4372_v6  ;;  %v4245_v20 = vadd.f32 %v9292_v12, %v4208_v30  ;;  %v3919_v63 = vadd.f32 %v3887_v39, %v3818_v49  ;;  %v3599_v14 = vadd.f32 %v3567_v60, %v3498_v47  ;;  %v9551_v30 = vld [vmem:[%s9949_s3 + $0x1] ss:$0 sm:$0xff] }
 0x2a9   : > { %v4712_v38 = vand.u32 4294901760, %v4711_v56  ;;  %v3770_v21 = vmul.f32 %v8961_v15, %v9352_v57  ;;  %v3871_v34 = vmul.f32 %v8971_v27, %v9364_v17  ;;  %v10212_v4 = vand.u32 4294901760, %v9516_v51 }
 0x2aa   : > { %6211 = vmatprep.subr.mxu0 %v9531_v11  ;;  %v4277_v31 = vmax.f32 %v4245_v20, 0.0  ;;  %v4021_v25 = vadd.f32 %v3989_v59, %v3919_v63  ;;  %v3701_v48 = vadd.f32 %v3669_v9, %v3599_v14  ;;  %v3973_v49 = vmul.f32 %v9380_v53, %v9134_v62 }
 0x2ab   : > { %6243 = vmatprep.subr.mxu1 %v4712_v38  ;;  %v4074_v47 = vmul.f32 %v9384_v45, %v9162_v0  ;;  %v4599_v39 = vsub.f32 %v9516_v51, %v10212_v4  ;;  %v3380_v60 = vmul.f32 %v8938_v40, %v3343_v13  ;;  %v3481_v59 = vmul.f32 %v9551_v30, %v3444_v2  ;;  %v9558_v45 = vld [vmem:[%s9949_s3 + $0x2] ss:$0 sm:$0xff] }
 0x2ac   : > { %v4324_v9 = vsel %vm3271_vm2, %v4277_v31, 0  ;;  %v4122_v53 = vadd.f32 %v4090_v7, %v4021_v25  ;;  %v3802_v56 = vadd.f32 %v3770_v21, %v3701_v48  ;;  %v3582_v20 = vmul.f32 %v9558_v45, %v3545_v54  ;;  %v3327_v7 = vld [vmem:[#allocation2 + $0x8] sm:$0xff] }
 0x2ad   : > { %v9561_v63 = vand.u32 4294901760, %v4324_v9  ;;  %v4600_v14 = vand.u32 4294901760, %v4599_v39  ;;  %v3513_v13 = vadd.f32 %v3481_v59, %v3380_v60  ;;  %v3684_v38 = vmul.f32 %v8954_v23, %v9388_v28  ;;  %v3428_v21 = vld [vmem:[#allocation2 + $0x9] sm:$0xff] }
 0x2ae   : > { %v4223_v4 = vadd.f32 %v4191_v37, %v4122_v53  ;;  %v3903_v2 = vadd.f32 %v3871_v34, %v3802_v56  ;;  %v4175_v25 = vmul.f32 %v9393_v35, %v9252_v1  ;;  %v3785_v48 = vmul.f32 %v8961_v15, %v9390_v43  ;;  %v3529_v39 = vld [vmem:[#allocation2 + $0xa] sm:$0xff] }
 0x2af   : > { %6212 = vmatpush3.xpose.msra.mxu0 %v9561_v63  ;;  %6244 = vmatpush3.xpose.msra.mxu1 %v4600_v14  ;;  %v3614_v54 = vadd.f32 %v3582_v20, %v3513_v13  ;;  %v3886_v31 = vmul.f32 %v8971_v27, %v9403_v41  ;;  %v3988_v28 = vmul.f32 %v9134_v62, %v9227_v16  ;;  %v3342_v14 = vld [vmem:[#allocation2 + $0xc0] sm:$0xff] }
 0x2b0   : > { %v4260_v37 = vadd.f32 %v9292_v12, %v4223_v4  ;;  %v4005_v34 = vadd.f32 %v3973_v49, %v3903_v2  ;;  %v4089_v35 = vmul.f32 %v9162_v0, %v9229_v18  ;;  %v9578_v43 = vsub.f32 %v4372_v6, %v9531_v11  ;;  %v10565_v2 = vld [vmem:[#allocation18_spill] sm:$0xff] }
 0x2b1   : > { %v9581_v60 = vsub.f32 %v4324_v9, %v9561_v63  ;;  %v3716_v59 = vadd.f32 %v3684_v38, %v3614_v54  ;;  %v3364_v53 = vmul.f32 %v8938_v40, %v3327_v7  ;;  %v3465_v41 = vmul.f32 %v9551_v30, %v3428_v21  ;;  %v3443_v7 = vld [vmem:[#allocation2 + $0xc1] sm:$0xff] }
 0x2b2   : > { %v4292_v56 = vmax.f32 %v4260_v37, 0.0  ;;  %v4106_v16 = vadd.f32 %v4074_v47, %v4005_v34  ;;  %v4190_v4 = vmul.f32 %v9252_v1, %v9246_v50  ;;  %v10220_v49 = vand.u32 4294901760, %v9578_v43 }
 0x2b3   : > { %v3817_v18 = vadd.f32 %v3785_v48, %v3716_v59  ;;  %v3497_v20 = vadd.f32 %v3465_v41, %v3364_v53  ;;  %v3566_v6 = vmul.f32 %v9558_v45, %v3529_v39  ;;  %v3668_v9 = vmul.f32 %v8954_v23, %v9415_v32  ;;  %v3544_v59 = vld [vmem:[#allocation2 + $0xc2] sm:$0xff] }
 0x2b4   : > { %v4369_v13 = vsel %vm3271_vm2, %v4292_v56, 0  ;;  %v4207_v38 = vadd.f32 %v4175_v25, %v4106_v16  ;;  %v4718_v47 = vsub.f32 %v9578_v43, %v10220_v49  ;;  %v3769_v50 = vmul.f32 %v8961_v15, %v10565_v2  ;;  %v10610_v49 = vld [vmem:[#allocation13_spill] sm:$0xff] }
 0x2b5   : > { %v9597_v21 = vand.u32 4294901760, %v4369_v13  ;;  %v3918_v48 = vadd.f32 %v3886_v31, %v3817_v18  ;;  %v3598_v54 = vadd.f32 %v3566_v6, %v3497_v20  ;;  %v3870_v37 = vmul.f32 %v8971_v27, %v9428_v22 }
 0x2b6   : > { %v4244_v32 = vadd.f32 %v9292_v12, %v4207_v38  ;;  %v4719_v34 = vand.u32 4294901760, %v4718_v47  ;;  %v10219_v25 = vand.u32 4294901760, %v9581_v60  ;;  %v3379_v39 = vmul.f32 %v8938_v40, %v3342_v14  ;;  %v3427_v14 = vld [vmem:[#allocation2 + $0x1] sm:$0xff] }
 0x2b7   : > { %10566 = vst [vmem:[#allocation27_spill] sm:$0xff] %v9597_v21  ;;  %6213 = vmatprep.subr.mxu0 %v9597_v21  ;;  %v4020_v53 = vadd.f32 %v3988_v28, %v3918_v48  ;;  %v3700_v41 = vadd.f32 %v3668_v9, %v3598_v54  ;;  %v3972_v56 = vmul.f32 %v9134_v62, %v9187_v44  ;;  %v3326_v44 = vld [vmem:[#allocation2] sm:$0xff] }
 0x2b8   : > { %v3480_v31 = vmul.f32 %v9551_v30, %v3443_v7  ;;  %v4276_v16 = vmax.f32 %v4244_v32, 0.0  ;;  %6245 = vmatprep.subr.mxu1 %v4719_v34  ;;  %v4073_v22 = vmul.f32 %v9162_v0, %v9265_v55  ;;  %v4174_v18 = vmul.f32 %v9252_v1, %v9278_v29 }
 0x2b9   : > { %v4606_v40 = vsub.f32 %v9581_v60, %v10219_v25  ;;  %v4121_v20 = vadd.f32 %v4089_v35, %v4020_v53  ;;  %v3801_v28 = vadd.f32 %v3769_v50, %v3700_v41  ;;  %v3581_v9 = vmul.f32 %v9558_v45, %v3544_v59  ;;  %v3528_v50 = vld [vmem:[#allocation2 + $0x2] sm:$0xff]  ;;  %v10609_v25 = vld [vmem:[#allocation14_spill] sm:$0xff] }
 0x2ba   : > { %v3512_v6 = vadd.f32 %v3480_v31, %v3379_v39  ;;  %v4321_v38 = vsel %vm3271_vm2, %v4276_v16, 0  ;;  %v3683_v55 = vmul.f32 %v8954_v23, %v9461_v46  ;;  %v3784_v29 = vmul.f32 %v8961_v15, %v9463_v58  ;;  %v6968_v23 = vld [vmem:[%s9949_s3] ss:$0 sm:$0xff] }
 0x2bb   : > { %v4607_v47 = vand.u32 4294901760, %v4606_v40  ;;  %v9621_v2 = vand.u32 4294901760, %v4321_v38  ;;  %v4222_v7 = vadd.f32 %v4190_v4, %v4121_v20  ;;  %v3902_v48 = vadd.f32 %v3870_v37, %v3801_v28 }
 0x2bc   : > { %v3613_v35 = vadd.f32 %v3581_v9, %v3512_v6  ;;  %v3885_v54 = vmul.f32 %v8971_v27, %v9473_v3  ;;  %v9626_v32 = vsub.f32 %v4369_v13, %v9597_v21  ;;  %v3363_v46 = vmul.f32 %v6968_v23, %v3326_v44 }
 0x2bd   : > { %6246 = vmatpush3.xpose.msra.mxu1 %v4607_v47  ;;  %v3464_v15 = vmul.f32 %v9551_v30, %v3427_v14  ;;  %6214 = vmatpush3.xpose.msra.mxu0 %v9621_v2  ;;  %v4259_v58 = vadd.f32 %v9292_v12, %v4222_v7  ;;  %v4004_v4 = vadd.f32 %v3972_v56, %v3902_v48 }
 0x2be   : > { %v3715_v37 = vadd.f32 %v3683_v55, %v3613_v35  ;;  %v3987_v34 = vmul.f32 %v9134_v62, %v9310_v36  ;;  %v4088_v27 = vmul.f32 %v9162_v0, %v9320_v61  ;;  %v10218_v3 = vand.u32 4294901760, %v9626_v32  ;;  %v6969_v36 = vld [vmem:[%s9949_s3 + $0x3] ss:$0 sm:$0xff]  ;;  %v10569_v55 = vld [vmem:[#allocation53_spill] sm:$0xff] }
 0x2bf   : > { %v3496_v13 = vadd.f32 %v3464_v15, %v3363_v46  ;;  %v3565_v39 = vmul.f32 %v9558_v45, %v3528_v50  ;;  %v9641_v59 = vsub.f32 %v4321_v38, %v9621_v2  ;;  %v4291_v30 = vmax.f32 %v4259_v58, 0.0  ;;  %v6970_v45 = vld [vmem:[%s9949_s3 + $0x4] ss:$0 sm:$0xff] }
 0x2c0   : > { %v4105_v53 = vadd.f32 %v4073_v22, %v4004_v4  ;;  %v3816_v41 = vadd.f32 %v3784_v29, %v3715_v37  ;;  %v4725_v56 = vsub.f32 %v9626_v32, %v10218_v3  ;;  %v3667_v61 = vmul.f32 %v6969_v36, %v9492_v19  ;;  %v6971_v19 = vld [vmem:[%s9949_s3 + $0x5] ss:$0 sm:$0xff]  ;;  %v10608_v3 = vld [vmem:[#allocation11_spill] sm:$0xff] }
 0x2c1   : > { %v3597_v31 = vadd.f32 %v3565_v39, %v3496_v13  ;;  %v3768_v16 = vmul.f32 %v6970_v45, %v9494_v26  ;;  %v4366_v22 = vsel %vm3271_vm2, %v4291_v30, 0  ;;  %v4189_v28 = vmul.f32 %v9252_v1, %v9328_v52 }
 0x2c2   : > { %v4206_v40 = vadd.f32 %v4174_v18, %v4105_v53  ;;  %v3917_v20 = vadd.f32 %v3885_v54, %v3816_v41  ;;  %v9657_v6 = vand.u32 4294901760, %v4366_v22  ;;  %v4726_v9 = vand.u32 4294901760, %v4725_v56  ;;  %v10568_v18 = vld [vmem:[#allocation56_spill] sm:$0xff] }
 0x2c3   : > { %v3699_v44 = vadd.f32 %v3667_v61, %v3597_v31  ;;  %v3869_v14 = vmul.f32 %v6971_v19, %v9500_v8  ;;  %v10217_v47 = vand.u32 4294901760, %v9641_v59  ;;  %v9667_v29 = vsub.f32 %v10569_v55, %v10568_v18  ;;  %v10572_v55 = vld [vmem:[#allocation33_spill] sm:$0xff] }
 0x2c4   : > { %10567 = vst [vmem:[#allocation36_spill] sm:$0xff] %v9657_v6  ;;  %v4243_v38 = vadd.f32 %v9292_v12, %v4206_v40  ;;  %v4019_v26 = vadd.f32 %v3987_v34, %v3917_v20  ;;  %6215 = vmatprep.subr.mxu0 %v9657_v6  ;;  %6247 = vmatprep.subr.mxu1 %v4726_v9 }
 0x2c5   : > { %v3800_v52 = vadd.f32 %v3768_v16, %v3699_v44  ;;  %v3971_v7 = vmul.f32 %v9134_v62, %v9342_v24  ;;  %v9673_v48 = vsub.f32 %v4366_v22, %v9657_v6  ;;  %v4613_v50 = vsub.f32 %v9641_v59, %v10217_v47  ;;  %v10607_v47 = vld [vmem:[#allocation10_spill] sm:$0xff] }
 0x2c6   : > { %v4275_v8 = vmax.f32 %v4243_v38, 0.0  ;;  %v4120_v35 = vadd.f32 %v4088_v27, %v4019_v26  ;;  %v9679_v54 = vand.u32 4294901760, %v9667_v29  ;;  %v4072_v34 = vmul.f32 %v9162_v0, %v9352_v57 }
 0x2c7   : > { %v3901_v23 = vadd.f32 %v3869_v14, %v3800_v52  ;;  %v10216_v46 = vand.u32 4294901760, %v9673_v48  ;;  %v4614_v4 = vand.u32 4294901760, %v4613_v50  ;;  %v4173_v41 = vmul.f32 %v9252_v1, %v9364_v17  ;;  %v6972_v1 = vld [vmem:[%s9950_s4] sm:$0xff]  ;;  %v10571_v14 = vld [vmem:[#allocation63_spill] sm:$0xff] }
 0x2c8   : > { %v4318_v15 = vsel %vm3271_vm2, %v4275_v8, 0  ;;  %v4221_v58 = vadd.f32 %v4189_v28, %v4120_v35  ;;  %v4510_v62 = vsub.f32 %v9667_v29, %v9679_v54  ;;  %v7035_v22 = vmov 24   ;;  %v10574_v35 = vld [vmem:[#allocation31_spill] sm:$0xff] }
 0x2c9   : > { %v9685_v24 = vand.u32 4294901760, %v4318_v15  ;;  %v4003_v37 = vadd.f32 %v3971_v7, %v3901_v23  ;;  %v4732_v27 = vsub.f32 %v9673_v48, %v10216_v46  ;;  %6248 = vmatpush3.xpose.msra.mxu1 %v4614_v4  ;;  %6931 = vset.pattern.permute.xlu0 %v7035_v22  ;;  %v10573_v7 = vld [vmem:[#allocation59_spill] sm:$0xff]  ;;  %v10576_v23 = vld [vmem:[#allocation57_spill] sm:$0xff]  ;;  %v10579_v4 = vld [vmem:[#allocation58_spill] sm:$0xff] }
 0x2ca   : > { %v4258_v13 = vadd.f32 %v9292_v12, %v4221_v58  ;;  %v4511_v39 = vand.u32 4294901760, %v4510_v62  ;;  %4309 = vperm.xlu0 %6931, %v6972_v1   ;;  %v10575_v50 = vld [vmem:[#allocation55_spill] sm:$0xff]  ;;  %v10578_v58 = vld [vmem:[#allocation30_spill] sm:$0xff]  ;;  %v10594_v22 = vld [vmem:[#allocation45_spill] sm:$0xff] }
 0x2cb   : > { %6216 = vmatpush3.xpose.msra.mxu0 %v9685_v24  ;;  %v9695_v30 = vsub.f32 %v4318_v15, %v9685_v24  ;;  %v4104_v53 = vadd.f32 %v4072_v34, %v4003_v37  ;;  %v4733_v56 = vand.u32 4294901760, %v4732_v27  ;;  %v10577_v15 = vld [vmem:[#allocation34_spill] sm:$0xff]  ;;  %v10581_v37 = vld [vmem:[#allocation39_spill] sm:$0xff]  ;;  %v10582_v34 = vld [vmem:[#allocation29_spill] sm:$0xff] }
 0x2cc   : > { %v4290_v31 = vmax.f32 %v4258_v13, 0.0  ;;  %6219 = vmatprep.mubr.f32.mxu0 %v4511_v39  ;;  %v10580_v62 = vld [vmem:[#allocation54_spill] sm:$0xff]  ;;  %v10583_v27 = vld [vmem:[#allocation47_spill] sm:$0xff]  ;;  %v10606_v46 = vld [vmem:[#allocation41_spill] sm:$0xff] }
 0x2cd   : > { %10570 = vst [vmem:[#allocation44_spill] sm:$0xff] %v9695_v30  ;;  %v4205_v0 = vadd.f32 %v4173_v41, %v4104_v53  ;;  %6249 = vmatprep.subr.mxu1 %v4733_v56  ;;  %v10215_v57 = vand.u32 4294901760, %v9695_v30  ;;  %v10584_v13 = vld [vmem:[#allocation50_spill] sm:$0xff]  ;;  %v10586_v53 = vld [vmem:[#allocation32_spill] sm:$0xff]  ;;  %v10587_v41 = vld [vmem:[#allocation7_spill] sm:$0xff] }
 0x2ce   : > { %v4363_v36 = vsel %vm3271_vm2, %v4290_v31, 0  ;;  %v10588_v56 = vld [vmem:[#allocation52_spill] sm:$0xff]  ;;  %v10595_v1 = vld [vmem:[#allocation46_spill] sm:$0xff] }
 0x2cf   : > { %v9701_v61 = vand.u32 4294901760, %v4363_v36  ;;  %v4242_v45 = vadd.f32 %v9292_v12, %v4205_v0  ;;  %v4620_v16 = vsub.f32 %v9695_v30, %v10215_v57  ;;  %v10589_v31 = vld [vmem:[#allocation60_spill] sm:$0xff]  ;;  %v10590_v0 = vld [vmem:[#allocation38_spill] sm:$0xff]  ;;  %v10605_v57 = vld [vmem:[#allocation15_spill] sm:$0xff] }
 0x2d1   : > { %6217 = vmatprep.subr.mxu0 %v9701_v61  ;;  %v4274_v17 = vmax.f32 %v4242_v45, 0.0  ;;  %v4621_v40 = vand.u32 4294901760, %v4620_v16  ;;  %v9712_v20 = vsub.f32 %v4363_v36, %v9701_v61  ;;  %v10591_v36 = vld [vmem:[#allocation6_spill] sm:$0xff]  ;;  %v10592_v45 = vld [vmem:[#allocation64_spill] sm:$0xff] }
 0x2d2   : > { %v10593_v16 = vld [vmem:[#allocation62_spill] sm:$0xff] }
 0x2d3   : > { %v4315_v12 = vsel %vm3271_vm2, %v4274_v17, 0  ;;  %6250 = vmatpush3.xpose.msra.mxu1 %v4621_v40  ;;  %v10214_v28 = vand.u32 4294901760, %v9712_v20  ;;  %v10596_v17 = vld [vmem:[#allocation48_spill] sm:$0xff] }
 0x2d4   : > { %v9716_v9 = vand.u32 4294901760, %v4315_v12  ;;  %v10597_v40 = vld [vmem:[#allocation8_spill] sm:$0xff] }
 0x2d5   : > { %v4739_v44 = vsub.f32 %v9712_v20, %v10214_v28  ;;  %v10604_v28 = vld [vmem:[#allocation43_spill] sm:$0xff] }
 0x2d6   : > { %6218 = vmatpush3.xpose.msra.mxu0 %v9716_v9  ;;  %v9723_v19 = vsub.f32 %v4315_v12, %v9716_v9  ;;  %v10598_v12 = vld [vmem:[#allocation51_spill] sm:$0xff] }
 0x2d7   : > { %6255 = vmatprep.subr.mxu0 %v10571_v14  ;;  %v4740_v38 = vand.u32 4294901760, %v4739_v44  ;;  %v10599_v44 = vld [vmem:[#allocation12_spill] sm:$0xff] }
 0x2d8   : > { %v10213_v26 = vand.u32 4294901760, %v9723_v19 }
 0x2d9   : > { %6220 = vmatmul.mubr.f32.vlgmr.msra.gmra.mxu0 %v4511_v39  ;;  %6251 = vmatprep.subr.mxu1 %v4740_v38  ;;  %v10585_v39 = vld [vmem:[#allocation49_spill] sm:$0xff] }
 0x2da   : > { %6256 = vmatpush3.xpose.msra.mxu0 %v10572_v55  ;;  %v4627_v52 = vsub.f32 %v9723_v19, %v10213_v26  ;;  %6287 = vmatprep.mubr.f32.mxu0 %v9667_v29  ;;  %v10600_v38 = vld [vmem:[#allocation61_spill] sm:$0xff]  ;;  %v10603_v26 = vld [vmem:[#allocation16_spill] sm:$0xff] }
 0x2db   : > { %6257 = vmatprep.subr.mxu0 %v10573_v7 }
 0x2dc   : > { %v4628_v8 = vand.u32 4294901760, %v4627_v52  ;;  %v10601_v52 = vld [vmem:[#allocation9_spill] sm:$0xff] }
 0x2de   : > { %6252 = vmatpush3.xpose.msra.mxu1 %v4628_v8  ;;  %6258 = vmatpush3.xpose.msra.mxu0 %v10574_v35  ;;  %v10602_v8 = vld [vmem:[#allocation40_spill] sm:$0xff] }
 0x2df   : > { %6259 = vmatprep.subr.mxu0 %v10575_v50  ;;  %6289 = vmatprep.subr.mxu1 %v10576_v23 }
 0x2e1   : > { %6254 = vmatmul.mubr.f32.vlgmr.msra.gmra.mxu1 %v10568_v18 }
 0x2e2   : > { %6260 = vmatpush3.xpose.msra.mxu0 %v10577_v15  ;;  %6290 = vmatpush3.xpose.msra.mxu1 %v10578_v58 }
 0x2e3   : > { %6261 = vmatprep.subr.mxu0 %v10579_v4  ;;  %6291 = vmatprep.subr.mxu1 %v10580_v62 }
 0x2e4   : > { %6321 = vmatprep.mubr.f32.mxu1 %v9679_v54 }
 0x2e6   : > { %6262 = vmatpush3.xpose.msra.mxu0 %v10581_v37  ;;  %6292 = vmatpush3.xpose.msra.mxu1 %v10582_v34 }
 0x2e7   : > { %6263 = vmatprep.subr.mxu0 %v10583_v27  ;;  %6293 = vmatprep.subr.mxu1 %v10584_v13 }
 0x2ea   : > { %6264 = vmatpush3.xpose.msra.mxu0 %v10585_v39  ;;  %6294 = vmatpush3.xpose.msra.mxu1 %v10586_v53 }
 0x2eb   : > { %6265 = vmatprep.subr.mxu0 %v10587_v41  ;;  %6295 = vmatprep.subr.mxu1 %v10588_v56 }
 0x2ee   : > { %6266 = vmatpush3.xpose.msra.mxu0 %v10589_v31  ;;  %6296 = vmatpush3.xpose.msra.mxu1 %v10590_v0 }
 0x2ef   : > { %6267 = vmatprep.subr.mxu0 %v10591_v36  ;;  %6297 = vmatprep.subr.mxu1 %v10592_v45 }
 0x2f2   : > { %6268 = vmatpush3.xpose.msra.mxu0 %v10593_v16  ;;  %6298 = vmatpush3.xpose.msra.mxu1 %v10594_v22 }
 0x2f3   : > { %6269 = vmatprep.subr.mxu0 %v10595_v1  ;;  %6299 = vmatprep.subr.mxu1 %v10596_v17 }
 0x2f6   : > { %6270 = vmatpush3.xpose.msra.mxu0 %v10597_v40  ;;  %6300 = vmatpush3.xpose.msra.mxu1 %v10598_v12 }
 0x2f7   : > { %6271 = vmatprep.subr.mxu0 %v10599_v44  ;;  %6301 = vmatprep.subr.mxu1 %v10600_v38 }
 0x2fa   : > { %6272 = vmatpush3.xpose.msra.mxu0 %v10601_v52  ;;  %6302 = vmatpush3.xpose.msra.mxu1 %v10602_v8 }
 0x2fb   : > { %6273 = vmatprep.subr.mxu0 %v10603_v26  ;;  %6303 = vmatprep.subr.mxu1 %v10604_v28 }
 0x2fe   : > { %6274 = vmatpush3.xpose.msra.mxu0 %v10605_v57  ;;  %6304 = vmatpush3.xpose.msra.mxu1 %v10606_v46  ;;  %v10611_v57 = vld [vmem:[#allocation17_spill] sm:$0xff] }
 0x2ff   : > { %6275 = vmatprep.subr.mxu0 %v9433_v33  ;;  %6305 = vmatprep.subr.mxu1 %v10607_v47 }
 0x302   : > { %6276 = vmatpush3.xpose.msra.mxu0 %v9449_v42  ;;  %6306 = vmatpush3.xpose.msra.mxu1 %v10608_v3  ;;  %v10612_v42 = vld [vmem:[#allocation20_spill] sm:$0xff] }
 0x303   : > { %6277 = vmatprep.subr.mxu0 %v9508_v5  ;;  %6307 = vmatprep.subr.mxu1 %v10609_v25  ;;  %v10613_v5 = vld [vmem:[#allocation21_spill] sm:$0xff] }
 0x306   : > { %6278 = vmatpush3.xpose.msra.mxu0 %v9516_v51  ;;  %6308 = vmatpush3.xpose.msra.mxu1 %v10610_v49 }
 0x307   : > { %6279 = vmatprep.subr.mxu0 %v9578_v43  ;;  %6309 = vmatprep.subr.mxu1 %v10611_v57 }
 0x30a   : > { %6280 = vmatpush3.xpose.msra.mxu0 %v9581_v60  ;;  %6310 = vmatpush3.xpose.msra.mxu1 %v9426_v10 }
 0x30b   : > { %6281 = vmatprep.subr.mxu0 %v9626_v32  ;;  %6311 = vmatprep.subr.mxu1 %v10612_v42 }
 0x30e   : > { %6282 = vmatpush3.xpose.msra.mxu0 %v9641_v59  ;;  %6312 = vmatpush3.xpose.msra.mxu1 %v10613_v5  ;;  %v10614_v5 = vand.u32 4294901760, %v10571_v14  ;;  %v10624_v14 = vand.u32 4294901760, %v10587_v41 }
 0x30f   : > { %6283 = vmatprep.subr.mxu0 %v9673_v48  ;;  %6313 = vmatprep.subr.mxu1 %v9531_v11 }
 0x312   : > { %6284 = vmatpush3.xpose.msra.mxu0 %v9695_v30  ;;  %6314 = vmatpush3.xpose.msra.mxu1 %v9561_v63  ;;  %v10615_v30 = vand.u32 4294901760, %v10572_v55  ;;  %v10625_v55 = vand.u32 4294901760, %v10589_v31 }
 0x313   : > { %6285 = vmatprep.subr.mxu0 %v9712_v20  ;;  %6315 = vmatprep.subr.mxu1 %v9597_v21  ;;  %v10616_v21 = vand.u32 4294901760, %v10573_v7  ;;  %v10626_v7 = vand.u32 4294901760, %v10591_v36 }
 0x316   : > { %6286 = vmatpush3.xpose.msra.mxu0 %v9723_v19  ;;  %6316 = vmatpush3.xpose.msra.mxu1 %v9621_v2 }
 0x317   : > { %6317 = vmatprep.subr.mxu1 %v9657_v6  ;;  %6323 = vmatprep.subr.mxu0 %v10614_v5  ;;  %v10617_v6 = vand.u32 4294901760, %v10574_v35  ;;  %v10618_v5 = vand.u32 4294901760, %v10575_v50  ;;  %v10627_v35 = vand.u32 4294901760, %v10593_v16  ;;  %v10628_v50 = vand.u32 4294901760, %v10595_v1 }
 0x319   : > { %6288 = vmatmul.mubr.f32.vlgmr.msra.gmra.mxu0 %v9667_v29  ;;  %v10619_v29 = vand.u32 4294901760, %v10577_v15  ;;  %v10630_v15 = vand.u32 4294901760, %v10599_v44  ;;  %v7036_v44 = vmov 0.0  }
 0x31a   : > { %6318 = vmatpush3.xpose.msra.mxu1 %v9685_v24  ;;  %6324 = vmatpush3.xpose.msra.mxu0 %v10615_v30  ;;  %v10622_v30 = vand.u32 4294901760, %v10583_v27  ;;  %v10636_v27 = vld [vmem:[#allocation19_spill] sm:$0xff] }
 0x31b   : > { %6319 = vmatprep.subr.mxu1 %v9701_v61  ;;  %6325 = vmatprep.subr.mxu0 %v10616_v21  ;;  %v10620_v21 = vand.u32 4294901760, %v10579_v4  ;;  %v10632_v4 = vand.u32 4294901760, %v10603_v26 }
 0x31c   : > { %6355 = vmatprep.mubr.f32.mxu0 %v10568_v18 }
 0x31e   : > { %6320 = vmatpush3.xpose.msra.mxu1 %v9716_v9  ;;  %6326 = vmatpush3.xpose.msra.mxu0 %v10617_v6  ;;  %v10621_v6 = vand.u32 4294901760, %v10581_v37 }
 0x31f   : > { %6327 = vmatprep.subr.mxu0 %v10618_v5  ;;  %6357 = vmatprep.subr.mxu1 %v10576_v23  ;;  %v10629_v23 = vand.u32 4294901760, %v10597_v40  ;;  %v10652_v40 = vld [vmem:[#allocation36_spill] sm:$0xff] }
 0x321   : > { %6322 = vmatmul.mubr.f32.vlgmr.msra.gmra.mxu1 %v9679_v54  ;;  %v10623_v54 = vand.u32 4294901760, %v10585_v39  ;;  %v10641_v39 = vand.u32 4294901760, %v9578_v43 }
 0x322   : > { %6328 = vmatpush3.xpose.msra.mxu0 %v10619_v29  ;;  %6358 = vmatpush3.xpose.msra.mxu1 %v10578_v58  ;;  %v10631_v58 = vand.u32 4294901760, %v10601_v52 }
 0x323   : > { %6329 = vmatprep.subr.mxu0 %v10620_v21  ;;  %6359 = vmatprep.subr.mxu1 %v10580_v62  ;;  %v10633_v62 = vld [vmem:[#allocation15_spill] sm:$0xff] }
 0x324   : > { %6389 = vmatprep.mubr.f32.mxu1 %v10568_v18  ;;  %v10634_v37 = vand.u32 4294901760, %v10633_v62 }
 0x326   : > { %6330 = vmatpush3.xpose.msra.mxu0 %v10621_v6  ;;  %6360 = vmatpush3.xpose.msra.mxu1 %v10582_v34  ;;  %v10635_v34 = vand.u32 4294901760, %v9433_v33  ;;  %v5265_v33 = vld [vmem:[%s9951_s5] sm:$0xff] }
 0x327   : > { %6331 = vmatprep.subr.mxu0 %v10622_v30  ;;  %6361 = vmatprep.subr.mxu1 %v10584_v13  ;;  %v10637_v13 = vand.u32 4294901760, %v10636_v27 }
 0x32a   : > { %6332 = vmatpush3.xpose.msra.mxu0 %v10623_v54  ;;  %6362 = vmatpush3.xpose.msra.mxu1 %v10586_v53 }
 0x32b   : > { %6333 = vmatprep.subr.mxu0 %v10624_v14  ;;  %6363 = vmatprep.subr.mxu1 %v10588_v56  ;;  %v10642_v56 = vand.u32 4294901760, %v9581_v60  ;;  %v10646_v60 = vand.u32 4294901760, %v9673_v48  ;;  %v10651_v48 = vand.u32 4294901760, %v9723_v19 }
 0x32e   : > { %6334 = vmatpush3.xpose.msra.mxu0 %v10625_v55  ;;  %6364 = vmatpush3.xpose.msra.mxu1 %v10590_v0  ;;  %v10645_v0 = vld [vmem:[#allocation21_spill] sm:$0xff] }
 0x32f   : > { %6335 = vmatprep.subr.mxu0 %v10626_v7  ;;  %6365 = vmatprep.subr.mxu1 %v10592_v45  ;;  %v10647_v45 = vld [vmem:[#allocation44_spill] sm:$0xff] }
 0x330   : > { %v10648_v16 = vand.u32 4294901760, %v10647_v45 }
 0x332   : > { %6336 = vmatpush3.xpose.msra.mxu0 %v10627_v35  ;;  %6366 = vmatpush3.xpose.msra.mxu1 %v10594_v22  ;;  %v10649_v22 = vand.u32 4294901760, %v9712_v20 }
 0x333   : > { %6337 = vmatprep.subr.mxu0 %v10628_v50  ;;  %6367 = vmatprep.subr.mxu1 %v10596_v17 }
 0x336   : > { %6338 = vmatpush3.xpose.msra.mxu0 %v10629_v23  ;;  %6368 = vmatpush3.xpose.msra.mxu1 %v10598_v12 }
 0x337   : > { %6339 = vmatprep.subr.mxu0 %v10630_v15  ;;  %6369 = vmatprep.subr.mxu1 %v10600_v38 }
 0x33a   : > { %6340 = vmatpush3.xpose.msra.mxu0 %v10631_v58  ;;  %6370 = vmatpush3.xpose.msra.mxu1 %v10602_v8 }
 0x33b   : > { %6341 = vmatprep.subr.mxu0 %v10632_v4  ;;  %6371 = vmatprep.subr.mxu1 %v10604_v28  ;;  %v10638_v28 = vld [vmem:[#allocation22_spill] sm:$0xff] }
 0x33c   : > { %v10639_v26 = vand.u32 4294901760, %v10638_v28 }
 0x33e   : > { %6342 = vmatpush3.xpose.msra.mxu0 %v10634_v37  ;;  %6372 = vmatpush3.xpose.msra.mxu1 %v10606_v46  ;;  %v10640_v46 = vand.u32 4294901760, %v9516_v51  ;;  %v10643_v51 = vand.u32 4294901760, %v9626_v32 }
 0x33f   : > { %6343 = vmatprep.subr.mxu0 %v10635_v34  ;;  %6373 = vmatprep.subr.mxu1 %v10607_v47  ;;  %v5267_v47 = vld [vmem:[%s269_s19 + $0x8] sm:$0x1f] }
 0x340   : > { %v5275_v53 = vsel %vm488_vm0, %v5267_v47, 0 }
 0x342   : > { %6344 = vmatpush3.xpose.msra.mxu0 %v10637_v13  ;;  %6374 = vmatpush3.xpose.msra.mxu1 %v10608_v3  ;;  %v5269_v3 = vsel %vm325_vm1, %v5265_v33, 0 }
 0x343   : > { %6345 = vmatprep.subr.mxu0 %v10639_v26  ;;  %6375 = vmatprep.subr.mxu1 %v10609_v25  ;;  %v5266_v25 = vld [vmem:[%s269_s19] sm:$0x1f]  ;;  %v5344_v41 = vand.u32 4294901760, %v5269_v3 }
 0x344   : > { %v5272_v43 = vsel %vm488_vm0, %v5266_v25, 0 }
 0x345   : > { %v5345_v31 = vsub.f32 %v5269_v3, %v5344_v41  ;;  %v5309_v36 = vand.u32 4294901760, %v5272_v43  ;;  %v4310_v6 = vpop.permute.xlu0 %4309 }
 0x346   : > { %6346 = vmatpush3.xpose.msra.mxu0 %v10640_v46  ;;  %6376 = vmatpush3.xpose.msra.mxu1 %v10610_v49  ;;  %v5307_v49 = vand.u32 4294901760, %v5275_v53 }
 0x347   : > { %6347 = vmatprep.subr.mxu0 %v10641_v39  ;;  %6377 = vmatprep.subr.mxu1 %v10611_v57  ;;  %v10644_v57 = vand.u32 4294901760, %v9641_v59  ;;  %v5346_v32 = vand.u32 4294901760, %v5345_v31  ;;  %v10650_v59 = vld [vmem:[#allocation27_spill] sm:$0xff] }
 0x349   : > { %v5347_v17 = vsub.f32 %v5345_v31, %v5346_v32 }
 0x34a   : > { %6348 = vmatpush3.xpose.msra.mxu0 %v10642_v56  ;;  %6378 = vmatpush3.xpose.msra.mxu1 %v9426_v10  ;;  %v5386_v10 = vsub.f32 %v5275_v53, %v5307_v49 }
 0x34b   : > { %6349 = vmatprep.subr.mxu0 %v10643_v51  ;;  %6379 = vmatprep.subr.mxu1 %v10612_v42  ;;  %v5392_v42 = vsub.f32 %v5272_v43, %v5309_v36 }
 0x34c   : > { %v5387_v1 = vand.u32 4294901760, %v5386_v10 }
 0x34e   : > { %6350 = vmatpush3.xpose.msra.mxu0 %v10644_v57  ;;  %6380 = vmatpush3.xpose.msra.mxu1 %v10645_v0  ;;  %v5388_v12 = vsub.f32 %v5386_v10, %v5387_v1 }
 0x34f   : > { %6351 = vmatprep.subr.mxu0 %v10646_v60  ;;  %6381 = vmatprep.subr.mxu1 %v9531_v11  ;;  %v5393_v11 = vand.u32 4294901760, %v5392_v42 }
 0x350   : > { %v5389_v19 = vand.u32 4294901760, %v5388_v12 }
 0x351   : > { %v5394_v20 = vsub.f32 %v5392_v42, %v5393_v11 }
 0x352   : > { %6352 = vmatpush3.xpose.msra.mxu0 %v10648_v16  ;;  %6382 = vmatpush3.xpose.msra.mxu1 %v9561_v63  ;;  %v5348_v63 = vand.u32 4294901760, %v5347_v17 }
 0x353   : > { %6353 = vmatprep.subr.mxu0 %v10649_v22  ;;  %6383 = vmatprep.subr.mxu1 %v10650_v59 }
 0x356   : > { %6354 = vmatpush3.xpose.msra.mxu0 %v10651_v48  ;;  %6384 = vmatpush3.xpose.msra.mxu1 %v9621_v2  ;;  %v5395_v2 = vand.u32 4294901760, %v5394_v20 }
 0x357   : > { %6385 = vmatprep.subr.mxu1 %v10652_v40  ;;  %5308 = vmatprep.subr.mxu0 %v5307_v49 }
 0x359   : > { %6356 = vmatmul.mubr.f32.vlgmr.msra.gmra.mxu0 %v10568_v18 }
 0x35a   : > { %6386 = vmatpush3.xpose.msra.mxu1 %v9685_v24  ;;  %5310 = vmatpush1.msra.mxu0 %v5309_v36 }
 0x35b   : > { %6387 = vmatprep.subr.mxu1 %v9701_v61  ;;  %5343 = vmatprep.mubr.f32.mxu0 %v7036_v44 }
 0x35c   : > { %5469 = vmatprep.subr.mxu0 %v5386_v10 }
 0x35d   : > { %5349 = vmatmul.mubr.f32.vlgmr.msra.gmra.mxu0 %v5348_v63 }
 0x35e   : > { %6388 = vmatpush3.xpose.msra.mxu1 %v9716_v9  ;;  %5472 = vmatpush1.msra.mxu0 %v5392_v42 }
 0x35f   : > { %5390 = vmatprep.subr.mxu1 %v5389_v19  ;;  %5505 = vmatprep.mubr.f32.mxu0 %v7036_v44 }
 0x360   : > { %5623 = vmatprep.subr.mxu0 %v5387_v1 }
 0x361   : > { %6390 = vmatmul.mubr.f32.vlgmr.msra.gmra.mxu1 %v10568_v18  ;;  %5508 = vmatmul.mubr.f32.vlgmr.msra.gmra.mxu0 %v5345_v31 }
 0x362   : > { %5396 = vmatpush1.msra.mxu1 %v5395_v2  ;;  %5429 = vmatprep.mubr.f32.mxu1 %v7036_v44 }
 0x363   : > { %5545 = vmatprep.subr.mxu1 %v5307_v49  ;;  %5627 = vmatpush1.msra.mxu0 %v5393_v11 }
 0x364   : > { %5660 = vmatprep.mubr.f32.mxu0 %v7036_v44 }
 0x365   : > { %5431 = vmatmul.mubr.f32.vlgmr.msra.gmra.mxu1 %v5344_v41  ;;  %5662 = vmatmul.mubr.f32.vlgmr.msra.gmra.mxu0 %v5344_v41 }
 0x366   : > { %5547 = vmatpush1.msra.mxu1 %v5309_v36  ;;  %5580 = vmatprep.mubr.f32.mxu1 %v7036_v44 }
 0x367   : > { %5699 = vmatprep.subr.mxu1 %v5307_v49 }
 0x369   : > { %5584 = vmatmul.mubr.f32.vlgmr.msra.gmra.mxu1 %v5346_v32 }
 0x36a   : > { %5701 = vmatpush1.msra.mxu1 %v5309_v36  ;;  %5734 = vmatprep.mubr.f32.mxu1 %v7036_v44 }
 0x36d   : > { %5736 = vmatmul.mubr.f32.vlgmr.msra.gmra.mxu1 %v5344_v41 }
 0x399   : > { %v4513_v24 = vpop.f32.mrf.mxu0 }
 0x39a   : > { %v4514_v7 = vadd.f32 %v4513_v24, %v4310_v6 }
 0x39b   : > { %v4515_v61 = vpop.f32.mrf.mxu0 }
 0x39c   : > { %v4516_v50 = vadd.f32 %v4515_v61, %v4310_v6 }
 0x3a1   : > { %v4745_v38 = vpop.f32.mrf.mxu1 }
 0x3a2   : > { %v4746_v58 = vadd.f32 %v4745_v38, %v4514_v7 }
 0x3a3   : > { %v4747_v52 = vpop.f32.mrf.mxu1 }
 0x3a4   : > { %v4748_v37 = vadd.f32 %v4747_v52, %v4516_v50 }
 0x3d9   : > { %v4882_v9 = vpop.f32.mrf.mxu0 }
 0x3da   : > { %v4883_v34 = vadd.f32 %v4882_v9, %v4746_v58 }
 0x3db   : > { %v4884_v18 = vpop.f32.mrf.mxu0 }
 0x3dc   : > { %v4885_v33 = vadd.f32 %v4884_v18, %v4748_v37 }
 0x3e1   : > { %v4988_v5 = vpop.f32.mrf.mxu1 }
 0x3e2   : > { %v4989_v47 = vadd.f32 %v4988_v5, %v4883_v34 }
 0x3e3   : > { %v4990_v30 = vpop.f32.mrf.mxu1 }
 0x3e4   : > { %v4991_v53 = vadd.f32 %v4990_v30, %v4885_v33 }
 0x419   : > { %v5156_v8 = vpop.f32.mrf.mxu0 }
 0x41a   : > { %v5157_v25 = vadd.f32 %v5156_v8, %v4989_v47 }
 0x41b   : > { %v5158_v29 = vpop.f32.mrf.mxu0 }
 0x41c   : > { %v5159_v43 = vadd.f32 %v5158_v29, %v4991_v53 }
 0x41d   : > { %v5350_v21 = vpop.f32.mrf.mxu0 }
 0x41f   : > { %v5352_v54 = vpop.f32.mrf.mxu0 }
 0x421   : > { %v5260_v14 = vpop.f32.mrf.mxu1  ;;  %v5509_v55 = vpop.f32.mrf.mxu0 }
 0x422   : > { %v5261_v31 = vadd.f32 %v5260_v14, %v5157_v25 }
 0x423   : > { %v5262_v35 = vpop.f32.mrf.mxu1  ;;  %v5511_v15 = vpop.f32.mrf.mxu0 }
 0x424   : > { %v5263_v60 = vadd.f32 %v5262_v35, %v5159_v43 }
 0x425   : > { %v5432_v23 = vpop.f32.mrf.mxu1  ;;  %v5663_v26 = vpop.f32.mrf.mxu0 }
 0x426   : > { %v5433_v4 = vadd.f32 %v5432_v23, %v5350_v21 }
 0x427   : > { %v5434_v62 = vpop.f32.mrf.mxu1  ;;  %v5665_v51 = vpop.f32.mrf.mxu0 }
 0x428   : > { %v5435_v27 = vadd.f32 %v5434_v62, %v5352_v54  ;;  %v5510_v13 = vadd.f32 %v5509_v55, %v5433_v4 }
 0x429   : > { %v5585_v28 = vpop.f32.mrf.mxu1 }
 0x42a   : > { %v5512_v46 = vadd.f32 %v5511_v15, %v5435_v27  ;;  %v5586_v3 = vadd.f32 %v5585_v28, %v5510_v13 }
 0x42b   : > { %v5587_v39 = vpop.f32.mrf.mxu1 }
 0x42c   : > { %v5588_v41 = vadd.f32 %v5587_v39, %v5512_v46  ;;  %v5664_v56 = vadd.f32 %v5663_v26, %v5586_v3 }
 0x42d   : > { %v5737_v49 = vpop.f32.mrf.mxu1 }
 0x42e   : > { %v5666_v57 = vadd.f32 %v5665_v51, %v5588_v41  ;;  %v5738_v0 = vadd.f32 %v5737_v49, %v5664_v56 }
 0x42f   : > { %v5739_v36 = vpop.f32.mrf.mxu1 }
 0x430   : > { %v5742_v10 = vadd.f32 %v5738_v0, %v5261_v31  ;;  %v5740_v32 = vadd.f32 %v5739_v36, %v5666_v57 }
 0x432   : > { %5744 = vst [vmem:[%s259_s9] sm:$0xff] %v5742_v10  ;;  %v5743_v45 = vadd.f32 %v5740_v32, %v5263_v60 }
 0x434   : > { %5745 = vst [vmem:[%s259_s9 + $0x8] sm:$0xff] %v5743_v45 }
 0x435   : > { %6986 = shalt.err (!%p6983_p3)
}
 0x436   : > { %s6987_s19 = scalar_lea.hbm %s5759_s14, 256  ;;  %s6991_s11 = scalar_lea.hbm %s9952_s6, 512 }
 0x437   : > { %p6988_p4 = scmp.ne.s32.totalorder %s5759_s14, %s6987_s19  ;;  %p6992_p9 = scmp.lt.s32.totalorder %s5759_s14, %s9952_s6 }
 0x438   : > { %p6993_p10 = scmp.lt.s32.totalorder %s6991_s11, %s6987_s19 }
 0x439   : > { %p6989_p7 = pnand %p6988_p4, %p7111_p5 }
 0x43a   : > { %p6994_p11 = por %p6993_p10, %p6992_p9 }
 0x43b   : > { %p6990_p8 = pneg %p6989_p7 }
 0x43d   : > { %p6995_p12 = pnand %p6994_p11, %p6990_p8 }
 0x43f   : > { %6998 = shalt.err (!%p6995_p12)
}
 0x440   : > { %6890 = dma.vmem_to_hbm [thread:$0]  (%p7111_p5), %s5762_s10, 256, %s5759_s14, %s5747_s15  }
 0x441 PF: > { %p6896_p13 = scmp.ge.s32.totalorder %s7033_s24, 2  ;;  %s5773_s9 = sand.u32 1, %s7021_s21  }
 0x442   : > { %s5774_s12 = scalar_lea.sflag [#allocation4], %s5773_s9 }
 0x443   : > { %p6893_p0 = pnand %p6896_p13, %p7115_p6 }
 0x445   : > { %p6894_p1 = pneg %p6893_p0 }
 0x447   : > { %7016 = dma.done.wait (%p6894_p1), %s5774_s12, 256  }
 0x448   : > { %7018 = vsyncadd (%p6894_p1), %s5774_s12, 4294967040  ;;  %p16_p2 = scmp.ge.s32.totalorder %s7098_s27, 4   ;;  %s10653_s21 = smov %s7025_s22 }
 0x449   : > { %s10654_s22 = smov %s7029_s23  ;;  %s10655_s23 = smov %s7109_s30 }
 0x44a   : > { %s10656_s24 = smov %s7098_s27  ;;  %18 = sbr.rel (!%p16_p2) target bundleno = 3 (0x3), region = 84 }
 0x44f   :  { %5779 = vsyncpa [#allocation4], 1 }
 0x450   :  { %5781 = vsyncpa [#allocation4 + $0x1], 1 }

</bundles_post_ra>
